<compile_context>
chip_gen: v7x
topology: tpu7x:2x2x1
jax: 0.10.0
libtpu: 0.0.40
codegen_flags: <defaults>
</compile_context>

<pallas_src>
from functools import partial

import numpy as np
import jax
import jax.numpy as jnp
from jax.experimental import pallas as pl
from jax.experimental.pallas import tpu as pltpu


# ----------------------------------------------------------------------------- #
# Fused kernel: `batch_tile` images per grid step.
# ----------------------------------------------------------------------------- #
def _splat_kernel(xp_ref, wc_ref, bc_ref, w1_ref, b1_ref, w2_ref, b2_ref,
                  o_ref, col_ref, y_ref, *, radix, kh_kw, out_hw):
    # xp_ref : (TB, Hp, Wp, Cin)  bf16, spatially pre-padded NHWC input tile
    # wc_ref : (K, Cout)          bf16 dense block-diag conv weight, K = KH*KW*Cin
    # bc_ref : (1, Cout) f32      conv bias
    # w1_ref : (C, inter) bf16, b1_ref: (1, inter) f32      fc1 (block-diag dense)
    # w2_ref : (inter, Cout) bf16, b2_ref: (1, Cout) f32    fc2 (radix-major cols)
    # o_ref  : (TB, HW, C) f32    NHWC-flat output
    # col_ref: (TB*HW, K) bf16    im2col scratch
    # y_ref  : (TB*HW, Cout) f32  conv+ReLU activations scratch
    KH, KW = kh_kw
    Ho, Wo = out_hw
    TB, Hp, Wp, Cin = xp_ref.shape
    K, Cout = wc_ref.shape
    C = Cout // radix
    HW = Ho * Wo

    # ---- im2col into the bf16 VMEM scratch (tap-major columns) ---------------
    for b in range(TB):
        xb = xp_ref[b]                                        # (Hp, Wp, Cin)
        for kh in range(KH):
            for kw in range(KW):
                t = kh * KW + kw
                win = xb[kh:kh + Ho, kw:kw + Wo, :].reshape(HW, Cin)
                col_ref[b * HW:(b + 1) * HW, t * Cin:(t + 1) * Cin] = win

    # ---- grouped KxK conv as ONE MXU dot (+bias, ReLU), result kept in VMEM --
    y = jnp.dot(col_ref[...], wc_ref[...], preferred_element_type=jnp.float32)
    y_ref[...] = jnp.maximum(y + bc_ref[...], 0.0)            # (TB*HW, radix*C)

    # ---- per-image radix split-sum + global average pool -> (TB, C) ----------
    gap_rows = []
    for b in range(TB):
        yb = y_ref[b * HW:(b + 1) * HW, :]
        ssum = yb[:, 0:C]
        for r in range(1, radix):
            ssum = ssum + yb[:, r * C:(r + 1) * C]
        gap_rows.append(jnp.sum(ssum, axis=0, keepdims=True) * (1.0 / HW))
    gap = gap_rows[0] if TB == 1 else jnp.concatenate(gap_rows, axis=0)

    # ---- fc1 (+ReLU) and fc2 (grouped 1x1 convs as block-diag dense dots) ----
    hid = jnp.dot(gap.astype(jnp.bfloat16), w1_ref[...],
                  preferred_element_type=jnp.float32) + b1_ref[...]
    hid = jnp.maximum(hid, 0.0)                               # (TB, inter) f32
    logits = (jnp.dot(hid.astype(jnp.bfloat16), w2_ref[...],
                      preferred_element_type=jnp.float32)
              + b2_ref[...])                                  # (TB, radix*C), radix-major

    # ---- rSoftMax over radix --------------------------------------------------
    if radix == 1:
        att_parts = [jax.nn.sigmoid(logits)]                  # (TB, C)
    elif radix == 2:
        a0 = jax.nn.sigmoid(logits[:, 0:C] - logits[:, C:2 * C])
        att_parts = [a0, 1.0 - a0]
    else:
        parts = [logits[:, r * C:(r + 1) * C] for r in range(radix)]
        m = parts[0]
        for p in parts[1:]:
            m = jnp.maximum(m, p)
        exps = [jnp.exp(p - m) for p in parts]
        tot = exps[0]
        for e in exps[1:]:
            tot = tot + e
        inv = pl.reciprocal(tot, approx=True)
        att_parts = [e * inv for e in exps]

    # ---- attention-weighted recombination of the radix splits ----------------
    for b in range(TB):
        yb = y_ref[b * HW:(b + 1) * HW, :]
        out_b = att_parts[0][b:b + 1, :] * yb[:, 0:C]
        for r in range(1, radix):
            out_b = out_b + att_parts[r][b:b + 1, :] * yb[:, r * C:(r + 1) * C]
        o_ref[b] = out_b.astype(o_ref.dtype)


# ----------------------------------------------------------------------------- #
# One-time (weight-load-time) parameter preparation — host-side numpy, so none
# of the block-diagonal scatters / permutations sit on the jitted per-call path.
# ----------------------------------------------------------------------------- #
def prepare_splat_params(params, *, radix, groups):
    w_conv = np.asarray(params["w_conv"], np.float32)
    b_conv = np.asarray(params["b_conv"], np.float32)
    w_fc1 = np.asarray(params["w_fc1"], np.float32)
    b_fc1 = np.asarray(params["b_fc1"], np.float32)
    w_fc2 = np.asarray(params["w_fc2"], np.float32)
    b_fc2 = np.asarray(params["b_fc2"], np.float32)

    Cout, cin_pg, KH, KW = w_conv.shape            # Cout = channels*radix
    channels = Cout // radix
    card = groups
    G = card * radix
    Cin = cin_pg * G
    inter = w_fc1.shape[0]
    cout_pg = Cout // G
    cpg = channels // card
    ipg = inter // card
    o_pg = Cout // card
    K = KH * KW * Cin

    # grouped KxK conv -> dense (K, Cout); K ordered tap-major, in-channel minor
    wc = np.zeros((K, Cout), np.float32)
    for g in range(G):
        for kh in range(KH):
            for kw in range(KW):
                t = kh * KW + kw
                wc[t * Cin + g * cin_pg:t * Cin + (g + 1) * cin_pg,
                   g * cout_pg:(g + 1) * cout_pg] = \
                    w_conv[g * cout_pg:(g + 1) * cout_pg, :, kh, kw].T
    # grouped 1x1 fc1 / fc2 -> block-diagonal dense
    w1 = np.zeros((channels, inter), np.float32)
    for g in range(card):
        w1[g * cpg:(g + 1) * cpg, g * ipg:(g + 1) * ipg] = \
            w_fc1[g * ipg:(g + 1) * ipg, :, 0, 0].T
    w2 = np.zeros((inter, Cout), np.float32)
    for g in range(card):
        w2[g * ipg:(g + 1) * ipg, g * o_pg:(g + 1) * o_pg] = \
            w_fc2[g * o_pg:(g + 1) * o_pg, :, 0, 0].T
    # permute fc2 output channels from cardinal-major (g, r, c') to radix-major
    # (r, g, c'): softmax-over-radix and split weighting become plain slices.
    perm = np.empty((Cout,), np.int32)
    for g in range(card):
        for r in range(radix):
            for c in range(cpg):
                perm[r * channels + g * cpg + c] = g * (radix * cpg) + r * cpg + c
    w2 = w2[:, perm]
    b2 = b_fc2[perm]

    return dict(
        wc=jnp.asarray(wc, jnp.bfloat16),
        bc=jnp.asarray(b_conv.reshape(1, Cout), jnp.float32),
        w1=jnp.asarray(w1, jnp.bfloat16),
        b1=jnp.asarray(b_fc1.reshape(1, inter), jnp.float32),
        w2=jnp.asarray(w2, jnp.bfloat16),
        b2=jnp.asarray(b2.reshape(1, Cout), jnp.float32),
        kernel_size=(KH, KW),
        radix=int(radix),
    )


# ----------------------------------------------------------------------------- #
# Forward wrapper: NCHW in / NCHW out (PyTorch semantics).
# ----------------------------------------------------------------------------- #
@partial(jax.jit, static_argnames=("radix", "kernel_size", "padding", "batch_tile"))
def _splat_forward(x, wc, bc, w1, b1, w2, b2, *, radix, kernel_size, padding,
                   batch_tile):
    B, Cin, H, W = x.shape
    KH, KW = kernel_size
    ph, pw = padding
    K, Cout = wc.shape
    channels = Cout // radix
    inter = w1.shape[1]
    Ho, Wo = H + 2 * ph - KH + 1, W + 2 * pw - KW + 1
    HW = Ho * Wo
    TB = batch_tile
    assert B % TB == 0, "batch must be divisible by batch_tile"

    # NCHW -> NHWC, spatial zero-pad, bf16 cast: one fused XLA copy of the input.
    # TODO(synk): fold this transpose/pad into the kernel (masked border taps) to
    #             drop the remaining input-side HBM round trip.
    xp = jnp.pad(jnp.transpose(x, (0, 2, 3, 1)).astype(jnp.bfloat16),
                 ((0, 0), (ph, ph), (pw, pw), (0, 0)))
    Hp, Wp = H + 2 * ph, W + 2 * pw

    kernel = partial(_splat_kernel, radix=radix, kh_kw=(KH, KW), out_hw=(Ho, Wo))

    out_flat = pl.pallas_call(
        kernel,
        out_shape=jax.ShapeDtypeStruct((B, HW, channels), jnp.float32),
        grid_spec=pltpu.PrefetchScalarGridSpec(
            num_scalar_prefetch=0,
            grid=(B // TB,),
            in_specs=[
                pl.BlockSpec((TB, Hp, Wp, Cin), lambda i: (i, 0, 0, 0)),
                pl.BlockSpec((K, Cout), lambda i: (0, 0)),
                pl.BlockSpec((1, Cout), lambda i: (0, 0)),
                pl.BlockSpec((channels, inter), lambda i: (0, 0)),
                pl.BlockSpec((1, inter), lambda i: (0, 0)),
                pl.BlockSpec((inter, Cout), lambda i: (0, 0)),
                pl.BlockSpec((1, Cout), lambda i: (0, 0)),
            ],
            out_specs=pl.BlockSpec((TB, HW, channels), lambda i: (i, 0, 0)),
            scratch_shapes=[
                pltpu.VMEM((TB * HW, K), jnp.bfloat16),     # im2col
                pltpu.VMEM((TB * HW, Cout), jnp.float32),   # conv+ReLU activations
            ]),
        compiler_params=pltpu.CompilerParams(
            dimension_semantics=("parallel",),
            vmem_limit_bytes=32 * 1024 * 1024),
    )(xp, wc, bc, w1, b1, w2, b2)

    out = out_flat.reshape(B, Ho, Wo, channels)
    return jnp.transpose(out, (0, 3, 1, 2))


def splat_conv2d(x, prep, *, padding=(1, 1), batch_tile=1):
    """SplAtConv2d forward (stride=1, dilation=1, no BN / DropBlock)."""
    if x.shape[0] % batch_tile:
        raise ValueError("batch must be divisible by batch_tile")
    return _splat_forward(
        x, prep["wc"], prep["bc"], prep["w1"], prep["b1"], prep["w2"], prep["b2"],
        radix=prep["radix"], kernel_size=prep["kernel_size"],
        padding=tuple(padding), batch_tile=batch_tile)


# ----------------------------------------------------------------------------- #
# Parameter init (PyTorch layouts) and pure-JAX reference of the PyTorch forward.
# ----------------------------------------------------------------------------- #
def init_splat_params(key, in_channels, channels, kernel_size, groups, radix,
                      reduction_factor=4):
    KH, KW = kernel_size
    G = groups * radix
    inter = max(in_channels * radix // reduction_factor, 32)
    Cout = channels * radix
    k = jax.random.split(key, 6)

    def _w(kk, shape, fan_in):
        return jax.random.normal(kk, shape, jnp.float32) / np.sqrt(float(fan_in))

    return dict(
        w_conv=_w(k[0], (Cout, in_channels // G, KH, KW),
                  (in_channels // G) * KH * KW),
        b_conv=0.1 * jax.random.normal(k[1], (Cout,), jnp.float32),
        w_fc1=_w(k[2], (inter, channels // groups, 1, 1), channels // groups),
        b_fc1=0.1 * jax.random.normal(k[3], (inter,), jnp.float32),
        w_fc2=_w(k[4], (Cout, inter // groups, 1, 1), inter // groups),
        b_fc2=0.1 * jax.random.normal(k[5], (Cout,), jnp.float32),
    )


def splat_conv2d_ref(x, params, *, radix, groups, padding=(1, 1)):
    """Pure-JAX mirror of the PyTorch SplAtConv2d.forward (module defaults)."""
    card = groups
    ph, pw = padding
    dn = ("NCHW", "OIHW", "NCHW")
    hi = jax.lax.Precision.HIGHEST

    y = jax.lax.conv_general_dilated(
        x, params["w_conv"], (1, 1), ((ph, ph), (pw, pw)),
        dimension_numbers=dn, feature_group_count=card * radix, precision=hi)
    y = jnp.maximum(y + params["b_conv"][None, :, None, None], 0.0)
    B, rchannel = y.shape[:2]
    C = rchannel // radix
    if radix > 1:
        splits = [y[:, r * C:(r + 1) * C] for r in range(radix)]
        gap = splits[0]
        for s in splits[1:]:
            gap = gap + s
    else:
        gap = y
    gap = jnp.mean(gap, axis=(2, 3), keepdims=True)
    gap = jax.lax.conv_general_dilated(
        gap, params["w_fc1"], (1, 1), "VALID",
        dimension_numbers=dn, feature_group_count=card, precision=hi)
    gap = jnp.maximum(gap + params["b_fc1"][None, :, None, None], 0.0)
    atten = jax.lax.conv_general_dilated(
        gap, params["w_fc2"], (1, 1), "VALID",
        dimension_numbers=dn, feature_group_count=card, precision=hi)
    atten = atten + params["b_fc2"][None, :, None, None]
    if radix > 1:
        a = atten.reshape(B, card, radix, -1)
        a = jnp.transpose(a, (0, 2, 1, 3))
        a = jax.nn.softmax(a, axis=1).reshape(B, -1, 1, 1)
        attens = [a[:, r * C:(r + 1) * C] for r in range(radix)]
        out = attens[0] * splits[0]
        for r in range(1, radix):
            out = out + attens[r] * splits[r]
    else:
        out = jax.nn.sigmoid(atten) * y
    return out


if __name__ == "__main__":
    key = jax.random.PRNGKey(0)
    kx, kp1, kp2 = jax.random.split(key, 3)

    # radix=2, cardinality=2 (standard ResNeSt config), small shapes,
    # batch_tile=2 so the whole batch runs as one big-M grid step.
    B, Cin, H, W = 2, 32, 16, 16
    channels, radix, groups = 32, 2, 2
    params = init_splat_params(kp1, Cin, channels, (3, 3), groups, radix)
    prep = prepare_splat_params(params, radix=radix, groups=groups)
    x = jax.random.normal(kx, (B, Cin, H, W), dtype=jnp.float32)

    out = jax.block_until_ready(
        splat_conv2d(x, prep, padding=(1, 1), batch_tile=2))
    ref = splat_conv2d_ref(x, params, radix=radix, groups=groups, padding=(1, 1))
    assert out.shape == (B, channels, H, W), out.shape
    # Tolerance covers bf16 matmul operands (f32 accumulation) vs the exact-f32
    # XLA reference; genuine layout/permutation bugs produce O(0.1+) errors.
    assert jnp.allclose(out, ref, atol=3e-2, rtol=3e-2), \
        float(jnp.max(jnp.abs(out - ref)))

    # radix=1 branch (sigmoid attention, no radix split), batch_tile=1 so the
    # batch axis is a parallel grid (exercises both paths).
    params1 = init_splat_params(kp2, Cin, channels, (3, 3), 1, 1)
    prep1 = prepare_splat_params(params1, radix=1, groups=1)
    out1 = jax.block_until_ready(
        splat_conv2d(x, prep1, padding=(1, 1), batch_tile=1))
    ref1 = splat_conv2d_ref(x, params1, radix=1, groups=1, padding=(1, 1))
    assert out1.shape == (B, channels, H, W), out1.shape
    assert jnp.allclose(out1, ref1, atol=3e-2, rtol=3e-2), \
        float(jnp.max(jnp.abs(out1 - ref1)))

    print("KERNEL_OK")
</pallas_src>

<mosaic_0001>
module attributes {stable_mosaic.version = 11 : i64} {
  func.func @_splat_kernel(%arg0: i32, %arg1: memref<2x18x18x32xbf16, #tpu.memory_space<vmem>>, %arg2: memref<288x64xbf16, #tpu.memory_space<vmem>>, %arg3: memref<1x64xf32, #tpu.memory_space<vmem>>, %arg4: memref<32x32xbf16, #tpu.memory_space<vmem>>, %arg5: memref<1x32xf32, #tpu.memory_space<vmem>>, %arg6: memref<32x64xbf16, #tpu.memory_space<vmem>>, %arg7: memref<1x64xf32, #tpu.memory_space<vmem>>, %arg8: memref<2x256x32xf32, #tpu.memory_space<vmem>>, %arg9: memref<512x288xbf16, #tpu.memory_space<vmem>>, %arg10: memref<512x64xf32, #tpu.memory_space<vmem>>) attributes {dimension_semantics = [#tpu.dimension_semantics<parallel>], iteration_bounds = array<i64: 1>, scalar_prefetch = 0 : i64, scratch_operands = 2 : i64, tpu.core_type = #tpu.core_type<tc>, window_params = [{transform_indices = @transform_0, window_bounds = array<i64: 2, 18, 18, 32>}, {pipeline_mode = #tpu.pipeline_mode<synchronous>, transform_indices = @transform_1, window_bounds = array<i64: 288, 64>}, {pipeline_mode = #tpu.pipeline_mode<synchronous>, transform_indices = @transform_2, window_bounds = array<i64: 1, 64>}, {pipeline_mode = #tpu.pipeline_mode<synchronous>, transform_indices = @transform_3, window_bounds = array<i64: 32, 32>}, {pipeline_mode = #tpu.pipeline_mode<synchronous>, transform_indices = @transform_4, window_bounds = array<i64: 1, 32>}, {pipeline_mode = #tpu.pipeline_mode<synchronous>, transform_indices = @transform_5, window_bounds = array<i64: 32, 64>}, {pipeline_mode = #tpu.pipeline_mode<synchronous>, transform_indices = @transform_6, window_bounds = array<i64: 1, 64>}, {transform_indices = @transform_7, window_bounds = array<i64: 2, 256, 32>}]} {
    %c0 = arith.constant 0 : index
    %c0_0 = arith.constant 0 : index
    %c0_1 = arith.constant 0 : index
    %c0_2 = arith.constant 0 : index
    %0 = vector.load %arg1[%c0, %c0_0, %c0_1, %c0_2] : memref<2x18x18x32xbf16, #tpu.memory_space<vmem>>, vector<1x18x18x32xbf16>
    %1 = vector.shape_cast %0 : vector<1x18x18x32xbf16> to vector<18x18x32xbf16>
    %2 = vector.extract_strided_slice %1 {offsets = [0, 0, 0], sizes = [16, 16, 32], strides = [1, 1, 1]} : vector<18x18x32xbf16> to vector<16x16x32xbf16>
    %3 = vector.shape_cast %2 : vector<16x16x32xbf16> to vector<256x32xbf16>
    %c0_3 = arith.constant 0 : index
    %c0_4 = arith.constant 0 : index
    %4 = vector.load %arg9[%c0_3, %c0_4] : memref<512x288xbf16, #tpu.memory_space<vmem>>, vector<256x32xbf16>
    tpu.vector_store %arg9[%c0_3, %c0_4], %3 {strides = array<i32>} : memref<512x288xbf16, #tpu.memory_space<vmem>>, vector<256x32xbf16>,
    %5 = vector.extract_strided_slice %1 {offsets = [0, 1, 0], sizes = [16, 16, 32], strides = [1, 1, 1]} : vector<18x18x32xbf16> to vector<16x16x32xbf16>
    %6 = vector.shape_cast %5 : vector<16x16x32xbf16> to vector<256x32xbf16>
    %c0_5 = arith.constant 0 : index
    %c32 = arith.constant 32 : index
    %7 = vector.load %arg9[%c0_5, %c32] : memref<512x288xbf16, #tpu.memory_space<vmem>>, vector<256x32xbf16>
    tpu.vector_store %arg9[%c0_5, %c32], %6 {strides = array<i32>} : memref<512x288xbf16, #tpu.memory_space<vmem>>, vector<256x32xbf16>,
    %8 = vector.extract_strided_slice %1 {offsets = [0, 2, 0], sizes = [16, 16, 32], strides = [1, 1, 1]} : vector<18x18x32xbf16> to vector<16x16x32xbf16>
    %9 = vector.shape_cast %8 : vector<16x16x32xbf16> to vector<256x32xbf16>
    %c0_6 = arith.constant 0 : index
    %c64 = arith.constant 64 : index
    %10 = vector.load %arg9[%c0_6, %c64] : memref<512x288xbf16, #tpu.memory_space<vmem>>, vector<256x32xbf16>
    tpu.vector_store %arg9[%c0_6, %c64], %9 {strides = array<i32>} : memref<512x288xbf16, #tpu.memory_space<vmem>>, vector<256x32xbf16>,
    %11 = vector.extract_strided_slice %1 {offsets = [1, 0, 0], sizes = [16, 16, 32], strides = [1, 1, 1]} : vector<18x18x32xbf16> to vector<16x16x32xbf16>
    %12 = vector.shape_cast %11 : vector<16x16x32xbf16> to vector<256x32xbf16>
    %c0_7 = arith.constant 0 : index
    %c96 = arith.constant 96 : index
    %13 = vector.load %arg9[%c0_7, %c96] : memref<512x288xbf16, #tpu.memory_space<vmem>>, vector<256x32xbf16>
    tpu.vector_store %arg9[%c0_7, %c96], %12 {strides = array<i32>} : memref<512x288xbf16, #tpu.memory_space<vmem>>, vector<256x32xbf16>,
    %14 = vector.extract_strided_slice %1 {offsets = [1, 1, 0], sizes = [16, 16, 32], strides = [1, 1, 1]} : vector<18x18x32xbf16> to vector<16x16x32xbf16>
    %15 = vector.shape_cast %14 : vector<16x16x32xbf16> to vector<256x32xbf16>
    %c0_8 = arith.constant 0 : index
    %c128 = arith.constant 128 : index
    %16 = vector.load %arg9[%c0_8, %c128] : memref<512x288xbf16, #tpu.memory_space<vmem>>, vector<256x32xbf16>
    tpu.vector_store %arg9[%c0_8, %c128], %15 {strides = array<i32>} : memref<512x288xbf16, #tpu.memory_space<vmem>>, vector<256x32xbf16>,
    %17 = vector.extract_strided_slice %1 {offsets = [1, 2, 0], sizes = [16, 16, 32], strides = [1, 1, 1]} : vector<18x18x32xbf16> to vector<16x16x32xbf16>
    %18 = vector.shape_cast %17 : vector<16x16x32xbf16> to vector<256x32xbf16>
    %c0_9 = arith.constant 0 : index
    %c160 = arith.constant 160 : index
    %19 = vector.load %arg9[%c0_9, %c160] : memref<512x288xbf16, #tpu.memory_space<vmem>>, vector<256x32xbf16>
    tpu.vector_store %arg9[%c0_9, %c160], %18 {strides = array<i32>} : memref<512x288xbf16, #tpu.memory_space<vmem>>, vector<256x32xbf16>,
    %20 = vector.extract_strided_slice %1 {offsets = [2, 0, 0], sizes = [16, 16, 32], strides = [1, 1, 1]} : vector<18x18x32xbf16> to vector<16x16x32xbf16>
    %21 = vector.shape_cast %20 : vector<16x16x32xbf16> to vector<256x32xbf16>
    %c0_10 = arith.constant 0 : index
    %c192 = arith.constant 192 : index
    %22 = vector.load %arg9[%c0_10, %c192] : memref<512x288xbf16, #tpu.memory_space<vmem>>, vector<256x32xbf16>
    tpu.vector_store %arg9[%c0_10, %c192], %21 {strides = array<i32>} : memref<512x288xbf16, #tpu.memory_space<vmem>>, vector<256x32xbf16>,
    %23 = vector.extract_strided_slice %1 {offsets = [2, 1, 0], sizes = [16, 16, 32], strides = [1, 1, 1]} : vector<18x18x32xbf16> to vector<16x16x32xbf16>
    %24 = vector.shape_cast %23 : vector<16x16x32xbf16> to vector<256x32xbf16>
    %c0_11 = arith.constant 0 : index
    %c224 = arith.constant 224 : index
    %25 = vector.load %arg9[%c0_11, %c224] : memref<512x288xbf16, #tpu.memory_space<vmem>>, vector<256x32xbf16>
    tpu.vector_store %arg9[%c0_11, %c224], %24 {strides = array<i32>} : memref<512x288xbf16, #tpu.memory_space<vmem>>, vector<256x32xbf16>,
    %26 = vector.extract_strided_slice %1 {offsets = [2, 2, 0], sizes = [16, 16, 32], strides = [1, 1, 1]} : vector<18x18x32xbf16> to vector<16x16x32xbf16>
    %27 = vector.shape_cast %26 : vector<16x16x32xbf16> to vector<256x32xbf16>
    %c0_12 = arith.constant 0 : index
    %c256 = arith.constant 256 : index
    %28 = vector.load %arg9[%c0_12, %c256] : memref<512x288xbf16, #tpu.memory_space<vmem>>, vector<256x32xbf16>
    tpu.vector_store %arg9[%c0_12, %c256], %27 {strides = array<i32>} : memref<512x288xbf16, #tpu.memory_space<vmem>>, vector<256x32xbf16>,
    %c1 = arith.constant 1 : index
    %c0_13 = arith.constant 0 : index
    %c0_14 = arith.constant 0 : index
    %c0_15 = arith.constant 0 : index
    %29 = vector.load %arg1[%c1, %c0_13, %c0_14, %c0_15] : memref<2x18x18x32xbf16, #tpu.memory_space<vmem>>, vector<1x18x18x32xbf16>
    %30 = vector.shape_cast %29 : vector<1x18x18x32xbf16> to vector<18x18x32xbf16>
    %31 = vector.extract_strided_slice %30 {offsets = [0, 0, 0], sizes = [16, 16, 32], strides = [1, 1, 1]} : vector<18x18x32xbf16> to vector<16x16x32xbf16>
    %32 = vector.shape_cast %31 : vector<16x16x32xbf16> to vector<256x32xbf16>
    %c256_16 = arith.constant 256 : index
    %c0_17 = arith.constant 0 : index
    %33 = vector.load %arg9[%c256_16, %c0_17] : memref<512x288xbf16, #tpu.memory_space<vmem>>, vector<256x32xbf16>
    tpu.vector_store %arg9[%c256_16, %c0_17], %32 {strides = array<i32>} : memref<512x288xbf16, #tpu.memory_space<vmem>>, vector<256x32xbf16>,
    %34 = vector.extract_strided_slice %30 {offsets = [0, 1, 0], sizes = [16, 16, 32], strides = [1, 1, 1]} : vector<18x18x32xbf16> to vector<16x16x32xbf16>
    %35 = vector.shape_cast %34 : vector<16x16x32xbf16> to vector<256x32xbf16>
    %c256_18 = arith.constant 256 : index
    %c32_19 = arith.constant 32 : index
    %36 = vector.load %arg9[%c256_18, %c32_19] : memref<512x288xbf16, #tpu.memory_space<vmem>>, vector<256x32xbf16>
    tpu.vector_store %arg9[%c256_18, %c32_19], %35 {strides = array<i32>} : memref<512x288xbf16, #tpu.memory_space<vmem>>, vector<256x32xbf16>,
    %37 = vector.extract_strided_slice %30 {offsets = [0, 2, 0], sizes = [16, 16, 32], strides = [1, 1, 1]} : vector<18x18x32xbf16> to vector<16x16x32xbf16>
    %38 = vector.shape_cast %37 : vector<16x16x32xbf16> to vector<256x32xbf16>
    %c256_20 = arith.constant 256 : index
    %c64_21 = arith.constant 64 : index
    %39 = vector.load %arg9[%c256_20, %c64_21] : memref<512x288xbf16, #tpu.memory_space<vmem>>, vector<256x32xbf16>
    tpu.vector_store %arg9[%c256_20, %c64_21], %38 {strides = array<i32>} : memref<512x288xbf16, #tpu.memory_space<vmem>>, vector<256x32xbf16>,
    %40 = vector.extract_strided_slice %30 {offsets = [1, 0, 0], sizes = [16, 16, 32], strides = [1, 1, 1]} : vector<18x18x32xbf16> to vector<16x16x32xbf16>
    %41 = vector.shape_cast %40 : vector<16x16x32xbf16> to vector<256x32xbf16>
    %c256_22 = arith.constant 256 : index
    %c96_23 = arith.constant 96 : index
    %42 = vector.load %arg9[%c256_22, %c96_23] : memref<512x288xbf16, #tpu.memory_space<vmem>>, vector<256x32xbf16>
    tpu.vector_store %arg9[%c256_22, %c96_23], %41 {strides = array<i32>} : memref<512x288xbf16, #tpu.memory_space<vmem>>, vector<256x32xbf16>,
    %43 = vector.extract_strided_slice %30 {offsets = [1, 1, 0], sizes = [16, 16, 32], strides = [1, 1, 1]} : vector<18x18x32xbf16> to vector<16x16x32xbf16>
    %44 = vector.shape_cast %43 : vector<16x16x32xbf16> to vector<256x32xbf16>
    %c256_24 = arith.constant 256 : index
    %c128_25 = arith.constant 128 : index
    %45 = vector.load %arg9[%c256_24, %c128_25] : memref<512x288xbf16, #tpu.memory_space<vmem>>, vector<256x32xbf16>
    tpu.vector_store %arg9[%c256_24, %c128_25], %44 {strides = array<i32>} : memref<512x288xbf16, #tpu.memory_space<vmem>>, vector<256x32xbf16>,
    %46 = vector.extract_strided_slice %30 {offsets = [1, 2, 0], sizes = [16, 16, 32], strides = [1, 1, 1]} : vector<18x18x32xbf16> to vector<16x16x32xbf16>
    %47 = vector.shape_cast %46 : vector<16x16x32xbf16> to vector<256x32xbf16>
    %c256_26 = arith.constant 256 : index
    %c160_27 = arith.constant 160 : index
    %48 = vector.load %arg9[%c256_26, %c160_27] : memref<512x288xbf16, #tpu.memory_space<vmem>>, vector<256x32xbf16>
    tpu.vector_store %arg9[%c256_26, %c160_27], %47 {strides = array<i32>} : memref<512x288xbf16, #tpu.memory_space<vmem>>, vector<256x32xbf16>,
    %49 = vector.extract_strided_slice %30 {offsets = [2, 0, 0], sizes = [16, 16, 32], strides = [1, 1, 1]} : vector<18x18x32xbf16> to vector<16x16x32xbf16>
    %50 = vector.shape_cast %49 : vector<16x16x32xbf16> to vector<256x32xbf16>
    %c256_28 = arith.constant 256 : index
    %c192_29 = arith.constant 192 : index
    %51 = vector.load %arg9[%c256_28, %c192_29] : memref<512x288xbf16, #tpu.memory_space<vmem>>, vector<256x32xbf16>
    tpu.vector_store %arg9[%c256_28, %c192_29], %50 {strides = array<i32>} : memref<512x288xbf16, #tpu.memory_space<vmem>>, vector<256x32xbf16>,
    %52 = vector.extract_strided_slice %30 {offsets = [2, 1, 0], sizes = [16, 16, 32], strides = [1, 1, 1]} : vector<18x18x32xbf16> to vector<16x16x32xbf16>
    %53 = vector.shape_cast %52 : vector<16x16x32xbf16> to vector<256x32xbf16>
    %c256_30 = arith.constant 256 : index
    %c224_31 = arith.constant 224 : index
    %54 = vector.load %arg9[%c256_30, %c224_31] : memref<512x288xbf16, #tpu.memory_space<vmem>>, vector<256x32xbf16>
    tpu.vector_store %arg9[%c256_30, %c224_31], %53 {strides = array<i32>} : memref<512x288xbf16, #tpu.memory_space<vmem>>, vector<256x32xbf16>,
    %55 = vector.extract_strided_slice %30 {offsets = [2, 2, 0], sizes = [16, 16, 32], strides = [1, 1, 1]} : vector<18x18x32xbf16> to vector<16x16x32xbf16>
    %56 = vector.shape_cast %55 : vector<16x16x32xbf16> to vector<256x32xbf16>
    %c256_32 = arith.constant 256 : index
    %c256_33 = arith.constant 256 : index
    %57 = vector.load %arg9[%c256_32, %c256_33] : memref<512x288xbf16, #tpu.memory_space<vmem>>, vector<256x32xbf16>
    tpu.vector_store %arg9[%c256_32, %c256_33], %56 {strides = array<i32>} : memref<512x288xbf16, #tpu.memory_space<vmem>>, vector<256x32xbf16>,
    %c0_34 = arith.constant 0 : index
    %c0_35 = arith.constant 0 : index
    %58 = vector.load %arg9[%c0_34, %c0_35] : memref<512x288xbf16, #tpu.memory_space<vmem>>, vector<512x288xbf16>
    %c0_36 = arith.constant 0 : index
    %c0_37 = arith.constant 0 : index
    %59 = vector.load %arg2[%c0_36, %c0_37] : memref<288x64xbf16, #tpu.memory_space<vmem>>, vector<288x64xbf16>
    %cst = arith.constant dense<0.000000e+00> : vector<512x64xf32>
    %60 = tpu.matmul %58, %59, %cst {dimension_numbers = #tpu.dot_dimension_numbers<[1], [0], [0], [1], [0, 0, 1, 1], [], []>} : vector<512x288xbf16>, vector<288x64xbf16>, vector<512x64xf32> -> vector<512x64xf32>
    %c0_38 = arith.constant 0 : index
    %c0_39 = arith.constant 0 : index
    %61 = vector.load %arg3[%c0_38, %c0_39] : memref<1x64xf32, #tpu.memory_space<vmem>>, vector<1x64xf32>
    %62 = vector.broadcast %61 : vector<1x64xf32> to vector<512x64xf32>
    %63 = arith.addf %60, %62 : vector<512x64xf32>
    %cst_40 = arith.constant 0.000000e+00 : f32
    %64 = vector.broadcast %cst_40 : f32 to vector<512x64xf32>
    %65 = arith.maximumf %63, %64 : vector<512x64xf32>
    %c0_41 = arith.constant 0 : index
    %c0_42 = arith.constant 0 : index
    %66 = vector.load %arg10[%c0_41, %c0_42] : memref<512x64xf32, #tpu.memory_space<vmem>>, vector<512x64xf32>
    tpu.vector_store %arg10[%c0_41, %c0_42], %65 {strides = array<i32>} : memref<512x64xf32, #tpu.memory_space<vmem>>, vector<512x64xf32>,
    %c0_43 = arith.constant 0 : index
    %c0_44 = arith.constant 0 : index
    %67 = vector.load %arg10[%c0_43, %c0_44] : memref<512x64xf32, #tpu.memory_space<vmem>>, vector<256x64xf32>
    %68 = vector.extract_strided_slice %67 {offsets = [0, 0], sizes = [256, 32], strides = [1, 1]} : vector<256x64xf32> to vector<256x32xf32>
    %69 = vector.extract_strided_slice %67 {offsets = [0, 32], sizes = [256, 32], strides = [1, 1]} : vector<256x64xf32> to vector<256x32xf32>
    %70 = arith.addf %68, %69 : vector<256x32xf32>
    %cst_45 = arith.constant dense<0.000000e+00> : vector<32xf32>
    %71 = vector.multi_reduction <add>, %70, %cst_45 [0] : vector<256x32xf32> to vector<32xf32>
    %72 = vector.shape_cast %71 : vector<32xf32> to vector<1x32xf32>
    %cst_46 = arith.constant 3.906250e-03 : f32
    %73 = vector.broadcast %cst_46 : f32 to vector<1x32xf32>
    %74 = arith.mulf %72, %73 : vector<1x32xf32>
    %c256_47 = arith.constant 256 : index
    %c0_48 = arith.constant 0 : index
    %75 = vector.load %arg10[%c256_47, %c0_48] : memref<512x64xf32, #tpu.memory_space<vmem>>, vector<256x64xf32>
    %76 = vector.extract_strided_slice %75 {offsets = [0, 0], sizes = [256, 32], strides = [1, 1]} : vector<256x64xf32> to vector<256x32xf32>
    %77 = vector.extract_strided_slice %75 {offsets = [0, 32], sizes = [256, 32], strides = [1, 1]} : vector<256x64xf32> to vector<256x32xf32>
    %78 = arith.addf %76, %77 : vector<256x32xf32>
    %cst_49 = arith.constant dense<0.000000e+00> : vector<32xf32>
    %79 = vector.multi_reduction <add>, %78, %cst_49 [0] : vector<256x32xf32> to vector<32xf32>
    %80 = vector.shape_cast %79 : vector<32xf32> to vector<1x32xf32>
    %cst_50 = arith.constant 3.906250e-03 : f32
    %81 = vector.broadcast %cst_50 : f32 to vector<1x32xf32>
    %82 = arith.mulf %80, %81 : vector<1x32xf32>
    %83 = tpu.concatenate %74, %82 in 0 : vector<1x32xf32>, vector<1x32xf32> -> vector<2x32xf32>
    %84 = arith.truncf %83 : vector<2x32xf32> to vector<2x32xbf16>
    %c0_51 = arith.constant 0 : index
    %c0_52 = arith.constant 0 : index
    %85 = vector.load %arg4[%c0_51, %c0_52] : memref<32x32xbf16, #tpu.memory_space<vmem>>, vector<32x32xbf16>
    %cst_53 = arith.constant dense<0.000000e+00> : vector<2x32xf32>
    %86 = tpu.matmul %84, %85, %cst_53 {dimension_numbers = #tpu.dot_dimension_numbers<[1], [0], [0], [1], [0, 0, 1, 1], [], []>} : vector<2x32xbf16>, vector<32x32xbf16>, vector<2x32xf32> -> vector<2x32xf32>
    %c0_54 = arith.constant 0 : index
    %c0_55 = arith.constant 0 : index
    %87 = vector.load %arg5[%c0_54, %c0_55] : memref<1x32xf32, #tpu.memory_space<vmem>>, vector<1x32xf32>
    %88 = vector.broadcast %87 : vector<1x32xf32> to vector<2x32xf32>
    %89 = arith.addf %86, %88 : vector<2x32xf32>
    %cst_56 = arith.constant 0.000000e+00 : f32
    %90 = vector.broadcast %cst_56 : f32 to vector<2x32xf32>
    %91 = arith.maximumf %89, %90 : vector<2x32xf32>
    %92 = arith.truncf %91 : vector<2x32xf32> to vector<2x32xbf16>
    %c0_57 = arith.constant 0 : index
    %c0_58 = arith.constant 0 : index
    %93 = vector.load %arg6[%c0_57, %c0_58] : memref<32x64xbf16, #tpu.memory_space<vmem>>, vector<32x64xbf16>
    %cst_59 = arith.constant dense<0.000000e+00> : vector<2x64xf32>
    %94 = tpu.matmul %92, %93, %cst_59 {dimension_numbers = #tpu.dot_dimension_numbers<[1], [0], [0], [1], [0, 0, 1, 1], [], []>} : vector<2x32xbf16>, vector<32x64xbf16>, vector<2x64xf32> -> vector<2x64xf32>
    %c0_60 = arith.constant 0 : index
    %c0_61 = arith.constant 0 : index
    %95 = vector.load %arg7[%c0_60, %c0_61] : memref<1x64xf32, #tpu.memory_space<vmem>>, vector<1x64xf32>
    %96 = vector.broadcast %95 : vector<1x64xf32> to vector<2x64xf32>
    %97 = arith.addf %94, %96 : vector<2x64xf32>
    %98 = vector.extract_strided_slice %97 {offsets = [0, 0], sizes = [2, 32], strides = [1, 1]} : vector<2x64xf32> to vector<2x32xf32>
    %99 = vector.extract_strided_slice %97 {offsets = [0, 32], sizes = [2, 32], strides = [1, 1]} : vector<2x64xf32> to vector<2x32xf32>
    %100 = arith.subf %98, %99 : vector<2x32xf32>
    %101 = arith.negf %100 : vector<2x32xf32>
    %102 = math.exp %101 : vector<2x32xf32>
    %cst_62 = arith.constant 1.000000e+00 : f32
    %103 = vector.broadcast %cst_62 : f32 to vector<2x32xf32>
    %104 = arith.addf %103, %102 : vector<2x32xf32>
    %105 = arith.divf %103, %104 : vector<2x32xf32>
    %cst_63 = arith.constant 1.000000e+00 : f32
    %106 = vector.broadcast %cst_63 : f32 to vector<2x32xf32>
    %107 = arith.subf %106, %105 : vector<2x32xf32>
    %c0_64 = arith.constant 0 : index
    %c0_65 = arith.constant 0 : index
    %108 = vector.load %arg10[%c0_64, %c0_65] : memref<512x64xf32, #tpu.memory_space<vmem>>, vector<256x64xf32>
    %109 = vector.extract_strided_slice %105 {offsets = [0, 0], sizes = [1, 32], strides = [1, 1]} : vector<2x32xf32> to vector<1x32xf32>
    %110 = vector.extract_strided_slice %108 {offsets = [0, 0], sizes = [256, 32], strides = [1, 1]} : vector<256x64xf32> to vector<256x32xf32>
    %111 = vector.broadcast %109 : vector<1x32xf32> to vector<256x32xf32>
    %112 = arith.mulf %111, %110 : vector<256x32xf32>
    %113 = vector.extract_strided_slice %107 {offsets = [0, 0], sizes = [1, 32], strides = [1, 1]} : vector<2x32xf32> to vector<1x32xf32>
    %114 = vector.extract_strided_slice %108 {offsets = [0, 32], sizes = [256, 32], strides = [1, 1]} : vector<256x64xf32> to vector<256x32xf32>
    %115 = vector.broadcast %113 : vector<1x32xf32> to vector<256x32xf32>
    %116 = arith.mulf %115, %114 : vector<256x32xf32>
    %117 = arith.addf %112, %116 : vector<256x32xf32>
    %c0_66 = arith.constant 0 : index
    %c0_67 = arith.constant 0 : index
    %c0_68 = arith.constant 0 : index
    %118 = vector.load %arg8[%c0_66, %c0_67, %c0_68] : memref<2x256x32xf32, #tpu.memory_space<vmem>>, vector<1x256x32xf32>
    %119 = vector.shape_cast %118 : vector<1x256x32xf32> to vector<256x32xf32>
    %120 = vector.shape_cast %117 : vector<256x32xf32> to vector<1x256x32xf32>
    tpu.vector_store %arg8[%c0_66, %c0_67, %c0_68], %120 {strides = array<i32>} : memref<2x256x32xf32, #tpu.memory_space<vmem>>, vector<1x256x32xf32>,
    %c256_69 = arith.constant 256 : index
    %c0_70 = arith.constant 0 : index
    %121 = vector.load %arg10[%c256_69, %c0_70] : memref<512x64xf32, #tpu.memory_space<vmem>>, vector<256x64xf32>
    %122 = vector.extract_strided_slice %105 {offsets = [1, 0], sizes = [1, 32], strides = [1, 1]} : vector<2x32xf32> to vector<1x32xf32>
    %123 = vector.extract_strided_slice %121 {offsets = [0, 0], sizes = [256, 32], strides = [1, 1]} : vector<256x64xf32> to vector<256x32xf32>
    %124 = vector.broadcast %122 : vector<1x32xf32> to vector<256x32xf32>
    %125 = arith.mulf %124, %123 : vector<256x32xf32>
    %126 = vector.extract_strided_slice %107 {offsets = [1, 0], sizes = [1, 32], strides = [1, 1]} : vector<2x32xf32> to vector<1x32xf32>
    %127 = vector.extract_strided_slice %121 {offsets = [0, 32], sizes = [256, 32], strides = [1, 1]} : vector<256x64xf32> to vector<256x32xf32>
    %128 = vector.broadcast %126 : vector<1x32xf32> to vector<256x32xf32>
    %129 = arith.mulf %128, %127 : vector<256x32xf32>
    %130 = arith.addf %125, %129 : vector<256x32xf32>
    %c1_71 = arith.constant 1 : index
    %c0_72 = arith.constant 0 : index
    %c0_73 = arith.constant 0 : index
    %131 = vector.load %arg8[%c1_71, %c0_72, %c0_73] : memref<2x256x32xf32, #tpu.memory_space<vmem>>, vector<1x256x32xf32>
    %132 = vector.shape_cast %131 : vector<1x256x32xf32> to vector<256x32xf32>
    %133 = vector.shape_cast %130 : vector<256x32xf32> to vector<1x256x32xf32>
    tpu.vector_store %arg8[%c1_71, %c0_72, %c0_73], %133 {strides = array<i32>} : memref<2x256x32xf32, #tpu.memory_space<vmem>>, vector<1x256x32xf32>,
    return
  }
  func.func @transform_0(%arg0: i32) -> (i32, i32, i32, i32) {
    %c0_i32 = arith.constant 0 : i32
    %c0_i32_0 = arith.constant 0 : i32
    %c0_i32_1 = arith.constant 0 : i32
    %c0_i32_2 = arith.constant 0 : i32
    return %arg0, %c0_i32, %c0_i32_0, %c0_i32_1 : i32, i32, i32, i32
  }
  func.func @transform_1(%arg0: i32) -> (i32, i32) {
    %c0_i32 = arith.constant 0 : i32
    %c0_i32_0 = arith.constant 0 : i32
    %c0_i32_1 = arith.constant 0 : i32
    return %c0_i32, %c0_i32_0 : i32, i32
  }
  func.func @transform_2(%arg0: i32) -> (i32, i32) {
    %c0_i32 = arith.constant 0 : i32
    %c0_i32_0 = arith.constant 0 : i32
    %c0_i32_1 = arith.constant 0 : i32
    return %c0_i32, %c0_i32_0 : i32, i32
  }
  func.func @transform_3(%arg0: i32) -> (i32, i32) {
    %c0_i32 = arith.constant 0 : i32
    %c0_i32_0 = arith.constant 0 : i32
    %c0_i32_1 = arith.constant 0 : i32
    return %c0_i32, %c0_i32_0 : i32, i32
  }
  func.func @transform_4(%arg0: i32) -> (i32, i32) {
    %c0_i32 = arith.constant 0 : i32
    %c0_i32_0 = arith.constant 0 : i32
    %c0_i32_1 = arith.constant 0 : i32
    return %c0_i32, %c0_i32_0 : i32, i32
  }
  func.func @transform_5(%arg0: i32) -> (i32, i32) {
    %c0_i32 = arith.constant 0 : i32
    %c0_i32_0 = arith.constant 0 : i32
    %c0_i32_1 = arith.constant 0 : i32
    return %c0_i32, %c0_i32_0 : i32, i32
  }
  func.func @transform_6(%arg0: i32) -> (i32, i32) {
    %c0_i32 = arith.constant 0 : i32
    %c0_i32_0 = arith.constant 0 : i32
    %c0_i32_1 = arith.constant 0 : i32
    return %c0_i32, %c0_i32_0 : i32, i32
  }
  func.func @transform_7(%arg0: i32) -> (i32, i32, i32) {
    %c0_i32 = arith.constant 0 : i32
    %c0_i32_0 = arith.constant 0 : i32
    %c0_i32_1 = arith.constant 0 : i32
    return %arg0, %c0_i32, %c0_i32_0 : i32, i32, i32
  }
}

</mosaic_0001>

<bundles_post_ra>
// kernel: _splat_forward.1
= control target key start
LH: loop header
LB: loop body
LE: loop exit
PB: predicated region body
PF: predicated region fallthrough
CT: control target
= control target key end

     0   :  { %vm711_vm0 = vcmask 1042432   ;;  %vm712_vm1 = vcmask 1046532   ;;  %vm178_vm3 = vcmask 261120   ;;  %s5379_s15 = smov 64   ;;  %vm195_vm4 = vsmask.f32 3328  ;;  %s9109_s0 = inlined_call_operand.vmem [shape: bf16[2,18,18,32], index: 0, kind: input, shape index: {}]   ;;  %s9110_s1 = inlined_call_operand.vmem [shape: bf16[288,64], index: 1, kind: input, shape index: {}]   ;;  %s9111_s2 = inlined_call_operand.vmem [shape: f32[1,64], index: 2, kind: input, shape index: {}]   ;;  %s9112_s3 = inlined_call_operand.vmem [shape: bf16[32,32], index: 3, kind: input, shape index: {}]   ;;  %s9113_s4 = inlined_call_operand.vmem [shape: f32[1,32], index: 4, kind: input, shape index: {}]   ;;  %s9114_s5 = inlined_call_operand.vmem [shape: bf16[32,64], index: 5, kind: input, shape index: {}]   ;;  %s9115_s6 = inlined_call_operand.vmem [shape: f32[1,64], index: 6, kind: input, shape index: {}]   ;;  %s9116_s7 = inlined_call_operand.hbm [shape: f32[2,256,32], index: 7, kind: output, shape index: {}]  }
   0x1   :  { %v5431_v0 = vld [vmem:[%s9109_s0 + $0xc] sm:$0xf]  ;;  %v5436_v1 = vld [vmem:[%s9109_s0 + $0x10] sm:$0xf]  ;;  %v5441_v2 = vld [vmem:[%s9109_s0 + $0x14] sm:$0x1] }
   0x2   :  { %v242_v3 = vshll.u32 %v5441_v2, 16  ;;  %v4860_v4 = vrot.slane %v5431_v0, 9  ;;  %vm5445_vm2 = vmor %vm711_vm0, %vm712_vm1  ;;  %v723_v6 = vrot.slane %v5436_v1, 5  ;;  %v726_v7 = vrot.slane %v5441_v2, 5  ;;  %v34_v8 = vld [vmem:[%s9109_s0 + $0x18] sm:$0xf] }
   0x3   :  { %v35_v9 = vld [vmem:[%s9109_s0 + $0x1c] sm:$0xf]  ;;  %v4828_v10 = vcombine.low %v5431_v0, %v5436_v1  ;;  %v247_v12 = vshrl.u32 %v34_v8, 16  ;;  %v250_v13 = vshll.u32 %v34_v8, 16  ;;  %v36_v15 = vld [vmem:[%s9109_s0 + $0x20] sm:$0x1] }
   0x4   :  { %v5459_v11 = vcombine.low %v34_v8, %v35_v9  ;;  %v260_v14 = vshrl.u32 %v35_v9, 16  ;;  %v724_v16 = vsel %vm5445_vm2, %v4860_v4, %v723_v6  ;;  %v725_v17 = vrot.slane %v723_v6, 4  ;;  %v28_v19 = vld [vmem:[%s9109_s0] sm:$0xf]  ;;  %v29_v22 = vld [vmem:[%s9109_s0 + $0x4] sm:$0xf] }
   0x5   :  { %v4861_v18 = vrot.slane %v34_v8, 9  ;;  %v730_v20 = vrot.slane %v35_v9, 5  ;;  %v733_v21 = vrot.slane %v36_v15, 5  ;;  %180 = vst.msk [vmem:[#allocation2 + $0x18] sm:$0xff] %vm178_vm3, %v4828_v10  ;;  %v30_v23 = vld [vmem:[%s9109_s0 + $0x8] sm:$0x1] }
   0x6   :  { %1148 = vrot.lane.b32.xlu1 %v5459_v11, %s5379_s15  ;;  %181 = vst.msk [vmem:[#allocation2 + $0x30] sm:$0xff] %vm178_vm3, %v5459_v11  ;;  %v727_v24 = vsel %vm5445_vm2, %v725_v17, %v726_v7  ;;  %vm196_vm5 = vsmask.f32 7440  ;;  %v199_v25 = vshrl.u32 %v28_v19, 16  ;;  %v202_v29 = vshll.u32 %v28_v19, 16  ;;  %s5380_s20 = smov 32  }
   0x7   :  { %v5482_v26 = vcombine.low %v724_v16, %v727_v24  ;;  %v731_v27 = vsel %vm5445_vm2, %v4861_v18, %v730_v20  ;;  %v732_v28 = vrot.slane %v730_v20, 4  ;;  %v208_v31 = vshll.u32 %v29_v22, 16  ;;  %s5381_s21 = smov 96   ;;  %vm5499_vm6 = vmor %vm195_vm4, %vm196_vm5  ;;  %v37_v8 = vld [vmem:[%s9109_s0 + $0x24] sm:$0xf] }
   0x8   :  { %v201_v30 = vrot.slane %v199_v25, 4  ;;  %v212_v32 = vshrl.u32 %v29_v22, 16  ;;  %v218_v33 = vshll.u32 %v30_v23, 16  ;;  %v204_v35 = vrot.slane %v202_v29, 5  ;;  %v40_v29 = vld [vmem:[%s9109_s0 + $0x30] sm:$0xf] }
   0x9   :  { %1079 = vrot.lane.b32.xlu0 %v5482_v26, %s5380_s20  ;;  %v734_v34 = vsel %vm5445_vm2, %v732_v28, %v733_v21  ;;  %v4859_v36 = vrot.slane %v28_v19, 9  ;;  %v716_v37 = vrot.slane %v29_v22, 5  ;;  %v210_v39 = vrot.slane %v208_v31, 5 }
   0xa   :  { %944 = vrot.lane.b32.xlu1 %v4828_v10, %s5381_s21  ;;  %v5491_v38 = vcombine.low %v731_v27, %v734_v34  ;;  %v214_v40 = vrot.slane %v212_v32, 4  ;;  %v220_v41 = vrot.slane %v218_v33, 5  ;;  %v205_v42 = vor.u32 %v204_v35, %v201_v30 }
   0xb   :  { %v717_v43 = vsel %vm5445_vm2, %v4859_v36, %v716_v37  ;;  %v718_v44 = vrot.slane %v716_v37, 4  ;;  %v719_v45 = vrot.slane %v30_v23, 5  ;;  %v249_v48 = vrot.slane %v247_v12, 4 }
   0xc   :  { %1330 = vst.msk [vmem:[#allocation2 + $0x10] sm:$0xff] %vm178_vm3, %v5491_v38  ;;  %v215_v47 = vor.u32 %v214_v40, %v210_v39  ;;  %v252_v49 = vrot.slane %v250_v13, 5  ;;  %v256_v50 = vshll.u32 %v35_v9, 16  ;;  %v206_v51 = vrot.slane %v205_v42, 4 }
   0xd   :  { %1081 = vrot.lane.b32.xlu0 %v5491_v38, %s5380_s20  ;;  %v720_v52 = vsel %vm5445_vm2, %v718_v44, %v719_v45  ;;  %v262_v53 = vrot.slane %v260_v14, 4  ;;  %v266_v54 = vshll.u32 %v36_v15, 16  ;;  %v223_v61 = vshrl.u32 %v5431_v0, 16 }
   0xe   :  { %v216_v55 = vrot.slane %v215_v47, 4  ;;  %v4875_v56 = vcombine.low %v717_v43, %v720_v52  ;;  %v253_v57 = vor.u32 %v252_v49, %v249_v48  ;;  %v258_v58 = vrot.slane %v256_v50, 5  ;;  %v41_v43 = vld [vmem:[%s9109_s0 + $0x34] sm:$0xf]  ;;  %v42_v49 = vld [vmem:[%s9109_s0 + $0x38] sm:$0x1] }
   0xf   :  { %v211_v59 = vsel %vm5499_vm6, %v206_v51, %v210_v39  ;;  %v268_v60 = vrot.slane %v266_v54, 5  ;;  %v226_v62 = vshll.u32 %v5431_v0, 16  ;;  %v232_v7 = vshll.u32 %v5436_v1, 16  ;;  %v38_v0 = vld [vmem:[%s9109_s0 + $0x28] sm:$0xf] }
  0x10   :  { %v221_v63 = vsel %vm5499_vm6, %v216_v55, %v220_v41  ;;  %874 = vrot.lane.b32.xlu1 %v4875_v56, %s5379_s15  ;;  %v254_v4 = vrot.slane %v253_v57, 4  ;;  %v263_v6 = vor.u32 %v262_v53, %v258_v58  ;;  %v225_v10 = vrot.slane %v223_v61, 4  ;;  %v5562_v54 = vld [vmem:[%s9109_s0 + $0x3c] sm:$0xf] }
  0x11   :  { %v4843_v9 = vcombine.low %v211_v59, %v221_v63  ;;  %v228_v12 = vrot.slane %v226_v62, 5  ;;  %v236_v13 = vshrl.u32 %v5436_v1, 16  ;;  %v234_v16 = vrot.slane %v232_v7, 5  ;;  %v39_v1 = vld [vmem:[%s9109_s0 + $0x2c] sm:$0x1] }
  0x12   :  { %v259_v14 = vsel %vm5499_vm6, %v254_v4, %v258_v58  ;;  %v264_v15 = vrot.slane %v263_v6, 4  ;;  %v244_v17 = vrot.slane %v242_v3, 5  ;;  %v5527_v20 = vcombine.low %v37_v8, %v38_v0 }
  0x13   :  { %630 = vrot.lane.b32.xlu0 %v4843_v9, %s5380_s20  ;;  %v229_v18 = vor.u32 %v228_v12, %v225_v10  ;;  %v238_v19 = vrot.slane %v236_v13, 4  ;;  %v271_v21 = vshrl.u32 %v37_v8, 16  ;;  %v274_v23 = vshll.u32 %v37_v8, 16  ;;  %v44_v13 = vld [vmem:[%s9109_s0 + $0x40] sm:$0xf] }
  0x14   :  { %v269_v22 = vsel %vm5499_vm6, %v264_v15, %v268_v60  ;;  %v284_v24 = vshrl.u32 %v38_v0, 16  ;;  %v280_v25 = vshll.u32 %v38_v0, 16  ;;  %182 = vst.msk [vmem:[#allocation2 + $0x48] sm:$0xff] %vm178_vm3, %v5527_v20  ;;  %v290_v33 = vshll.u32 %v39_v1, 16 }
  0x15   :  { %v5534_v27 = vcombine.low %v259_v14, %v269_v22  ;;  %v230_v2 = vrot.slane %v229_v18, 4  ;;  %v239_v3 = vor.u32 %v238_v19, %v234_v16  ;;  %v273_v28 = vrot.slane %v271_v21, 4 }
  0x16   :  { %v276_v30 = vrot.slane %v274_v23, 5  ;;  %v282_v31 = vrot.slane %v280_v25, 5  ;;  %v286_v32 = vrot.slane %v284_v24, 4  ;;  %v4862_v36 = vrot.slane %v37_v8, 9 }
  0x17   :  { %1239 = vrot.lane.b32.xlu0 %v5534_v27, %s5381_s21  ;;  %1053 = vst.msk [vmem:[#allocation2 + $0x20] sm:$0xff] %vm178_vm3, %v5534_v27  ;;  %v235_v34 = vsel %vm5499_vm6, %v230_v2, %v234_v16  ;;  %v240_v35 = vrot.slane %v239_v3, 4  ;;  %v737_v37 = vrot.slane %v38_v0, 5  ;;  %v292_v41 = vrot.slane %v290_v33, 5  ;;  %v46_v33 = vld [vmem:[%s9109_s0 + $0x48] sm:$0xf] }
  0x18   :  { %v277_v39 = vor.u32 %v276_v30, %v273_v28  ;;  %v287_v40 = vor.u32 %v286_v32, %v282_v31  ;;  %v740_v42 = vrot.slane %v39_v1, 5  ;;  %v5554_v48 = vcombine.low %v40_v29, %v41_v43 }
  0x19   :  { %v245_v44 = vsel %vm5499_vm6, %v240_v35, %v244_v17  ;;  %v738_v45 = vsel %vm5445_vm2, %v4862_v36, %v737_v37  ;;  %v739_v47 = vrot.slane %v737_v37, 4  ;;  %v295_v53 = vshrl.u32 %v40_v29, 16  ;;  %v45_v17 = vld [vmem:[%s9109_s0 + $0x44] sm:$0x1] }
  0x1a   :  { %v4844_v50 = vcombine.low %v235_v34, %v245_v44  ;;  %v278_v51 = vrot.slane %v277_v39, 4  ;;  %v288_v52 = vrot.slane %v287_v40, 4  ;;  %v298_v56 = vshll.u32 %v40_v29, 16  ;;  %183 = vst.msk [vmem:[#allocation2 + $0x60] sm:$0xff] %vm178_vm3, %v5554_v48  ;;  %v47_v39 = vld [vmem:[%s9109_s0 + $0x4c] sm:$0xf] }
  0x1b   :  { %1150 = vrot.lane.b32.xlu0 %v5527_v20, %s5379_s15  ;;  %v741_v55 = vsel %vm5445_vm2, %v739_v47, %v740_v42  ;;  %v308_v57 = vshrl.u32 %v41_v43, 16  ;;  %v304_v58 = vshll.u32 %v41_v43, 16  ;;  %v297_v62 = vrot.slane %v295_v53, 4 }
  0x1c   :  { %632 = vrot.lane.b32.xlu1 %v4844_v50, %s5380_s20  ;;  %1052 = vst.msk [vmem:[#allocation2 + $0x8] sm:$0xff] %vm178_vm3, %v4844_v50  ;;  %v283_v59 = vsel %vm5499_vm6, %v278_v51, %v282_v31  ;;  %v293_v60 = vsel %vm5499_vm6, %v288_v52, %v292_v41  ;;  %v5576_v61 = vcombine.low %v738_v45, %v741_v55  ;;  %v300_v4 = vrot.slane %v298_v56, 5 }
  0x1d   :  { %v5578_v63 = vcombine.low %v283_v59, %v293_v60  ;;  %v306_v6 = vrot.slane %v304_v58, 5  ;;  %v310_v7 = vrot.slane %v308_v57, 4  ;;  %v314_v8 = vshll.u32 %v42_v49, 16  ;;  %v5646_v58 = vld [vmem:[%s9109_s0 + $0x54] sm:$0xf] }
  0x1e   :  { %1331 = vst.msk [vmem:[#allocation2 + $0x28] sm:$0xff] %vm178_vm3, %v5576_v61  ;;  %v4863_v9 = vrot.slane %v40_v29, 9  ;;  %v744_v10 = vrot.slane %v41_v43, 5  ;;  %v747_v12 = vrot.slane %v42_v49, 5  ;;  %v301_v0 = vor.u32 %v300_v4, %v297_v62 }
  0x1f   :  { %1241 = vrot.lane.b32.xlu0 %v5578_v63, %s5381_s21  ;;  %1054 = vst.msk [vmem:[#allocation2 + $0x38] sm:$0xff] %vm178_vm3, %v5578_v63  ;;  %v311_v14 = vor.u32 %v310_v7, %v306_v6  ;;  %v5590_v15 = vcombine.low %v5562_v54, %v44_v13  ;;  %v319_v16 = vshrl.u32 %v5562_v54, 16  ;;  %v316_v18 = vrot.slane %v314_v8, 5  ;;  %v5663_v7 = vld [vmem:[%s9109_s0 + $0x154] sm:$0xf] }
  0x20   :  { %876 = vrot.lane.b32.xlu1 %v5482_v26, %s5379_s15  ;;  %v745_v19 = vsel %vm5445_vm2, %v4863_v9, %v744_v10  ;;  %v746_v21 = vrot.slane %v744_v10, 4  ;;  %v322_v1 = vshll.u32 %v5562_v54, 16  ;;  %v302_v22 = vrot.slane %v301_v0, 4 }
  0x21   :  { %v312_v23 = vrot.slane %v311_v14, 4  ;;  %v332_v24 = vshrl.u32 %v44_v13, 16  ;;  %184 = vst.msk [vmem:[#allocation2 + $0x78] sm:$0xff] %vm178_vm3, %v5590_v15  ;;  %v321_v25 = vrot.slane %v319_v16, 4  ;;  %v328_v28 = vshll.u32 %v44_v13, 16 }
  0x22   :  { %v748_v2 = vsel %vm5445_vm2, %v746_v21, %v747_v12  ;;  %v324_v3 = vrot.slane %v322_v1, 5  ;;  %v338_v26 = vshll.u32 %v45_v17, 16  ;;  %v307_v29 = vsel %vm5499_vm6, %v302_v22, %v306_v6  ;;  %v5658_v6 = vld [vmem:[%s9109_s0 + $0x150] sm:$0xf]  ;;  %v5690_v22 = vld [vmem:[%s9109_s0 + $0x5c] sm:$0x1] }
  0x23   :  { %1083 = vrot.lane.b32.xlu0 %v5576_v61, %s5380_s20  ;;  %v317_v30 = vsel %vm5499_vm6, %v312_v23, %v316_v18  ;;  %v5611_v31 = vcombine.low %v745_v19, %v748_v2  ;;  %v334_v32 = vrot.slane %v332_v24, 4  ;;  %v330_v36 = vrot.slane %v328_v28, 5  ;;  %v5700_v2 = vld [vmem:[%s9109_s0 + $0x144] sm:$0xf] }
  0x24   :  { %946 = vrot.lane.b32.xlu1 %v5459_v11, %s5381_s21  ;;  %v5618_v34 = vcombine.low %v307_v29, %v317_v30  ;;  %v325_v35 = vor.u32 %v324_v3, %v321_v25  ;;  %v340_v37 = vrot.slane %v338_v26, 5  ;;  %v4864_v40 = vrot.slane %v5562_v54, 9  ;;  %v48_v11 = vld [vmem:[%s9109_s0 + $0x50] sm:$0x1] }
  0x25   :  { %1332 = vst.msk [vmem:[#allocation2 + $0x40] sm:$0xff] %vm178_vm3, %v5611_v31  ;;  %v751_v41 = vrot.slane %v44_v13, 5  ;;  %v754_v42 = vrot.slane %v45_v17, 5  ;;  %v5626_v43 = vcombine.low %v46_v33, %v47_v39  ;;  %v335_v45 = vor.u32 %v334_v32, %v330_v36  ;;  %v5676_v17 = vld [vmem:[%s9109_s0 + $0x158] sm:$0x1] }
  0x26   :  { %1055 = vst.msk [vmem:[#allocation2 + $0x50] sm:$0xff] %vm178_vm3, %v5618_v34  ;;  %v326_v44 = vrot.slane %v325_v35, 4  ;;  %v343_v47 = vshrl.u32 %v46_v33, 16  ;;  %v346_v49 = vshll.u32 %v46_v33, 16  ;;  %v356_v52 = vshrl.u32 %v47_v39, 16 }
  0x27   :  { %1152 = vrot.lane.b32.xlu0 %v5554_v48, %s5379_s15  ;;  %v752_v50 = vsel %vm5445_vm2, %v4864_v40, %v751_v41  ;;  %v753_v51 = vrot.slane %v751_v41, 4  ;;  %185 = vst.msk [vmem:[#allocation2 + $0x90] sm:$0xff] %vm178_vm3, %v5626_v43  ;;  %v352_v53 = vshll.u32 %v47_v39, 16  ;;  %v336_v55 = vrot.slane %v335_v45, 4 }
  0x28   :  { %634 = vrot.lane.b32.xlu1 %v5534_v27, %s5380_s20  ;;  %v331_v54 = vsel %vm5499_vm6, %v326_v44, %v330_v36  ;;  %v345_v56 = vrot.slane %v343_v47, 4  ;;  %v348_v57 = vrot.slane %v346_v49, 5  ;;  %v358_v62 = vrot.slane %v356_v52, 4  ;;  %v5653_v27 = vld [vmem:[%s9109_s0 + $0x58] sm:$0xf] }
  0x29   :  { %v755_v59 = vsel %vm5445_vm2, %v753_v51, %v754_v42  ;;  %v354_v60 = vrot.slane %v352_v53, 5  ;;  %v362_v4 = vshll.u32 %v48_v11, 16  ;;  %v341_v8 = vsel %vm5499_vm6, %v336_v55, %v340_v37  ;;  %v5719_v36 = vld [vmem:[%s9109_s0 + $0x148] sm:$0xf]  ;;  %v5732_v42 = vld [vmem:[%s9109_s0 + $0x14c] sm:$0x1] }
  0x2a   :  { %v5667_v9 = vcombine.low %v752_v50, %v755_v59  ;;  %v349_v10 = vor.u32 %v348_v57, %v345_v56  ;;  %v4865_v12 = vrot.slane %v46_v33, 9  ;;  %v5671_v13 = vcombine.low %v331_v54, %v341_v8  ;;  %v5750_v52 = vld [vmem:[%s9109_s0 + $0x15c] sm:$0xf]  ;;  %v5258_v53 = vld [vmem:[%s9110_s1 + $0x8] sm:$0xff]  }
  0x2b   :  { %1243 = vrot.lane.b32.xlu0 %v5618_v34, %s5381_s21  ;;  %v359_v0 = vor.u32 %v358_v62, %v354_v60  ;;  %v364_v14 = vrot.slane %v362_v4, 5  ;;  %v758_v16 = vrot.slane %v47_v39, 5  ;;  %v761_v19 = vrot.slane %v48_v11, 5  ;;  %v5256_v11 = vld [vmem:[%s9110_s1] sm:$0xff]  }
  0x2c   :  { %878 = vrot.lane.b32.xlu1 %v5491_v38, %s5379_s15  ;;  %1333 = vst.msk [vmem:[#allocation2 + $0x58] sm:$0xff] %vm178_vm3, %v5667_v9  ;;  %v350_v18 = vrot.slane %v349_v10, 4  ;;  %v5684_v21 = vcombine.low %v5646_v58, %v5653_v27  ;;  %v367_v1 = vshrl.u32 %v5646_v58, 16  ;;  %1056 = vst.msk [vmem:[#allocation2 + $0x68] sm:$0xff] %vm178_vm3, %v5671_v13  ;;  %v370_v25 = vshll.u32 %v5646_v58, 16 }
  0x2d   :  { %v360_v38 = vrot.slane %v359_v0, 4  ;;  %v759_v23 = vsel %vm5445_vm2, %v4865_v12, %v758_v16  ;;  %v760_v24 = vrot.slane %v758_v16, 4  ;;  %v380_v28 = vshrl.u32 %v5653_v27, 16 }
  0x2e   :  { %v355_v3 = vsel %vm5499_vm6, %v350_v18, %v354_v60  ;;  %186 = vst.msk [vmem:[#allocation2 + $0xa8] sm:$0xff] %vm178_vm3, %v5684_v21  ;;  %v4995_v26 = vrot.slane %v5658_v6, 9  ;;  %v2097_v29 = vrot.slane %v5663_v7, 5  ;;  %v2100_v33 = vrot.slane %v5676_v17, 5  ;;  %v5763_v60 = vld [vmem:[%s9109_s0 + $0x160] sm:$0xf] }
  0x2f   :  { %1085 = vrot.lane.b32.xlu0 %v5611_v31, %s5380_s20  ;;  %v365_v30 = vsel %vm5499_vm6, %v360_v38, %v364_v14  ;;  %v762_v32 = vsel %vm5445_vm2, %v760_v24, %v761_v19  ;;  %v369_v35 = vrot.slane %v367_v1, 4  ;;  %v372_v44 = vrot.slane %v370_v25, 5 }
  0x30   :  { %948 = vrot.lane.b32.xlu1 %v5527_v20, %s5381_s21  ;;  %v5723_v37 = vcombine.low %v355_v3, %v365_v30  ;;  %v5725_v39 = vcombine.low %v759_v23, %v762_v32  ;;  %v2098_v40 = vsel %vm5445_vm2, %v4995_v26, %v2097_v29  ;;  %v2099_v41 = vrot.slane %v2097_v29, 4  ;;  %v5259_v30 = vld [vmem:[%s9110_s1 + $0x10] sm:$0xff]  }
  0x31   :  { %v376_v20 = vshll.u32 %v5653_v27, 16  ;;  %v382_v45 = vrot.slane %v380_v28, 4  ;;  %v386_v47 = vshll.u32 %v5690_v22, 16  ;;  %v1730_v50 = vshrl.u32 %v5700_v2, 16 }
  0x32   :  { %1057 = vst.msk [vmem:[#allocation2 + $0x80] sm:$0xff] %vm178_vm3, %v5723_v37  ;;  %1334 = vst.msk [vmem:[#allocation2 + $0x70] sm:$0xff] %vm178_vm3, %v5725_v39  ;;  %v2101_v49 = vsel %vm5445_vm2, %v2099_v41, %v2100_v33  ;;  %v1733_v51 = vshll.u32 %v5700_v2, 16  ;;  %v373_v55 = vor.u32 %v372_v44, %v369_v35  ;;  %v5382_v59 = vmov 0  }
  0x33   :  { %1154 = vrot.lane.b32.xlu0 %v5590_v15, %s5379_s15  ;;  %v5757_v54 = vcombine.low %v2098_v40, %v2101_v49  ;;  %v378_v56 = vrot.slane %v376_v20, 5  ;;  %v388_v57 = vrot.slane %v386_v47, 5  ;;  %2998 = vmatprep.subr.bf16.mxu0 %v5382_v59  ;;  %v1732_v62 = vrot.slane %v1730_v50, 4 }
  0x34   :  { %636 = vrot.lane.b32.xlu1 %v5578_v63, %s5380_s20  ;;  %v1735_v4 = vrot.slane %v1733_v51, 5  ;;  %v1739_v8 = vshll.u32 %v5719_v36, 16  ;;  %v1743_v10 = vshrl.u32 %v5719_v36, 16  ;;  %2999 = vmatpush1.bf16.msra.mxu0 %v5256_v11  ;;  %v374_v12 = vrot.slane %v373_v55, 4  ;;  %v5260_v55 = vld [vmem:[%s9110_s1 + $0x18] sm:$0xff]  }
  0x35   :  { %2647 = vst.msk [vmem:[#allocation2 + $0x250] sm:$0xff] %vm178_vm3, %v5757_v54  ;;  %v383_v0 = vor.u32 %v382_v45, %v378_v56  ;;  %v1749_v14 = vshll.u32 %v5732_v42, 16  ;;  %v5774_v16 = vcombine.low %v5750_v52, %v5763_v60  ;;  %3000 = vmatprep.subr.bf16.mxu0 %v5382_v59  ;;  %5209 = vmatprep.subr.bf16.mxu1 %v5382_v59  ;;  %v1778_v1 = vshrl.u32 %v5750_v52, 16 }
  0x36   :  { %v1736_v63 = vor.u32 %v1735_v4, %v1732_v62  ;;  %v1741_v18 = vrot.slane %v1739_v8, 5  ;;  %v1745_v19 = vrot.slane %v1743_v10, 4  ;;  %5225 = vmatpush1.bf16.msra.mxu1 %v5256_v11  ;;  %v379_v38 = vsel %vm5499_vm6, %v374_v12, %v378_v56 }
  0x37   :  { %1245 = vrot.lane.b32.xlu0 %v5671_v13, %s5381_s21  ;;  %v384_v23 = vrot.slane %v383_v0, 4  ;;  %v1751_v24 = vrot.slane %v1749_v14, 5  ;;  %v1781_v25 = vshll.u32 %v5750_v52, 16  ;;  %1508 = vst.msk [vmem:[#allocation2 + $0x288] sm:$0xff] %vm178_vm3, %v5774_v16  ;;  %5210 = vmatprep.subr.bf16.mxu1 %v5382_v59  ;;  %v1791_v26 = vshrl.u32 %v5763_v60, 16 }
  0x38   :  { %880 = vrot.lane.b32.xlu1 %v5576_v61, %s5379_s15  ;;  %v1737_v3 = vrot.slane %v1736_v63, 4  ;;  %v1746_v28 = vor.u32 %v1745_v19, %v1741_v18  ;;  %3001 = vmatpush1.bf16.msra.mxu0 %v5258_v53  ;;  %v4994_v29 = vrot.slane %v5700_v2, 9  ;;  %v2090_v33 = vrot.slane %v5719_v36, 5  ;;  %v5802_v61 = vld [vmem:[%s9109_s0 + $0x164] sm:$0x1] }
  0x39   :  { %v389_v32 = vsel %vm5499_vm6, %v384_v23, %v388_v57  ;;  %v2093_v35 = vrot.slane %v5732_v42, 5  ;;  %3002 = vmatprep.subr.bf16.mxu0 %v5382_v59  ;;  %v1780_v40 = vrot.slane %v1778_v1, 4  ;;  %v1783_v44 = vrot.slane %v1781_v25, 5  ;;  %v5847_v14 = vld [vmem:[%s9109_s0 + $0x64] sm:$0xf] }
  0x3a   :  { %v5804_v2 = vcombine.low %v379_v38, %v389_v32  ;;  %v1742_v41 = vsel %vm5499_vm6, %v1737_v3, %v1741_v18  ;;  %v1747_v11 = vrot.slane %v1746_v28, 4  ;;  %5226 = vmatpush1.bf16.msra.mxu1 %v5258_v53  ;;  %v2091_v42 = vsel %vm5445_vm2, %v4994_v29, %v2090_v33  ;;  %v5262_v23 = vld [vmem:[%s9110_s1 + $0x20] sm:$0xff]   ;;  %v5881_v28 = vld [vmem:[%s9109_s0 + $0x68] sm:$0x1] }
  0x3b   :  { %1087 = vrot.lane.b32.xlu0 %v5667_v9, %s5380_s20  ;;  %v2092_v20 = vrot.slane %v2090_v33, 4  ;;  %v1787_v45 = vshll.u32 %v5763_v60, 16  ;;  %v1793_v47 = vrot.slane %v1791_v26, 4  ;;  %5211 = vmatprep.subr.bf16.mxu1 %v5382_v59  ;;  %v1784_v50 = vor.u32 %v1783_v44, %v1780_v40  ;;  %v5263_v40 = vld [vmem:[%s9110_s1 + $0x28] sm:$0xff]  }
  0x3c   :  { %950 = vrot.lane.b32.xlu1 %v5554_v48, %s5381_s21  ;;  %1058 = vst.msk [vmem:[#allocation2 + $0x98] sm:$0xff] %vm178_vm3, %v5804_v2  ;;  %v1752_v49 = vsel %vm5499_vm6, %v1747_v11, %v1751_v24  ;;  %v1797_v51 = vshll.u32 %v5802_v61, 16  ;;  %3003 = vmatpush1.bf16.msra.mxu0 %v5259_v30  ;;  %v5823_v53 = vcombine.low %v5658_v6, %v5663_v7  ;;  %v5831_v48 = vld [vmem:[%s9109_s0 + $0x60] sm:$0xf]  ;;  %v4866_v4 = vrot.slane %v5646_v58, 9 }
  0x3d   :  { %v5833_v56 = vcombine.low %v1742_v41, %v1752_v49  ;;  %v2094_v57 = vsel %vm5445_vm2, %v2092_v20, %v2093_v35  ;;  %v1789_v62 = vrot.slane %v1787_v45, 5  ;;  %3004 = vmatprep.subr.bf16.mxu0 %v5382_v59  ;;  %v1785_v10 = vrot.slane %v1784_v50, 4  ;;  %v5919_v49 = vld [vmem:[%s9109_s0 + $0x16c] sm:$0xf] }
  0x3e   :  { %9210 = vst [vmem:[#allocation7_spill] sm:$0xff] %v5823_v53  ;;  %v5839_v8 = vcombine.low %v2091_v42, %v2094_v57  ;;  %v1799_v12 = vrot.slane %v1797_v51, 5  ;;  %1507 = vst.msk [vmem:[#allocation2 + $0x270] sm:$0xff] %vm178_vm3, %v5823_v53  ;;  %v765_v0 = vrot.slane %v5653_v27, 5  ;;  %5227 = vmatpush1.bf16.msra.mxu1 %v5259_v30  ;;  %v768_v63 = vrot.slane %v5690_v22, 5 }
  0x3f   :  { %9211 = vst [vmem:[#allocation8_spill] sm:$0xff] %v5833_v56  ;;  %1156 = vrot.lane.b32.xlu0 %v5626_v43, %s5379_s15  ;;  %2369 = vst.msk [vmem:[#allocation2 + $0x248] sm:$0xff] %vm178_vm3, %v5833_v56  ;;  %v1794_v58 = vor.u32 %v1793_v47, %v1789_v62  ;;  %v5856_v18 = vcombine.low %v5831_v48, %v5847_v14  ;;  %v391_v27 = vshrl.u32 %v5831_v48, 16  ;;  %5212 = vmatprep.subr.bf16.mxu1 %v5382_v59  ;;  %v5906_v42 = vld [vmem:[%s9109_s0 + $0x168] sm:$0xf] }
  0x40   :  { %9212 = vst [vmem:[#allocation9_spill] sm:$0xff] %v5839_v8  ;;  %638 = vrot.lane.b32.xlu1 %v5618_v34, %s5380_s20  ;;  %2646 = vst.msk [vmem:[#allocation2 + $0x238] sm:$0xff] %vm178_vm3, %v5839_v8  ;;  %v1790_v19 = vsel %vm5499_vm6, %v1785_v10, %v1789_v62  ;;  %v766_v22 = vsel %vm5445_vm2, %v4866_v4, %v765_v0  ;;  %v767_v1 = vrot.slane %v765_v0, 4  ;;  %3005 = vmatpush1.bf16.msra.mxu0 %v5260_v55  ;;  %v5264_v62 = vld [vmem:[%s9110_s1 + $0x30] sm:$0xff]  }
  0x41   :  { %v394_v38 = vshll.u32 %v5831_v48, 16  ;;  %v1795_v24 = vrot.slane %v1794_v58, 4  ;;  %3006 = vmatprep.subr.bf16.mxu0 %v5382_v59  ;;  %v404_v34 = vshrl.u32 %v5847_v14, 16  ;;  %187 = vst.msk [vmem:[#allocation2 + $0xc0] sm:$0xff] %vm178_vm3, %v5856_v18  ;;  %v4996_v25 = vrot.slane %v5750_v52, 9 }
  0x42   :  { %v2104_v3 = vrot.slane %v5763_v60, 5  ;;  %v769_v26 = vsel %vm5445_vm2, %v767_v1, %v768_v63  ;;  %v2107_v29 = vrot.slane %v5802_v61, 5  ;;  %v393_v30 = vrot.slane %v391_v27, 4  ;;  %5228 = vmatpush1.bf16.msra.mxu1 %v5260_v55  ;;  %v5935_v0 = vld [vmem:[%s9109_s0 + $0x170] sm:$0x1] }
  0x43   :  { %v396_v32 = vrot.slane %v394_v38, 5  ;;  %1247 = vrot.lane.b32.xlu0 %v5723_v37, %s5381_s21  ;;  %v1800_v52 = vsel %vm5499_vm6, %v1795_v24, %v1799_v12  ;;  %v5890_v60 = vcombine.low %v766_v22, %v769_v26  ;;  %5213 = vmatprep.subr.bf16.mxu1 %v5382_v59  ;;  %v400_v11 = vshll.u32 %v5847_v14, 16 }
  0x44   :  { %v2105_v33 = vsel %vm5445_vm2, %v4996_v25, %v2104_v3  ;;  %v2106_v35 = vrot.slane %v2104_v3, 4  ;;  %882 = vrot.lane.b32.xlu1 %v5611_v31, %s5379_s15  ;;  %v5900_v61 = vcombine.low %v1790_v19, %v1800_v52  ;;  %3007 = vmatpush1.bf16.msra.mxu0 %v5262_v23  ;;  %v406_v44 = vrot.slane %v404_v34, 4 }
  0x45   :  { %v397_v41 = vor.u32 %v396_v32, %v393_v30  ;;  %1335 = vst.msk [vmem:[#allocation2 + $0x88] sm:$0xff] %vm178_vm3, %v5890_v60  ;;  %3008 = vmatprep.subr.bf16.mxu0 %v5382_v59  ;;  %v410_v31 = vshll.u32 %v5881_v28, 16  ;;  %v1754_v45 = vshrl.u32 %v5658_v6, 16  ;;  %v1757_v47 = vshll.u32 %v5658_v6, 16  ;;  %v5266_v30 = vld [vmem:[%s9110_s1 + $0x38] sm:$0xff]  }
  0x46   :  { %v2108_v20 = vsel %vm5445_vm2, %v2106_v35, %v2107_v29  ;;  %2371 = vst.msk [vmem:[#allocation2 + $0x278] sm:$0xff] %vm178_vm3, %v5900_v61  ;;  %v402_v55 = vrot.slane %v400_v11, 5  ;;  %v1763_v57 = vshll.u32 %v5663_v7, 16  ;;  %5229 = vmatpush1.bf16.msra.mxu1 %v5262_v23  ;;  %v1767_v12 = vshrl.u32 %v5663_v7, 16  ;;  %v5975_v11 = vld [vmem:[%s9109_s0 + $0x6c] sm:$0xf] }
  0x47   :  { %v5923_v50 = vcombine.low %v2105_v33, %v2108_v20  ;;  %v398_v51 = vrot.slane %v397_v41, 4  ;;  %1089 = vrot.lane.b32.xlu0 %v5725_v39, %s5380_s20  ;;  %v412_v6 = vrot.slane %v410_v31, 5  ;;  %v1756_v4 = vrot.slane %v1754_v45, 4  ;;  %5214 = vmatprep.subr.bf16.mxu1 %v5382_v59 }
  0x48   :  { %v1759_v10 = vrot.slane %v1757_v47, 5  ;;  %952 = vrot.lane.b32.xlu1 %v5590_v15, %s5381_s21  ;;  %3009 = vmatpush1.bf16.msra.mxu0 %v5263_v40  ;;  %v407_v63 = vor.u32 %v406_v44, %v402_v55  ;;  %v1765_v27 = vrot.slane %v1763_v57, 5  ;;  %v1773_v7 = vshll.u32 %v5676_v17, 16 }
  0x49   :  { %2648 = vst.msk [vmem:[#allocation2 + $0x268] sm:$0xff] %vm178_vm3, %v5923_v50  ;;  %v403_v58 = vsel %vm5499_vm6, %v398_v51, %v402_v55  ;;  %3010 = vmatprep.subr.bf16.mxu0 %v5382_v59  ;;  %v1769_v22 = vrot.slane %v1767_v12, 4  ;;  %v5948_v1 = vcombine.low %v5906_v42, %v5919_v49  ;;  %v1802_v15 = vshrl.u32 %v5906_v42, 16 }
  0x4a   :  { %v1760_v19 = vor.u32 %v1759_v10, %v1756_v4  ;;  %v408_v38 = vrot.slane %v407_v63, 4  ;;  %v1775_v23 = vrot.slane %v1773_v7, 5  ;;  %v1805_v24 = vshll.u32 %v5906_v42, 16  ;;  %5230 = vmatpush1.bf16.msra.mxu1 %v5263_v40 }
  0x4b   :  { %v1815_v34 = vshrl.u32 %v5919_v49, 16  ;;  %1158 = vrot.lane.b32.xlu0 %v5684_v21, %s5379_s15  ;;  %v1770_v25 = vor.u32 %v1769_v22, %v1765_v27  ;;  %1509 = vst.msk [vmem:[#allocation2 + $0x2a0] sm:$0xff] %vm178_vm3, %v5948_v1  ;;  %v1804_v3 = vrot.slane %v1802_v15, 4  ;;  %v1811_v26 = vshll.u32 %v5919_v49, 16  ;;  %5215 = vmatprep.subr.bf16.mxu1 %v5382_v59 }
  0x4c   :  { %v1761_v17 = vrot.slane %v1760_v19, 4  ;;  %640 = vrot.lane.b32.xlu1 %v5671_v13, %s5380_s20  ;;  %v413_v29 = vsel %vm5499_vm6, %v408_v38, %v412_v6  ;;  %3011 = vmatpush1.bf16.msra.mxu0 %v5264_v62  ;;  %v1807_v32 = vrot.slane %v1805_v24, 5  ;;  %v1821_v33 = vshll.u32 %v5935_v0, 16 }
  0x4d   :  { %v1817_v52 = vrot.slane %v1815_v34, 4  ;;  %v5967_v35 = vcombine.low %v403_v58, %v413_v29  ;;  %v1771_v41 = vrot.slane %v1770_v25, 4  ;;  %3012 = vmatprep.subr.bf16.mxu0 %v5382_v59  ;;  %v1813_v13 = vrot.slane %v1811_v26, 5 }
  0x4e   :  { %v1766_v40 = vsel %vm5499_vm6, %v1761_v17, %v1765_v27 }
  0x4f   :  { %12 = vsyncpa [#allocation5], 0  ;;  %v1808_v44 = vor.u32 %v1807_v32, %v1804_v3  ;;  %v1823_v20 = vrot.slane %v1821_v33, 5  ;;  %v4867_v31 = vrot.slane %v5831_v48, 9  ;;  %v772_v45 = vrot.slane %v5847_v14, 5  ;;  %5231 = vmatpush1.bf16.msra.mxu1 %v5264_v62  ;;  %884 = vrot.lane.b32.xlu0 %v5667_v9, %s5379_s15  ;;  %1059 = vst.msk [vmem:[#allocation2 + $0xb0] sm:$0xff] %vm178_vm3, %v5967_v35 }
  0x50   :  { %v5982_v47 = vld [vmem:[%s9109_s0 + $0x70] sm:$0xf]  ;;  %v1776_v51 = vsel %vm5499_vm6, %v1771_v41, %v1775_v23  ;;  %v1818_v55 = vor.u32 %v1817_v52, %v1813_v13  ;;  %v775_v48 = vrot.slane %v5881_v28, 5  ;;  %5216 = vmatprep.subr.bf16.mxu1 %v5382_v59  ;;  %2406 = vrot.lane.b32.xlu1 %v5757_v54, %s5380_s20  ;;  %v5267_v62 = vld [vmem:[%s9110_s1 + $0x40] sm:$0xff]   ;;  %v415_v10 = vshrl.u32 %v5975_v11, 16 }
  0x51   :  { %v5993_v14 = vcombine.low %v5975_v11, %v5982_v47  ;;  %v5998_v57 = vcombine.low %v1766_v40, %v1776_v51  ;;  %3013 = vmatpush1.bf16.msra.mxu0 %v5266_v30  ;;  %v1809_v9 = vrot.slane %v1808_v44, 4  ;;  %v773_v28 = vsel %vm5445_vm2, %v4867_v31, %v772_v45  ;;  %v6029_v23 = vld [vmem:[%s9109_s0 + $0x74] sm:$0x1]  ;;  %v6053_v29 = vld [vmem:[%s9109_s0 + $0x178] sm:$0xf] }
  0x52   :  { %v774_v6 = vrot.slane %v772_v45, 4  ;;  %3014 = vmatprep.subr.bf16.mxu0 %v5382_v59  ;;  %v1819_v4 = vrot.slane %v1818_v55, 4  ;;  %v418_v12 = vshll.u32 %v5975_v11, 16  ;;  %v428_v58 = vshrl.u32 %v5982_v47, 16  ;;  %v5306_v51 = vld [vmem:[%s9109_s0] sm:$0xf] }
  0x53   :  { %9213 = vst [vmem:[#allocation10_spill] sm:$0xff] %v5998_v57  ;;  %188 = vst.msk [vmem:[#allocation2 + $0xd8] sm:$0xff] %vm178_vm3, %v5993_v14  ;;  %v1814_v63 = vsel %vm5499_vm6, %v1809_v9, %v1813_v13  ;;  %v4997_v7 = vrot.slane %v5906_v42, 9  ;;  %v2111_v19 = vrot.slane %v5919_v49, 5  ;;  %5232 = vmatpush1.bf16.msra.mxu1 %v5266_v30  ;;  %1963 = vrot.lane.b32.xlu0 %v5833_v56, %s5380_s20  ;;  %v2114_v38 = vrot.slane %v5935_v0, 5  ;;  %v5268_v0 = vld [vmem:[%s9110_s1 + $0x48] sm:$0xff]  }
  0x54   :  { %2370 = vst.msk [vmem:[#allocation2 + $0x260] sm:$0xff] %vm178_vm3, %v5998_v57  ;;  %v776_v27 = vsel %vm5445_vm2, %v774_v6, %v775_v48  ;;  %v1824_v22 = vsel %vm5499_vm6, %v1819_v4, %v1823_v20  ;;  %v6034_v42 = vld [vmem:[%s9109_s0 + $0x174] sm:$0xf]  ;;  %5217 = vmatprep.subr.bf16.mxu1 %v5382_v59  ;;  %1249 = vrot.lane.b32.xlu1 %v5804_v2, %s5381_s21  ;;  %v417_v17 = vrot.slane %v415_v10, 4  ;;  %v420_v25 = vrot.slane %v418_v12, 5 }
  0x55   :  { %v6023_v15 = vcombine.low %v773_v28, %v776_v27  ;;  %v6039_v49 = vcombine.low %v1814_v63, %v1824_v22  ;;  %3015 = vmatpush1.bf16.msra.mxu0 %v5267_v62  ;;  %v2112_v24 = vsel %vm5445_vm2, %v4997_v7, %v2111_v19  ;;  %v2113_v34 = vrot.slane %v2111_v19, 4  ;;  %v6073_v20 = vld [vmem:[%s9109_s0 + $0x17c] sm:$0x1]  ;;  %v5307_v55 = vld [vmem:[%s9109_s0 + $0x4] sm:$0xf] }
  0x56   :  { %3016 = vmatprep.subr.bf16.mxu0 %v5382_v59  ;;  %v424_v3 = vshll.u32 %v5982_v47, 16  ;;  %v430_v26 = vrot.slane %v428_v58, 4  ;;  %v434_v32 = vshll.u32 %v6029_v23, 16  ;;  %v6062_v52 = vcombine.low %v6034_v42, %v6053_v29  ;;  %v6105_v22 = vld [vmem:[%s9109_s0 + $0x78] sm:$0xf] }
  0x57   :  { %1336 = vst.msk [vmem:[#allocation2 + $0xa0] sm:$0xff] %vm178_vm3, %v6023_v15  ;;  %2372 = vst.msk [vmem:[#allocation2 + $0x290] sm:$0xff] %vm178_vm3, %v6039_v49  ;;  %v2115_v30 = vsel %vm5445_vm2, %v2113_v34, %v2114_v38  ;;  %v1826_v33 = vshrl.u32 %v6034_v42, 16  ;;  %5233 = vmatpush1.bf16.msra.mxu1 %v5267_v62  ;;  %954 = vrot.lane.b32.xlu0 %v5626_v43, %s5381_s21  ;;  %v421_v41 = vor.u32 %v420_v25, %v417_v17  ;;  %v5270_v43 = vld [vmem:[%s9110_s1 + $0x50] sm:$0xff]   ;;  %vm678_vm7 = vcmask 523520  }
  0x58   :  { %v6067_v40 = vcombine.low %v2112_v24, %v2115_v30  ;;  %v426_v13 = vrot.slane %v424_v3, 5  ;;  %v1829_v44 = vshll.u32 %v6034_v42, 16  ;;  %5218 = vmatprep.subr.bf16.mxu1 %v5382_v59  ;;  %2475 = vrot.lane.b32.xlu1 %v5774_v16, %s5379_s15  ;;  %v436_v31 = vrot.slane %v434_v32, 5  ;;  %1510 = vst.msk [vmem:[#allocation2 + $0x2b8] sm:$0xff] %vm178_vm3, %v6062_v52 }
  0x59   :  { %3017 = vmatpush1.bf16.msra.mxu0 %v5268_v0  ;;  %v1839_v45 = vshrl.u32 %v6053_v29, 16  ;;  %v4827_v48 = vcombine.low %v5306_v51, %v5307_v55  ;;  %v422_v9 = vrot.slane %v421_v41, 4  ;;  %v1828_v28 = vrot.slane %v1826_v33, 4 }
  0x5a   :  { %3018 = vmatprep.subr.bf16.mxu0 %v5382_v59  ;;  %2649 = vst.msk [vmem:[#allocation2 + $0x280] sm:$0xff] %vm178_vm3, %v6067_v40  ;;  %v431_v62 = vor.u32 %v430_v26, %v426_v13  ;;  %v1831_v6 = vrot.slane %v1829_v44, 5  ;;  %v1835_v4 = vshll.u32 %v6053_v29, 16  ;;  %v1845_v12 = vshll.u32 %v6073_v20, 16 }
  0x5b   :  { %179 = vst.msk [vmem:[#allocation2] sm:$0xff] %vm178_vm3, %v4827_v48  ;;  %v1841_v10 = vrot.slane %v1839_v45, 4  ;;  %v4868_v58 = vrot.slane %v5975_v11, 9  ;;  %5234 = vmatpush1.bf16.msra.mxu1 %v5268_v0  ;;  %2566 = vrot.lane.b32.xlu0 %v5900_v61, %s5381_s21  ;;  %v427_v63 = vsel %vm5499_vm6, %v422_v9, %v426_v13  ;;  %v779_v19 = vrot.slane %v5982_v47, 5  ;;  %v6110_v11 = vld [vmem:[%s9109_s0 + $0x7c] sm:$0xf] }
  0x5c   :  { %v432_v27 = vrot.slane %v431_v62, 4  ;;  %v1832_v7 = vor.u32 %v1831_v6, %v1828_v28  ;;  %5219 = vmatprep.subr.bf16.mxu1 %v5382_v59  ;;  %2203 = vrot.lane.b32.xlu1 %v5839_v8, %s5379_s15  ;;  %v5271_v47 = vld [vmem:[%s9110_s1 + $0x58] sm:$0xff]   ;;  %v1837_v38 = vrot.slane %v1835_v4, 5  ;;  %v1847_v0 = vrot.slane %v1845_v12, 5  ;;  %v6145_v45 = vld [vmem:[%s9109_s0 + $0x80] sm:$0x1] }
  0x5d   :  { %3019 = vmatpush1.bf16.msra.mxu0 %v5270_v43  ;;  %v782_v24 = vrot.slane %v6029_v23, 5  ;;  %v6121_v34 = vcombine.low %v6105_v22, %v6110_v11  ;;  %v780_v3 = vsel %vm5445_vm2, %v4868_v58, %v779_v19  ;;  %v781_v26 = vrot.slane %v779_v19, 4  ;;  %v6164_v4 = vld [vmem:[%s9109_s0 + $0x180] sm:$0xf]  ;;  %v6176_v58 = vld [vmem:[%s9109_s0 + $0x184] sm:$0xf] }
  0x5e   :  { %3020 = vmatprep.subr.bf16.mxu0 %v5382_v59  ;;  %v437_v17 = vsel %vm5499_vm6, %v432_v27, %v436_v31  ;;  %v1833_v25 = vrot.slane %v1832_v7, 4  ;;  %v1842_v32 = vor.u32 %v1841_v10, %v1837_v38  ;;  %v439_v33 = vshrl.u32 %v6105_v22, 16 }
  0x5f   :  { %v6128_v30 = vcombine.low %v427_v63, %v437_v17  ;;  %v442_v23 = vshll.u32 %v6105_v22, 16  ;;  %189 = vst.msk [vmem:[#allocation2 + $0xf0] sm:$0xff] %vm178_vm3, %v6121_v34  ;;  %5235 = vmatpush1.bf16.msra.mxu1 %v5270_v43  ;;  %1091 = vrot.lane.b32.xlu0 %v5890_v60, %s5380_s20  ;;  %v783_v13 = vsel %vm5445_vm2, %v781_v26, %v782_v24  ;;  %v452_v44 = vshrl.u32 %v6110_v11, 16  ;;  %v5272_v43 = vld [vmem:[%s9110_s1 + $0x60] sm:$0xff]  }
  0x60   :  { %v1838_v41 = vsel %vm5499_vm6, %v1833_v25, %v1837_v38  ;;  %v4998_v31 = vrot.slane %v6034_v42, 9  ;;  %5220 = vmatprep.subr.bf16.mxu1 %v5382_v59  ;;  %2272 = vrot.lane.b32.xlu1 %v5823_v53, %s5381_s21  ;;  %v1843_v51 = vrot.slane %v1842_v32, 4  ;;  %v6155_v42 = vcombine.low %v780_v3, %v783_v13  ;;  %v6189_v38 = vld [vmem:[%s9109_s0 + $0x188] sm:$0x1] }
  0x61   :  { %3021 = vmatpush1.bf16.msra.mxu0 %v5271_v47  ;;  %1060 = vst.msk [vmem:[#allocation2 + $0xc8] sm:$0xff] %vm178_vm3, %v6128_v30  ;;  %v2118_v55 = vrot.slane %v6053_v29, 5  ;;  %v2121_v48 = vrot.slane %v6073_v20, 5  ;;  %v441_v9 = vrot.slane %v439_v33, 4  ;;  %v444_v62 = vrot.slane %v442_v23, 5 }
  0x62   :  { %3022 = vmatprep.subr.bf16.mxu0 %v5382_v59  ;;  %v448_v28 = vshll.u32 %v6110_v11, 16  ;;  %v454_v6 = vrot.slane %v452_v44, 4  ;;  %v1848_v10 = vsel %vm5499_vm6, %v1843_v51, %v1847_v0  ;;  %1337 = vst.msk [vmem:[#allocation2 + $0xb8] sm:$0xff] %vm178_vm3, %v6155_v42  ;;  %v458_v12 = vshll.u32 %v6145_v45, 16  ;;  %v6214_v44 = vld [vmem:[%s9109_s0 + $0x84] sm:$0xf] }
  0x63   :  { %v2119_v29 = vsel %vm5445_vm2, %v4998_v31, %v2118_v55  ;;  %v2120_v20 = vrot.slane %v2118_v55, 4  ;;  %5236 = vmatpush1.bf16.msra.mxu1 %v5271_v47  ;;  %1160 = vrot.lane.b32.xlu0 %v5856_v18, %s5379_s15  ;;  %v6180_v63 = vcombine.low %v1838_v41, %v1848_v10  ;;  %v445_v27 = vor.u32 %v444_v62, %v441_v9  ;;  %v5274_v47 = vld [vmem:[%s9110_s1 + $0x68] sm:$0xff]  }
  0x64   :  { %v450_v7 = vrot.slane %v448_v28, 5  ;;  %v6184_v19 = vcombine.low %v6164_v4, %v6176_v58  ;;  %5221 = vmatprep.subr.bf16.mxu1 %v5382_v59  ;;  %642 = vrot.lane.b32.xlu1 %v5723_v37, %s5380_s20  ;;  %v460_v24 = vrot.slane %v458_v12, 5  ;;  %v1850_v17 = vshrl.u32 %v6164_v4, 16 }
  0x65   :  { %3023 = vmatpush1.bf16.msra.mxu0 %v5272_v43  ;;  %v2122_v0 = vsel %vm5445_vm2, %v2120_v20, %v2121_v48  ;;  %v1853_v25 = vshll.u32 %v6164_v4, 16  ;;  %2373 = vst.msk [vmem:[#allocation2 + $0x2a8] sm:$0xff] %vm178_vm3, %v6180_v63  ;;  %v446_v37 = vrot.slane %v445_v27, 4  ;;  %v1863_v32 = vshrl.u32 %v6176_v58, 16 }
  0x66   :  { %3024 = vmatprep.subr.bf16.mxu0 %v5382_v59  ;;  %v6204_v3 = vcombine.low %v2119_v29, %v2122_v0  ;;  %v455_v26 = vor.u32 %v454_v6, %v450_v7  ;;  %1511 = vst.msk [vmem:[#allocation2 + $0x2d0] sm:$0xff] %vm178_vm3, %v6184_v19  ;;  %v1852_v33 = vrot.slane %v1850_v17, 4  ;;  %v1859_v41 = vshll.u32 %v6176_v58, 16  ;;  %v6233_v6 = vld [vmem:[%s9109_s0 + $0x88] sm:$0xf] }
  0x67   :  { %v1855_v23 = vrot.slane %v1853_v25, 5  ;;  %v1869_v13 = vshll.u32 %v6189_v38, 16  ;;  %5237 = vmatpush1.bf16.msra.mxu1 %v5272_v43  ;;  %886 = vrot.lane.b32.xlu0 %v5725_v39, %s5379_s15  ;;  %v451_v31 = vsel %vm5499_vm6, %v446_v37, %v450_v7  ;;  %v1865_v55 = vrot.slane %v1863_v32, 4  ;;  %v5275_v39 = vld [vmem:[%s9110_s1 + $0x70] sm:$0xff]   ;;  %v6270_v32 = vld [vmem:[%s9109_s0 + $0x8c] sm:$0x1] }
  0x68   :  { %2650 = vst.msk [vmem:[#allocation2 + $0x298] sm:$0xff] %vm178_vm3, %v6204_v3  ;;  %v456_v51 = vrot.slane %v455_v26, 4  ;;  %v4869_v48 = vrot.slane %v6105_v22, 9  ;;  %5222 = vmatprep.subr.bf16.mxu1 %v5382_v59  ;;  %2408 = vrot.lane.b32.xlu1 %v5923_v50, %s5380_s20  ;;  %v1861_v9 = vrot.slane %v1859_v41, 5  ;;  %v786_v28 = vrot.slane %v6110_v11, 5 }
  0x69   :  { %3025 = vmatpush1.bf16.msra.mxu0 %v5274_v47  ;;  %v1856_v43 = vor.u32 %v1855_v23, %v1852_v33  ;;  %v1871_v62 = vrot.slane %v1869_v13, 5  ;;  %v789_v10 = vrot.slane %v6145_v45, 5  ;;  %v6241_v29 = vcombine.low %v6214_v44, %v6233_v6 }
  0x6a   :  { %3026 = vmatprep.subr.bf16.mxu0 %v5382_v59  ;;  %v461_v22 = vsel %vm5499_vm6, %v456_v51, %v460_v24  ;;  %v463_v20 = vshrl.u32 %v6214_v44, 16  ;;  %v1866_v27 = vor.u32 %v1865_v55, %v1861_v9  ;;  %v787_v7 = vsel %vm5445_vm2, %v4869_v48, %v786_v28 }
  0x6b   :  { %v6244_v12 = vcombine.low %v451_v31, %v461_v22  ;;  %v1857_v11 = vrot.slane %v1856_v43, 4  ;;  %5238 = vmatpush1.bf16.msra.mxu1 %v5274_v47  ;;  %1965 = vrot.lane.b32.xlu0 %v5998_v57, %s5380_s20  ;;  %v788_v0 = vrot.slane %v786_v28, 4  ;;  %v466_v45 = vshll.u32 %v6214_v44, 16  ;;  %190 = vst.msk [vmem:[#allocation2 + $0x108] sm:$0xff] %vm178_vm3, %v6241_v29  ;;  %v5276_v47 = vld [vmem:[%s9110_s1 + $0x78] sm:$0xff]  }
  0x6c   :  { %v476_v24 = vshrl.u32 %v6233_v6, 16  ;;  %v4999_v17 = vrot.slane %v6164_v4, 9  ;;  %5223 = vmatprep.subr.bf16.mxu1 %v5382_v59  ;;  %1251 = vrot.lane.b32.xlu1 %v5967_v35, %s5381_s21  ;;  %v1867_v37 = vrot.slane %v1866_v27, 4  ;;  %v2125_v26 = vrot.slane %v6176_v58, 5  ;;  %v6279_v58 = vld [vmem:[%s9109_s0 + $0x18c] sm:$0xf] }
  0x6d   :  { %3027 = vmatpush1.bf16.msra.mxu0 %v5275_v39  ;;  %1061 = vst.msk [vmem:[#allocation2 + $0xe0] sm:$0xff] %vm178_vm3, %v6244_v12  ;;  %v1862_v25 = vsel %vm5499_vm6, %v1857_v11, %v1861_v9  ;;  %v2128_v4 = vrot.slane %v6189_v38, 5  ;;  %v790_v33 = vsel %vm5445_vm2, %v788_v0, %v789_v10  ;;  %v465_v23 = vrot.slane %v463_v20, 4  ;;  %v6294_v22 = vld [vmem:[%s9109_s0 + $0x190] sm:$0xf] }
  0x6e   :  { %3028 = vmatprep.subr.bf16.mxu0 %v5382_v59  ;;  %v468_v41 = vrot.slane %v466_v45, 5  ;;  %v472_v13 = vshll.u32 %v6233_v6, 16  ;;  %v1872_v38 = vsel %vm5499_vm6, %v1867_v37, %v1871_v62  ;;  %v6283_v31 = vcombine.low %v787_v7, %v790_v33 }
  0x6f   :  { %v2126_v51 = vsel %vm5445_vm2, %v4999_v17, %v2125_v26  ;;  %v2127_v55 = vrot.slane %v2125_v26, 4  ;;  %5239 = vmatpush1.bf16.msra.mxu1 %v5275_v39  ;;  %956 = vrot.lane.b32.xlu0 %v5684_v21, %s5381_s21  ;;  %v6289_v48 = vcombine.low %v1862_v25, %v1872_v38  ;;  %v478_v28 = vrot.slane %v476_v24, 4 }
  0x70   :  { %v469_v43 = vor.u32 %v468_v41, %v465_v23  ;;  %v474_v9 = vrot.slane %v472_v13, 5  ;;  %5224 = vmatprep.subr.bf16.mxu1 %v5382_v59  ;;  %2477 = vrot.lane.b32.xlu1 %v5948_v1, %s5379_s15  ;;  %1338 = vst.msk [vmem:[#allocation2 + $0xd0] sm:$0xff] %vm178_vm3, %v6283_v31  ;;  %v482_v39 = vshll.u32 %v6270_v32, 16  ;;  %v6306_v62 = vcombine.low %v6279_v58, %v6294_v22  ;;  %v6312_v59 = vld [vmem:[%s9109_s0 + $0x194] sm:$0x1] }
  0x71   :  { %3029 = vmatpush1.bf16.msra.mxu0 %v5276_v47  ;;  %v2129_v21 = vsel %vm5445_vm2, %v2127_v55, %v2128_v4  ;;  %v1874_v10 = vshrl.u32 %v6279_v58, 16  ;;  %2374 = vst.msk [vmem:[#allocation2 + $0x2c0] sm:$0xff] %vm178_vm3, %v6289_v48  ;;  %v1877_v7 = vshll.u32 %v6279_v58, 16  ;;  %vm922_vm8 = vcmask 785920   ;;  %v6337_v13 = vld [vmem:[%s9109_s0 + $0x90] sm:$0xf] }
  0x72   :  { %v6316_v20 = vcombine.low %v2126_v51, %v2129_v21  ;;  %v470_v11 = vrot.slane %v469_v43, 4  ;;  %v479_v27 = vor.u32 %v478_v28, %v474_v9  ;;  %v484_v0 = vrot.slane %v482_v39, 5  ;;  %1512 = vst.msk [vmem:[#allocation2 + $0x2e8] sm:$0xff] %vm178_vm3, %v6306_v62 }
  0x73   :  { %v1887_v45 = vshrl.u32 %v6294_v22, 16  ;;  %v1876_v24 = vrot.slane %v1874_v10, 4  ;;  %v1883_v17 = vshll.u32 %v6294_v22, 16  ;;  %5240 = vmatpush1.bf16.msra.mxu1 %v5276_v47  ;;  %2568 = vrot.lane.b32.xlu0 %v6039_v49, %s5381_s21  ;;  %v1879_v26 = vrot.slane %v1877_v7, 5 }
  0x74   :  { %2651 = vst.msk [vmem:[#allocation2 + $0x2b0] sm:$0xff] %vm178_vm3, %v6316_v20  ;;  %v475_v25 = vsel %vm5499_vm6, %v470_v11, %v474_v9  ;;  %v480_v37 = vrot.slane %v479_v27, 4  ;;  %v1893_v4 = vshll.u32 %v6312_v59, 16  ;;  %2205 = vrot.lane.b32.xlu1 %v5757_v54, %s5379_s15  ;;  %v4870_v47 = vrot.slane %v6214_v44, 9  ;;  %v6345_v54 = vld [vmem:[%s9109_s0 + $0x94] sm:$0xf] }
  0x75   :  { %v1885_v33 = vrot.slane %v1883_v17, 5  ;;  %v1889_v23 = vrot.slane %v1887_v45, 4  ;;  %v793_v41 = vrot.slane %v6233_v6, 5  ;;  %v1880_v51 = vor.u32 %v1879_v26, %v1876_v24 }
  0x76   :  { %v485_v38 = vsel %vm5499_vm6, %v480_v37, %v484_v0  ;;  %v1895_v55 = vrot.slane %v1893_v4, 5  ;;  %v796_v43 = vrot.slane %v6270_v32, 5  ;;  %v6355_v39 = vcombine.low %v6337_v13, %v6345_v54  ;;  %v6378_v37 = vld [vmem:[%s9109_s0 + $0x98] sm:$0x1] }
  0x77   :  { %v6347_v44 = vcombine.low %v475_v25, %v485_v38  ;;  %v1890_v6 = vor.u32 %v1889_v23, %v1885_v33  ;;  %v794_v9 = vsel %vm5445_vm2, %v4870_v47, %v793_v41  ;;  %v795_v28 = vrot.slane %v793_v41, 4  ;;  %1093 = vrot.lane.b32.xlu0 %v6023_v15, %s5380_s20  ;;  %v5308_v23 = vld [vmem:[%s9109_s0 + $0x144] sm:$0xf] }
  0x78   :  { %v1881_v21 = vrot.slane %v1880_v51, 4  ;;  %v487_v32 = vshrl.u32 %v6337_v13, 16  ;;  %v490_v10 = vshll.u32 %v6337_v13, 16  ;;  %2274 = vrot.lane.b32.xlu1 %v5774_v16, %s5381_s21  ;;  %v1149_v11 = vpop.permute.xlu1 %1148  ;;  %v500_v0 = vshrl.u32 %v6345_v54, 16  ;;  %191 = vst.msk [vmem:[#allocation2 + $0x120] sm:$0xff] %vm178_vm3, %v6355_v39 }
  0x79   :  { %1062 = vst.msk [vmem:[#allocation2 + $0xf8] sm:$0xff] %vm178_vm3, %v6347_v44  ;;  %v1891_v27 = vrot.slane %v1890_v6, 4  ;;  %v797_v7 = vsel %vm5445_vm2, %v795_v28, %v796_v43  ;;  %v4871_v45 = vrot.slane %v6337_v13, 9  ;;  %v800_v25 = vrot.slane %v6345_v54, 5  ;;  %v6400_v51 = vld [vmem:[%s9109_s0 + $0x198] sm:$0xf] }
  0x7a   :  { %v1886_v24 = vsel %vm5499_vm6, %v1881_v21, %v1885_v33  ;;  %v6369_v17 = vcombine.low %v794_v9, %v797_v7  ;;  %v5000_v16 = vrot.slane %v6279_v58, 9  ;;  %v2132_v4 = vrot.slane %v6294_v22, 5  ;;  %v4948_v9 = vld [vmem:[%s9109_s0 + $0x19c] sm:$0xf] }
  0x7b   :  { %v1896_v26 = vsel %vm5499_vm6, %v1891_v27, %v1895_v55  ;;  %v2135_v33 = vrot.slane %v6312_v59, 5  ;;  %v6388_v47 = vcombine.low %v5308_v23, %v5719_v36  ;;  %1162 = vrot.lane.b32.xlu0 %v5993_v14, %s5379_s15  ;;  %v1080_v58 = vpop.permute.xlu0 %1079  ;;  %v489_v38 = vrot.slane %v487_v32, 4  ;;  %v4949_v23 = vld [vmem:[%s9109_s0 + $0x1a0] sm:$0x1] }
  0x7c   :  { %v6392_v41 = vcombine.low %v1886_v24, %v1896_v26  ;;  %1339 = vst.msk [vmem:[#allocation2 + $0xe8] sm:$0xff] %vm178_vm3, %v6369_v17  ;;  %v492_v22 = vrot.slane %v490_v10, 5  ;;  %v496_v59 = vshll.u32 %v6345_v54, 16  ;;  %644 = vrot.lane.b32.xlu1 %v5804_v2, %s5380_s20  ;;  %v2133_v36 = vsel %vm5445_vm2, %v5000_v16, %v2132_v4  ;;  %v945_v10 = vpop.permute.xlu1 %944 }
  0x7d   :  { %9214 = vst [vmem:[#allocation11_spill] sm:$0xff] %v6388_v47  ;;  %1127 = vst.msk [vmem:[#allocation2 + $0x8] sm:$0xff] %vm678_vm7, %v1080_v58  ;;  %v2134_v55 = vrot.slane %v2132_v4, 4  ;;  %v502_v43 = vrot.slane %v500_v0, 4  ;;  %v506_v6 = vshll.u32 %v6378_v37, 16  ;;  %vm992_vm9 = vcmask 1048320  }
  0x7e   :  { %1506 = vst.msk [vmem:[#allocation2 + $0x258] sm:$0xff] %vm178_vm3, %v6388_v47  ;;  %2375 = vst.msk [vmem:[#allocation2 + $0x2d8] sm:$0xff] %vm178_vm3, %v6392_v41  ;;  %v493_v2 = vor.u32 %v492_v22, %v489_v38  ;;  %v498_v28 = vrot.slane %v496_v59, 5  ;;  %v803_v21 = vrot.slane %v6378_v37, 5  ;;  %v6418_v32 = vcombine.low %v6400_v51, %v4948_v9  ;;  %v6438_v22 = vld [vmem:[%s9109_s0 + $0x9c] sm:$0xf] }
  0x7f   :  { %1196 = vst.msk [vmem:[#allocation2 + $0x8] sm:$0xff] %vm922_vm8, %v1149_v11  ;;  %v2136_v27 = vsel %vm5445_vm2, %v2134_v55, %v2135_v33  ;;  %v508_v7 = vrot.slane %v506_v6, 5  ;;  %v2319_v0 = vshrl.u32 %v6400_v51, 16  ;;  %v2322_v11 = vshll.u32 %v6400_v51, 16  ;;  %888 = vrot.lane.b32.xlu0 %v5890_v60, %s5379_s15  ;;  %v1082_v24 = vpop.permute.xlu0 %1081 }
  0x80   :  { %v6426_v16 = vcombine.low %v2133_v36, %v2136_v27  ;;  %v494_v26 = vrot.slane %v493_v2, 4  ;;  %v503_v37 = vor.u32 %v502_v43, %v498_v28  ;;  %v2328_v4 = vshll.u32 %v4948_v9, 16  ;;  %2410 = vrot.lane.b32.xlu1 %v6067_v40, %s5380_s20  ;;  %1128 = vst.msk [vmem:[#allocation2 + $0x20] sm:$0xff] %vm678_vm7, %v1082_v24 }
  0x81   :  { %v2321_v33 = vrot.slane %v2319_v0, 4  ;;  %v2324_v58 = vrot.slane %v2322_v11, 5  ;;  %v2332_v38 = vshrl.u32 %v4948_v9, 16  ;;  %v5019_v60 = vrot.slane %v6400_v51, 9  ;;  %v6453_v0 = vld [vmem:[%s9109_s0 + $0xa0] sm:$0xf] }
  0x82   :  { %2652 = vst.msk [vmem:[#allocation2 + $0x2c8] sm:$0xff] %vm178_vm3, %v6426_v16  ;;  %v499_v59 = vsel %vm5499_vm6, %v494_v26, %v498_v28  ;;  %v504_v36 = vrot.slane %v503_v37, 4  ;;  %v2330_v55 = vrot.slane %v2328_v4, 5  ;;  %v2380_v43 = vrot.slane %v4948_v9, 5  ;;  %v875_v11 = vpop.permute.xlu1 %874 }
  0x83   :  { %v2334_v6 = vrot.slane %v2332_v38, 4  ;;  %v2325_v2 = vor.u32 %v2324_v58, %v2321_v33  ;;  %v2338_v27 = vshll.u32 %v4949_v23, 16  ;;  %v801_v51 = vsel %vm5445_vm2, %v4871_v45, %v800_v25  ;;  %1967 = vrot.lane.b32.xlu0 %v5900_v61, %s5380_s20  ;;  %v6481_v58 = vld [vmem:[%s9109_s0 + $0xa4] sm:$0x1] }
  0x84   :  { %v509_v9 = vsel %vm5499_vm6, %v504_v36, %v508_v7  ;;  %v802_v28 = vrot.slane %v800_v25, 4  ;;  %v6463_v13 = vcombine.low %v6438_v22, %v6453_v0  ;;  %v511_v45 = vshrl.u32 %v6438_v22, 16  ;;  %1253 = vrot.lane.b32.xlu1 %v6128_v30, %s5381_s21 }
  0x85   :  { %v6468_v24 = vcombine.low %v499_v59, %v509_v9  ;;  %v2326_v26 = vrot.slane %v2325_v2, 4  ;;  %v2335_v61 = vor.u32 %v2334_v6, %v2330_v55  ;;  %v2340_v37 = vrot.slane %v2338_v27, 5  ;;  %v631_v4 = vpop.permute.xlu0 %630 }
  0x86   :  { %v804_v54 = vsel %vm5445_vm2, %v802_v28, %v803_v21  ;;  %v514_v25 = vshll.u32 %v6438_v22, 16  ;;  %v524_v7 = vshrl.u32 %v6453_v0, 16  ;;  %192 = vst.msk [vmem:[#allocation2 + $0x138] sm:$0xff] %vm178_vm3, %v6463_v13  ;;  %v2381_v33 = vsel %vm5445_vm2, %v5019_v60, %v2380_v43  ;;  %v6493_v60 = vld [vmem:[%s9109_s0 + $0x1a4] sm:$0xf] }
  0x87   :  { %679 = vst.msk [vmem:[#allocation2] sm:$0xff] %vm678_vm7, %v631_v4  ;;  %v2331_v21 = vsel %vm5499_vm6, %v2326_v26, %v2330_v55  ;;  %v2336_v38 = vrot.slane %v2335_v61, 4  ;;  %v6488_v59 = vcombine.low %v801_v51, %v804_v54  ;;  %v2382_v36 = vrot.slane %v2380_v43, 4  ;;  %958 = vrot.lane.b32.xlu0 %v5856_v18, %s5381_s21  ;;  %v6502_v55 = vld [vmem:[%s9109_s0 + $0x1a8] sm:$0xf] }
  0x88   :  { %1063 = vst.msk [vmem:[#allocation2 + $0x110] sm:$0xff] %vm178_vm3, %v6468_v24  ;;  %v2383_v6 = vrot.slane %v4949_v23, 5  ;;  %v513_v2 = vrot.slane %v511_v45, 4  ;;  %v516_v27 = vrot.slane %v514_v25, 5  ;;  %v520_v9 = vshll.u32 %v6453_v0, 16  ;;  %2479 = vrot.lane.b32.xlu1 %v6062_v52, %s5379_s15 }
  0x89   :  { %923 = vst.msk [vmem:[#allocation2] sm:$0xff] %vm922_vm8, %v875_v11  ;;  %v2341_v43 = vsel %vm5499_vm6, %v2336_v38, %v2340_v37  ;;  %v526_v18 = vrot.slane %v524_v7, 4  ;;  %v530_v23 = vshll.u32 %v6481_v58, 16  ;;  %v1240_v28 = vpop.permute.xlu0 %1239  ;;  %v2522_v4 = vshrl.u32 %v6493_v60, 16  ;;  %v4952_v25 = vld [vmem:[%s9109_s0 + $0x1ac] sm:$0x1] }
  0x8a   :  { %993 = vst.msk [vmem:[#allocation2] sm:$0xff] %vm992_vm9, %v945_v10  ;;  %v6514_v45 = vcombine.low %v2331_v21, %v2341_v43  ;;  %v2384_v11 = vsel %vm5445_vm2, %v2382_v36, %v2383_v6  ;;  %v517_v26 = vor.u32 %v516_v27, %v513_v2  ;;  %v522_v10 = vrot.slane %v520_v9, 5  ;;  %1287 = vst.msk [vmem:[#allocation2 + $0x8] sm:$0xff] %vm992_vm9, %v1240_v28 }
  0x8b   :  { %1340 = vst.msk [vmem:[#allocation2 + $0x100] sm:$0xff] %vm178_vm3, %v6488_v59  ;;  %v6519_v61 = vcombine.low %v2381_v33, %v2384_v11  ;;  %v532_v37 = vrot.slane %v530_v23, 5  ;;  %v2525_v54 = vshll.u32 %v6493_v60, 16  ;;  %2570 = vrot.lane.b32.xlu0 %v6180_v63, %s5381_s21  ;;  %v2535_v33 = vshrl.u32 %v6502_v55, 16 }
  0x8c   :  { %2376 = vst.msk [vmem:[#allocation2 + $0x2f0] sm:$0xff] %vm178_vm3, %v6514_v45  ;;  %v518_v7 = vrot.slane %v517_v26, 4  ;;  %v527_v21 = vor.u32 %v526_v18, %v522_v10  ;;  %v5023_v38 = vrot.slane %v6493_v60, 9  ;;  %2207 = vrot.lane.b32.xlu1 %v5923_v50, %s5379_s15  ;;  %v2615_v36 = vrot.slane %v6502_v55, 5 }
  0x8d   :  { %2653 = vst.msk [vmem:[#allocation2 + $0x2e0] sm:$0xff] %vm178_vm3, %v6519_v61  ;;  %v2524_v6 = vrot.slane %v2522_v4, 4  ;;  %v2527_v2 = vrot.slane %v2525_v54, 5  ;;  %v2531_v27 = vshll.u32 %v6502_v55, 16  ;;  %v1151_v9 = vpop.permute.xlu0 %1150  ;;  %v2537_v23 = vrot.slane %v2535_v33, 4 }
  0x8e   :  { %v523_v43 = vsel %vm5499_vm6, %v518_v7, %v522_v10  ;;  %v528_v18 = vrot.slane %v527_v21, 4  ;;  %v2541_v28 = vshll.u32 %v4952_v25, 16  ;;  %v633_v11 = vpop.permute.xlu1 %632  ;;  %1197 = vst.msk [vmem:[#allocation2 + $0x20] sm:$0xff] %vm922_vm8, %v1151_v9  ;;  %v2616_v50 = vsel %vm5445_vm2, %v5023_v38, %v2615_v36  ;;  %v6546_v4 = vld [vmem:[%s9109_s0 + $0xa8] sm:$0xf] }
  0x8f   :  { %v2617_v26 = vrot.slane %v2615_v36, 4  ;;  %v2528_v51 = vor.u32 %v2527_v2, %v2524_v6  ;;  %v2533_v57 = vrot.slane %v2531_v27, 5  ;;  %680 = vst.msk [vmem:[#allocation2 + $0x18] sm:$0xff] %vm678_vm7, %v633_v11  ;;  %1095 = vrot.lane.b32.xlu0 %v6155_v42, %s5380_s20  ;;  %v2618_v7 = vrot.slane %v4952_v25, 5  ;;  %v71_v2 = vld [vmem:[%s9109_s0 + $0xac] sm:$0xf] }
  0x90   :  { %v533_v10 = vsel %vm5499_vm6, %v528_v18, %v532_v37  ;;  %v2543_v54 = vrot.slane %v2541_v28, 5  ;;  %v4872_v21 = vrot.slane %v6438_v22, 9  ;;  %2276 = vrot.lane.b32.xlu1 %v5948_v1, %s5381_s21  ;;  %v807_v6 = vrot.slane %v6453_v0, 5  ;;  %v6572_v0 = vld [vmem:[%s9109_s0 + $0xb0] sm:$0x1] }
  0x91   :  { %v6556_v33 = vcombine.low %v523_v43, %v533_v10  ;;  %v2529_v38 = vrot.slane %v2528_v51, 4  ;;  %v2538_v36 = vor.u32 %v2537_v23, %v2533_v57  ;;  %v1242_v27 = vpop.permute.xlu0 %1241  ;;  %v2656_v9 = vld [vmem:[#allocation2 + $0x8] sm:$0xff]  ;;  %v2619_v37 = vsel %vm5445_vm2, %v2617_v26, %v2618_v7  ;;  %v2655_v43 = vld [vmem:[#allocation2] sm:$0xff] }
  0x92   :  { %v810_v22 = vrot.slane %v6481_v58, 5  ;;  %v6566_v25 = vcombine.low %v6546_v4, %v71_v2  ;;  %v535_v1 = vshrl.u32 %v6546_v4, 16  ;;  %v877_v51 = vpop.permute.xlu1 %876  ;;  %1288 = vst.msk [vmem:[#allocation2 + $0x20] sm:$0xff] %vm992_vm9, %v1242_v27  ;;  %3030 = vmatprep.mubr.bf16.mxu0 %v2656_v9  ;;  %v5024_v23 = vcombine.low %v2616_v50, %v2619_v37 }
  0x93   :  { %1064 = vst.msk [vmem:[#allocation2 + $0x128] sm:$0xff] %vm178_vm3, %v6556_v33  ;;  %v2534_v58 = vsel %vm5499_vm6, %v2529_v38, %v2533_v57  ;;  %v2539_v18 = vrot.slane %v2538_v36, 4  ;;  %v808_v28 = vsel %vm5445_vm2, %v4872_v21, %v807_v6  ;;  %1164 = vrot.lane.b32.xlu0 %v6121_v34, %s5379_s15  ;;  %3031 = vmatmul.mubr.bf16.vlgmr.msra.gmra.mrb[0].mxu0 %v2655_v43  ;;  %v809_v11 = vrot.slane %v807_v6, 4  ;;  %v6597_v36 = vld [vmem:[%s9109_s0 + $0xb4] sm:$0xf] }
  0x94   :  { %924 = vst.msk [vmem:[#allocation2 + $0x18] sm:$0xff] %vm922_vm8, %v877_v51  ;;  %v538_v26 = vshll.u32 %v6546_v4, 16  ;;  %v548_v10 = vshrl.u32 %v71_v2, 16  ;;  %v537_v7 = vrot.slane %v535_v1, 4  ;;  %646 = vrot.lane.b32.xlu1 %v5967_v35, %s5380_s20  ;;  %v544_v50 = vshll.u32 %v71_v2, 16 }
  0x95   :  { %193 = vst.msk [vmem:[#allocation2 + $0x150] sm:$0xff] %vm178_vm3, %v6566_v25  ;;  %v2544_v57 = vsel %vm5499_vm6, %v2539_v18, %v2543_v54  ;;  %2654 = vst.msk [vmem:[#allocation2 + $0x2f8] sm:$0xff] %vm178_vm3, %v5024_v23  ;;  %v554_v21 = vshll.u32 %v6572_v0, 16  ;;  %v4873_v38 = vrot.slane %v6546_v4, 9  ;;  %v1084_v6 = vpop.permute.xlu0 %1083  ;;  %v811_v35 = vsel %vm5445_vm2, %v809_v11, %v810_v22  ;;  %v74_v18 = vld [vmem:[%s9109_s0 + $0xb8] sm:$0xf] }
  0x96   :  { %v6599_v27 = vcombine.low %v2534_v58, %v2544_v57  ;;  %v540_v9 = vrot.slane %v538_v26, 5  ;;  %v550_v54 = vrot.slane %v548_v10, 4  ;;  %v947_v37 = vpop.permute.xlu1 %946  ;;  %1129 = vst.msk [vmem:[#allocation2 + $0x38] sm:$0xff] %vm678_vm7, %v1084_v6  ;;  %v6604_v1 = vcombine.low %v808_v28, %v811_v35 }
  0x97   :  { %v546_v51 = vrot.slane %v544_v50, 5  ;;  %v556_v4 = vrot.slane %v554_v21, 5  ;;  %v814_v43 = vrot.slane %v71_v2, 5  ;;  %994 = vst.msk [vmem:[#allocation2 + $0x18] sm:$0xff] %vm992_vm9, %v947_v37  ;;  %890 = vrot.lane.b32.xlu0 %v6023_v15, %s5379_s15  ;;  %v817_v58 = vrot.slane %v6572_v0, 5 }
  0x98   :  { %v541_v22 = vor.u32 %v540_v9, %v537_v7  ;;  %v6614_v23 = vcombine.low %v6597_v36, %v74_v18  ;;  %v559_v28 = vshrl.u32 %v6597_v36, 16  ;;  %v6620_v2 = vld [vmem:[%s9109_s0 + $0xbc] sm:$0x1]  ;;  %2412 = vrot.lane.b32.xlu1 %v6204_v3, %s5380_s20  ;;  %1341 = vst.msk [vmem:[#allocation2 + $0x118] sm:$0xff] %vm178_vm3, %v6604_v1  ;;  %v562_v26 = vshll.u32 %v6597_v36, 16 }
  0x99   :  { %v551_v15 = vor.u32 %v550_v54, %v546_v51  ;;  %v815_v0 = vsel %vm5445_vm2, %v4873_v38, %v814_v43  ;;  %v816_v11 = vrot.slane %v814_v43, 4  ;;  %v1153_v10 = vpop.permute.xlu0 %1152  ;;  %v2659_v7 = vld [vmem:[#allocation2 + $0x20] sm:$0xff]  ;;  %v572_v50 = vshrl.u32 %v74_v18, 16 }
  0x9a   :  { %v542_v57 = vrot.slane %v541_v22, 4  ;;  %194 = vst.msk [vmem:[#allocation2 + $0x168] sm:$0xff] %vm178_vm3, %v6614_v23  ;;  %v561_v21 = vrot.slane %v559_v28, 4  ;;  %v568_v6 = vshll.u32 %v74_v18, 16  ;;  %v635_v35 = vpop.permute.xlu1 %634  ;;  %3038 = vmatprep.mubr.bf16.mxu0 %v2659_v7  ;;  %v564_v54 = vrot.slane %v562_v26, 5 }
  0x9b   :  { %1198 = vst.msk [vmem:[#allocation2 + $0x38] sm:$0xff] %vm922_vm8, %v1153_v10  ;;  %v552_v9 = vrot.slane %v551_v15, 4  ;;  %v818_v38 = vsel %vm5445_vm2, %v816_v11, %v817_v58  ;;  %v578_v37 = vshll.u32 %v6620_v2, 16  ;;  %1969 = vrot.lane.b32.xlu0 %v6039_v49, %s5380_s20  ;;  %v574_v10 = vrot.slane %v572_v50, 4  ;;  %v6645_v15 = vld [vmem:[%s9109_s0 + $0xc0] sm:$0xf] }
  0x9c   :  { %681 = vst.msk [vmem:[#allocation2 + $0x30] sm:$0xff] %vm678_vm7, %v635_v35  ;;  %v547_v43 = vsel %vm5499_vm6, %v542_v57, %v546_v51  ;;  %v6640_v22 = vcombine.low %v815_v0, %v818_v38  ;;  %v570_v28 = vrot.slane %v568_v6, 5  ;;  %1255 = vrot.lane.b32.xlu1 %v6244_v12, %s5381_s21  ;;  %v565_v11 = vor.u32 %v564_v54, %v561_v21  ;;  %v77_v51 = vld [vmem:[%s9109_s0 + $0xc4] sm:$0xf]  ;;  %v78_v54 = vld [vmem:[%s9109_s0 + $0xc8] sm:$0x1] }
  0x9d   :  { %v557_v58 = vsel %vm5499_vm6, %v552_v9, %v556_v4  ;;  %v580_v49 = vrot.slane %v578_v37, 5  ;;  %v4874_v26 = vrot.slane %v6597_v36, 9  ;;  %v1244_v0 = vpop.permute.xlu0 %1243  ;;  %v821_v50 = vrot.slane %v74_v18, 5 }
  0x9e   :  { %v6655_v7 = vcombine.low %v547_v43, %v557_v58  ;;  %1342 = vst.msk [vmem:[#allocation2 + $0x130] sm:$0xff] %vm178_vm3, %v6640_v22  ;;  %v575_v57 = vor.u32 %v574_v10, %v570_v28  ;;  %v824_v6 = vrot.slane %v6620_v2, 5  ;;  %v879_v35 = vpop.permute.xlu1 %878  ;;  %v2658_v4 = vld [vmem:[#allocation2 + $0x18] sm:$0xff]  ;;  %v566_v21 = vrot.slane %v565_v11, 4 }
  0x9f   :  { %1289 = vst.msk [vmem:[#allocation2 + $0x38] sm:$0xff] %vm992_vm9, %v1244_v0  ;;  %v6662_v36 = vcombine.low %v6645_v15, %v77_v51  ;;  %v1010_v9 = vshrl.u32 %v6645_v15, 16  ;;  %v1013_v38 = vshll.u32 %v6645_v15, 16  ;;  %3039 = vmatmul.mubr.bf16.gmra.mrb[4].mxu0 %v2658_v4  ;;  %960 = vrot.lane.b32.xlu0 %v5993_v14, %s5381_s21  ;;  %v822_v2 = vsel %vm5445_vm2, %v4874_v26, %v821_v50 }
  0xa0   :  { %925 = vst.msk [vmem:[#allocation2 + $0x30] sm:$0xff] %vm922_vm8, %v879_v35  ;;  %v576_v18 = vrot.slane %v575_v57, 4  ;;  %v823_v37 = vrot.slane %v821_v50, 4  ;;  %v1023_v43 = vshrl.u32 %v77_v51, 16  ;;  %2481 = vrot.lane.b32.xlu1 %v6184_v19, %s5379_s15  ;;  %v571_v10 = vsel %vm5499_vm6, %v566_v21, %v570_v28  ;;  %v6687_v50 = vld [vmem:[%s9109_s0 + $0xcc] sm:$0xf] }
  0xa1   :  { %1065 = vst.msk [vmem:[#allocation2 + $0x140] sm:$0xff] %vm178_vm3, %v6655_v7  ;;  %v1012_v58 = vrot.slane %v1010_v9, 4  ;;  %v1015_v11 = vrot.slane %v1013_v38, 5  ;;  %v1019_v0 = vshll.u32 %v77_v51, 16  ;;  %v1086_v35 = vpop.permute.xlu0 %1085  ;;  %v1029_v26 = vshll.u32 %v78_v54, 16 }
  0xa2   :  { %v581_v14 = vsel %vm5499_vm6, %v576_v18, %v580_v49  ;;  %v825_v57 = vsel %vm5445_vm2, %v823_v37, %v824_v6  ;;  %v1025_v4 = vrot.slane %v1023_v43, 4  ;;  %v949_v53 = vpop.permute.xlu1 %948  ;;  %1130 = vst.msk [vmem:[#allocation2 + $0x50] sm:$0xff] %vm678_vm7, %v1086_v35  ;;  %v6697_v49 = vld [vmem:[%s9109_s0 + $0xd0] sm:$0xf]  ;;  %v4893_v18 = vrot.slane %v6645_v15, 9 }
  0xa3   :  { %v6690_v28 = vcombine.low %v571_v10, %v581_v14  ;;  %v6692_v21 = vcombine.low %v822_v2, %v825_v57  ;;  %v1016_v9 = vor.u32 %v1015_v11, %v1012_v58  ;;  %v1021_v38 = vrot.slane %v1019_v0, 5  ;;  %9215 = vst [vmem:[#allocation12_spill] sm:$0xff] %v6697_v49  ;;  %995 = vst.msk [vmem:[#allocation2 + $0x30] sm:$0xff] %vm992_vm9, %v949_v53  ;;  %v81_v35 = vld [vmem:[%s9109_s0 + $0xd4] sm:$0x1] }
  0xa4   :  { %2572 = vrot.lane.b32.xlu0 %v6289_v48, %s5381_s21  ;;  %v1031_v6 = vrot.slane %v1029_v26, 5  ;;  %v1071_v37 = vrot.slane %v77_v51, 5  ;;  %v1074_v43 = vrot.slane %v78_v54, 5  ;;  %2209 = vrot.lane.b32.xlu1 %v6067_v40, %s5379_s15  ;;  %v1213_v58 = vshrl.u32 %v6687_v50, 16 }
  0xa5   :  { %1066 = vst.msk [vmem:[#allocation2 + $0x158] sm:$0xff] %vm178_vm3, %v6690_v28  ;;  %1343 = vst.msk [vmem:[#allocation2 + $0x148] sm:$0xff] %vm178_vm3, %v6692_v21  ;;  %v1017_v2 = vrot.slane %v1016_v9, 4  ;;  %v1026_v10 = vor.u32 %v1025_v4, %v1021_v38  ;;  %v1155_v11 = vpop.permute.xlu0 %1154  ;;  %v1216_v40 = vshll.u32 %v6687_v50, 16  ;;  %v1226_v0 = vshrl.u32 %v6697_v49, 16 }
  0xa6   :  { %v2662_v15 = vld [vmem:[#allocation2 + $0x38] sm:$0xff]  ;;  %v1072_v51 = vsel %vm5445_vm2, %v4893_v18, %v1071_v37  ;;  %v1073_v54 = vrot.slane %v1071_v37, 4  ;;  %v637_v14 = vpop.permute.xlu1 %636  ;;  %1199 = vst.msk [vmem:[#allocation2 + $0x50] sm:$0xff] %vm922_vm8, %v1155_v11  ;;  %v4897_v26 = vrot.slane %v6687_v50, 9  ;;  %v1306_v9 = vrot.slane %v6697_v49, 5 }
  0xa7   :  { %3046 = vmatprep.mubr.bf16.mxu0 %v2662_v15  ;;  %v1022_v57 = vsel %vm5499_vm6, %v1017_v2, %v1021_v38  ;;  %v1027_v4 = vrot.slane %v1026_v10, 4  ;;  %v6727_v18 = vld [vmem:[%s9109_s0 + $0xe8] sm:$0xf]  ;;  %682 = vst.msk [vmem:[#allocation2 + $0x48] sm:$0xff] %vm678_vm7, %v637_v14  ;;  %v1215_v11 = vrot.slane %v1213_v58, 4  ;;  %v1218_v38 = vrot.slane %v1216_v40, 5 }
  0xa8   :  { %1097 = vrot.lane.b32.xlu0 %v6283_v31, %s5380_s20  ;;  %v1075_v37 = vsel %vm5445_vm2, %v1073_v54, %v1074_v43  ;;  %v1222_v2 = vshll.u32 %v6697_v49, 16  ;;  %v6738_v10 = vld [vmem:[%s9109_s0 + $0xe4] sm:$0xf]  ;;  %2278 = vrot.lane.b32.xlu1 %v6062_v52, %s5381_s21  ;;  %v1307_v43 = vsel %vm5445_vm2, %v4897_v26, %v1306_v9  ;;  %v1308_v58 = vrot.slane %v1306_v9, 4  ;;  %v6751_v54 = vld [vmem:[%s9109_s0 + $0xec] sm:$0x1] }
  0xa9   :  { %v1032_v15 = vsel %vm5499_vm6, %v1027_v4, %v1031_v6  ;;  %v6744_v14 = vcombine.low %v1072_v51, %v1075_v37  ;;  %v1246_v40 = vpop.permute.xlu0 %1245  ;;  %v1219_v8 = vor.u32 %v1218_v38, %v1215_v11  ;;  %v1228_v52 = vrot.slane %v1226_v0, 4 }
  0xaa   :  { %v6753_v53 = vcombine.low %v1022_v57, %v1032_v15  ;;  %v1224_v56 = vrot.slane %v1222_v2, 5  ;;  %v881_v47 = vpop.permute.xlu1 %880  ;;  %v2661_v49 = vld [vmem:[#allocation2 + $0x30] sm:$0xff]  ;;  %1290 = vst.msk [vmem:[#allocation2 + $0x50] sm:$0xff] %vm992_vm9, %v1246_v40  ;;  %v1232_v6 = vshll.u32 %v81_v35, 16  ;;  %v1309_v51 = vrot.slane %v81_v35, 5 }
  0xab   :  { %1344 = vst.msk [vmem:[#allocation2 + $0x160] sm:$0xff] %vm178_vm3, %v6744_v14  ;;  %v4986_v4 = vrot.slane %v6738_v10, 9  ;;  %v2034_v26 = vrot.slane %v6727_v18, 5  ;;  %3047 = vmatmul.mubr.bf16.gmra.mrb[8].mxu0 %v2661_v49  ;;  %v1220_v0 = vrot.slane %v1219_v8, 4  ;;  %v2037_v9 = vrot.slane %v6751_v54, 5 }
  0xac   :  { %926 = vst.msk [vmem:[#allocation2 + $0x48] sm:$0xff] %vm922_vm8, %v881_v47  ;;  %1166 = vrot.lane.b32.xlu0 %v6241_v29, %s5379_s15  ;;  %v1229_v57 = vor.u32 %v1228_v52, %v1224_v56  ;;  %648 = vrot.lane.b32.xlu1 %v6128_v30, %s5380_s20  ;;  %v1234_v35 = vrot.slane %v1232_v6, 5  ;;  %v1310_v37 = vsel %vm5445_vm2, %v1308_v58, %v1309_v51  ;;  %v4905_v58 = vld [vmem:[%s9109_s0 + $0xf0] sm:$0xf]  ;;  %v4906_v40 = vld [vmem:[%s9109_s0 + $0xf4] sm:$0xf] }
  0xad   :  { %1067 = vst.msk [vmem:[#allocation2 + $0x170] sm:$0xff] %vm178_vm3, %v6753_v53  ;;  %v2035_v47 = vsel %vm5445_vm2, %v4986_v4, %v2034_v26  ;;  %v2036_v49 = vrot.slane %v2034_v26, 4  ;;  %v1088_v11 = vpop.permute.xlu0 %1087  ;;  %v1225_v38 = vsel %vm5499_vm6, %v1220_v0, %v1224_v56  ;;  %v4898_v8 = vcombine.low %v1307_v43, %v1310_v37 }
  0xae   :  { %v1230_v2 = vrot.slane %v1229_v57, 4  ;;  %v951_v15 = vpop.permute.xlu1 %950  ;;  %1131 = vst.msk [vmem:[#allocation2 + $0x68] sm:$0xff] %vm678_vm7, %v1088_v11  ;;  %v6791_v52 = vcombine.low %v4905_v58, %v4906_v40  ;;  %v1562_v26 = vshrl.u32 %v4905_v58, 16  ;;  %v1565_v0 = vshll.u32 %v4905_v58, 16 }
  0xaf   :  { %v2038_v30 = vsel %vm5445_vm2, %v2036_v49, %v2037_v9  ;;  %996 = vst.msk [vmem:[#allocation2 + $0x48] sm:$0xff] %vm992_vm9, %v951_v15  ;;  %v1575_v57 = vshrl.u32 %v4906_v40, 16  ;;  %v4907_v9 = vld [vmem:[%s9109_s0 + $0xf8] sm:$0x1]  ;;  %vm3640_vm10 = vcmask 523264   ;;  %vm5384_vm11 = vmmov 0  }
  0xb0   :  { %892 = vrot.lane.b32.xlu0 %v6155_v42, %s5379_s15  ;;  %v1235_v56 = vsel %vm5499_vm6, %v1230_v2, %v1234_v35  ;;  %1345 = vst.msk [vmem:[#allocation2 + $0x178] sm:$0xff] %vm178_vm3, %v4898_v8  ;;  %v6789_v43 = vcombine.low %v2035_v47, %v2038_v30  ;;  %2414 = vrot.lane.b32.xlu1 %v6316_v20, %s5380_s20  ;;  %1499 = vst.msk [vmem:[#allocation2 + $0x1b0] sm:$0xff] %vm178_vm3, %v6791_v52  ;;  %v1564_v35 = vrot.slane %v1562_v26, 4  ;;  %vm4229_vm12 = vcmask 1040384  }
  0xb1   :  { %v6795_v6 = vcombine.low %v1225_v38, %v1235_v56  ;;  %v1157_v51 = vpop.permute.xlu0 %1156  ;;  %v2665_v4 = vld [vmem:[#allocation2 + $0x50] sm:$0xff]  ;;  %v1567_v37 = vrot.slane %v1565_v0, 5  ;;  %v1571_v47 = vshll.u32 %v4906_v40, 16  ;;  %v1577_v2 = vrot.slane %v1575_v57, 4 }
  0xb2   :  { %v639_v42 = vpop.permute.xlu1 %638  ;;  %1200 = vst.msk [vmem:[#allocation2 + $0x68] sm:$0xff] %vm922_vm8, %v1157_v51  ;;  %3054 = vmatprep.mubr.bf16.mxu0 %v2665_v4  ;;  %v1581_v8 = vshll.u32 %v4907_v9, 16  ;;  %v6811_v56 = vcombine.low %v6738_v10, %v6727_v18  ;;  %v4987_v26 = vrot.slane %v4905_v58, 9  ;;  %v2041_v0 = vrot.slane %v4906_v40, 5 }
  0xb3   :  { %683 = vst.msk [vmem:[#allocation2 + $0x60] sm:$0xff] %vm678_vm7, %v639_v42  ;;  %v1568_v11 = vor.u32 %v1567_v37, %v1564_v35  ;;  %v1573_v38 = vrot.slane %v1571_v47, 5  ;;  %v2044_v57 = vrot.slane %v4907_v9, 5  ;;  %v6823_v42 = vld [vmem:[%s9110_s1 + $0x80] sm:$0xff]   ;;  %v1538_v47 = vshrl.u32 %v6738_v10, 16 }
  0xb4   :  { %1971 = vrot.lane.b32.xlu0 %v6180_v63, %s5380_s20  ;;  %1257 = vrot.lane.b32.xlu1 %v6347_v44, %s5381_s21  ;;  %9216 = vst [vmem:[#allocation13_spill] sm:$0xff] %v6811_v56  ;;  %v1583_v4 = vrot.slane %v1581_v8, 5  ;;  %1498 = vst.msk [vmem:[#allocation2 + $0x198] sm:$0xff] %vm178_vm3, %v6811_v56  ;;  %v2042_v58 = vsel %vm5445_vm2, %v4987_v26, %v2041_v0  ;;  %v2043_v40 = vrot.slane %v2041_v0, 4  ;;  %v1547_v9 = vshll.u32 %v6727_v18, 16 }
  0xb5   :  { %v1248_v49 = vpop.permute.xlu0 %1247  ;;  %v1569_v63 = vrot.slane %v1568_v11, 4  ;;  %v1578_v51 = vor.u32 %v1577_v2, %v1573_v38  ;;  %v1551_v2 = vshrl.u32 %v6727_v18, 16  ;;  %5125 = vmatprep.subr.bf16.mxu1 %v6823_v42  ;;  %v1540_v8 = vrot.slane %v1538_v47, 4  ;;  %v4909_v18 = vld [vmem:[%s9109_s0 + $0x100] sm:$0xf] }
  0xb6   :  { %v883_v15 = vpop.permute.xlu1 %882  ;;  %v2664_v30 = vld [vmem:[#allocation2 + $0x48] sm:$0xff]  ;;  %1291 = vst.msk [vmem:[#allocation2 + $0x68] sm:$0xff] %vm992_vm9, %v1248_v49  ;;  %v1541_v49 = vshll.u32 %v6738_v10, 16  ;;  %v1549_v26 = vrot.slane %v1547_v9, 5  ;;  %v1599_v9 = vshrl.u32 %v4909_v18, 16  ;;  %v2048_v56 = vrot.slane %v4909_v18, 5 }
  0xb7   :  { %927 = vst.msk [vmem:[#allocation2 + $0x60] sm:$0xff] %vm922_vm8, %v883_v15  ;;  %3055 = vmatmul.mubr.bf16.gmra.mrb[12].mxu0 %v2664_v30  ;;  %v1579_v37 = vrot.slane %v1578_v51, 4  ;;  %v1557_v30 = vshll.u32 %v6751_v54, 16  ;;  %v2045_v51 = vsel %vm5445_vm2, %v2043_v40, %v2044_v57  ;;  %v1553_v0 = vrot.slane %v1551_v2, 4 }
  0xb8   :  { %962 = vrot.lane.b32.xlu0 %v6121_v34, %s5381_s21  ;;  %2483 = vrot.lane.b32.xlu1 %v6306_v62, %s5379_s15  ;;  %v1574_v34 = vsel %vm5499_vm6, %v1569_v63, %v1573_v38  ;;  %v6837_v38 = vld [vmem:[%s9109_s0 + $0xfc] sm:$0xf]  ;;  %v1543_v15 = vrot.slane %v1541_v49, 5  ;;  %v1595_v2 = vshll.u32 %v4909_v18, 16 }
  0xb9   :  { %v1090_v35 = vpop.permute.xlu0 %1089  ;;  %v1584_v10 = vsel %vm5499_vm6, %v1579_v37, %v1583_v4  ;;  %v4910_v4 = vld [vmem:[%s9109_s0 + $0x104] sm:$0x1]  ;;  %v6858_v37 = vcombine.low %v2042_v58, %v2045_v51  ;;  %v1559_v49 = vrot.slane %v1557_v30, 5  ;;  %v1554_v57 = vor.u32 %v1553_v0, %v1549_v26 }
  0xba   :  { %v953_v11 = vpop.permute.xlu1 %952  ;;  %1132 = vst.msk [vmem:[#allocation2 + $0x80] sm:$0xff] %vm678_vm7, %v1090_v35  ;;  %v6851_v63 = vcombine.low %v1574_v34, %v1584_v10  ;;  %v1544_v47 = vor.u32 %v1543_v15, %v1540_v8  ;;  %v1586_v34 = vshrl.u32 %v6837_v38, 16  ;;  %v1589_v40 = vshll.u32 %v6837_v38, 16 }
  0xbb   :  { %997 = vst.msk [vmem:[#allocation2 + $0x60] sm:$0xff] %vm992_vm9, %v953_v11  ;;  %9217 = vst [vmem:[#allocation14_spill] sm:$0xff] %v6858_v37  ;;  %v6861_v11 = vcombine.low %v6837_v38, %v4909_v18  ;;  %v1605_v10 = vshll.u32 %v4910_v4, 16  ;;  %v4988_v8 = vrot.slane %v6837_v38, 9  ;;  %v1555_v15 = vrot.slane %v1554_v57, 4 }
  0xbc   :  { %2574 = vrot.lane.b32.xlu0 %v6392_v41, %s5381_s21  ;;  %2211 = vrot.lane.b32.xlu1 %v6204_v3, %s5379_s15  ;;  %2362 = vst.msk [vmem:[#allocation2 + $0x1a0] sm:$0xff] %vm178_vm3, %v6851_v63  ;;  %2639 = vst.msk [vmem:[#allocation2 + $0x190] sm:$0xff] %vm178_vm3, %v6858_v37  ;;  %v1545_v58 = vrot.slane %v1544_v47, 4  ;;  %v1588_v30 = vrot.slane %v1586_v34, 4  ;;  %v1591_v51 = vrot.slane %v1589_v40, 5  ;;  %v1601_v0 = vrot.slane %v1599_v9, 4 }
  0xbd   :  { %v1159_v35 = vpop.permute.xlu0 %1158  ;;  %v2668_v54 = vld [vmem:[#allocation2 + $0x68] sm:$0xff]  ;;  %9218 = vst [vmem:[#allocation15_spill] sm:$0xff] %v6861_v11  ;;  %1500 = vst.msk [vmem:[#allocation2 + $0x1c8] sm:$0xff] %vm178_vm3, %v6861_v11  ;;  %v1607_v11 = vrot.slane %v1605_v10, 5  ;;  %v1560_v34 = vsel %vm5499_vm6, %v1555_v15, %v1559_v49  ;;  %v2051_v9 = vrot.slane %v4910_v4, 5  ;;  %v2049_v4 = vsel %vm5445_vm2, %v4988_v8, %v2048_v56 }
  0xbe   :  { %v641_v3 = vpop.permute.xlu1 %640  ;;  %1201 = vst.msk [vmem:[#allocation2 + $0x80] sm:$0xff] %vm922_vm8, %v1159_v35  ;;  %3062 = vmatprep.mubr.bf16.mxu0 %v2668_v54  ;;  %v6881_v35 = vld [vmem:[%s9109_s0 + $0x108] sm:$0xf]  ;;  %v1550_v47 = vsel %vm5499_vm6, %v1545_v58, %v1549_v26  ;;  %v1592_v40 = vor.u32 %v1591_v51, %v1588_v30  ;;  %v6897_v18 = vld [vmem:[%s9109_s0 + $0x110] sm:$0x1]  ;;  %v2050_v49 = vrot.slane %v2048_v56, 4 }
  0xbf   :  { %684 = vst.msk [vmem:[#allocation2 + $0x78] sm:$0xff] %vm678_vm7, %v641_v3  ;;  %v1597_v3 = vrot.slane %v1595_v2, 5  ;;  %v6902_v26 = vcombine.low %v1550_v47, %v1560_v34  ;;  %v1610_v10 = vshrl.u32 %v6881_v35, 16  ;;  %v1613_v15 = vshll.u32 %v6881_v35, 16 }
  0xc0   :  { %1099 = vrot.lane.b32.xlu0 %v6369_v17, %s5380_s20  ;;  %2280 = vrot.lane.b32.xlu1 %v6184_v19, %s5381_s21  ;;  %v4912_v19 = vld [vmem:[%s9109_s0 + $0x10c] sm:$0xf]  ;;  %v1593_v2 = vrot.slane %v1592_v40, 4  ;;  %v2052_v56 = vsel %vm5445_vm2, %v2050_v49, %v2051_v9  ;;  %v6925_v40 = vld [vmem:[%s9109_s0 + $0x114] sm:$0xf] }
  0xc1   :  { %v885_v54 = vpop.permute.xlu0 %884  ;;  %v6892_v37 = vcombine.low %v6881_v35, %v4912_v19  ;;  %v1602_v58 = vor.u32 %v1601_v0, %v1597_v3  ;;  %v1623_v30 = vshrl.u32 %v4912_v19, 16  ;;  %2361 = vst.msk [vmem:[#allocation2 + $0x188] sm:$0xff] %vm178_vm3, %v6902_v26  ;;  %v1619_v8 = vshll.u32 %v4912_v19, 16 }
  0xc2   :  { %v2407_v38 = vpop.permute.xlu1 %2406  ;;  %v2667_v57 = vld [vmem:[#allocation2 + $0x60] sm:$0xff]  ;;  %928 = vst.msk [vmem:[#allocation2 + $0x78] sm:$0xff] %vm922_vm8, %v885_v54  ;;  %v1598_v47 = vsel %vm5499_vm6, %v1593_v2, %v1597_v3  ;;  %v1615_v34 = vrot.slane %v1613_v15, 5  ;;  %v2055_v15 = vrot.slane %v4912_v19, 5 }
  0xc3   :  { %9219 = vst [vmem:[#allocation16_spill] sm:$0xff] %v6892_v37  ;;  %2445 = vst.msk [vmem:[#allocation2 + $0x260] sm:$0xff] %vm678_vm7, %v2407_v38  ;;  %3063 = vmatmul.mubr.bf16.gmra.mrb[16].mxu0 %v2667_v57  ;;  %v1603_v0 = vrot.slane %v1602_v58, 4  ;;  %v6920_v38 = vcombine.low %v2049_v4, %v2052_v56  ;;  %v1612_v57 = vrot.slane %v1610_v10, 4  ;;  %v1621_v58 = vrot.slane %v1619_v8, 5 }
  0xc4   :  { %1168 = vrot.lane.b32.xlu0 %v6355_v39, %s5379_s15  ;;  %650 = vrot.lane.b32.xlu1 %v6244_v12, %s5380_s20  ;;  %1501 = vst.msk [vmem:[#allocation2 + $0x1e0] sm:$0xff] %vm178_vm3, %v6892_v37  ;;  %v1629_v12 = vshll.u32 %v6897_v18, 16  ;;  %v1625_v49 = vrot.slane %v1623_v30, 4  ;;  %v4989_v10 = vrot.slane %v6881_v35, 9  ;;  %v2058_v30 = vrot.slane %v6897_v18, 5 }
  0xc5   :  { %v1964_v51 = vpop.permute.xlu0 %1963  ;;  %9220 = vst [vmem:[#allocation17_spill] sm:$0xff] %v6920_v38  ;;  %v1608_v9 = vsel %vm5499_vm6, %v1603_v0, %v1607_v11  ;;  %2640 = vst.msk [vmem:[#allocation2 + $0x1a8] sm:$0xff] %vm178_vm3, %v6920_v38  ;;  %v1616_v2 = vor.u32 %v1615_v34, %v1612_v57  ;;  %v1634_v56 = vshrl.u32 %v6925_v40, 16  ;;  %v6950_v8 = vld [vmem:[%s9109_s0 + $0x11c] sm:$0x1] }
  0xc6   :  { %v1250_v54 = vpop.permute.xlu1 %1249  ;;  %2002 = vst.msk [vmem:[#allocation2 + $0x258] sm:$0xff] %vm678_vm7, %v1964_v51  ;;  %v1631_v3 = vrot.slane %v1629_v12, 5  ;;  %v6934_v4 = vcombine.low %v1598_v47, %v1608_v9  ;;  %v1626_v51 = vor.u32 %v1625_v49, %v1621_v58  ;;  %v2056_v18 = vsel %vm5445_vm2, %v4989_v10, %v2055_v15 }
  0xc7   :  { %1292 = vst.msk [vmem:[#allocation2 + $0x80] sm:$0xff] %vm992_vm9, %v1250_v54  ;;  %v1617_v19 = vrot.slane %v1616_v2, 4  ;;  %v2057_v12 = vrot.slane %v2055_v15, 4  ;;  %v1637_v54 = vshll.u32 %v6925_v40, 16  ;;  %v1636_v34 = vrot.slane %v1634_v56, 4 }
  0xc8   :  { %894 = vrot.lane.b32.xlu0 %v6283_v31, %s5379_s15  ;;  %2416 = vrot.lane.b32.xlu1 %v6426_v16, %s5380_s20  ;;  %v4915_v31 = vld [vmem:[%s9109_s0 + $0x118] sm:$0xf]  ;;  %2363 = vst.msk [vmem:[#allocation2 + $0x1b8] sm:$0xff] %vm178_vm3, %v6934_v4  ;;  %v1627_v47 = vrot.slane %v1626_v51, 4  ;;  %v1653_v15 = vshll.u32 %v6950_v8, 16 }
  0xc9   :  { %v955_v11 = vpop.permute.xlu0 %954  ;;  %v6944_v0 = vcombine.low %v6925_v40, %v4915_v31  ;;  %v1647_v57 = vshrl.u32 %v4915_v31, 16  ;;  %v1643_v9 = vshll.u32 %v4915_v31, 16  ;;  %v1622_v49 = vsel %vm5499_vm6, %v1617_v19, %v1621_v58 }
  0xca   :  { %v2476_v35 = vpop.permute.xlu1 %2475  ;;  %998 = vst.msk [vmem:[#allocation2 + $0x78] sm:$0xff] %vm992_vm9, %v955_v11  ;;  %v2059_v2 = vsel %vm5445_vm2, %v2057_v12, %v2058_v30  ;;  %v1639_v10 = vrot.slane %v1637_v54, 5  ;;  %v1632_v11 = vsel %vm5499_vm6, %v1627_v47, %v1631_v3  ;;  %v1655_v19 = vrot.slane %v1653_v15, 5  ;;  %v6987_v54 = vld [vmem:[%s9109_s0 + $0x120] sm:$0xf] }
  0xcb   :  { %9221 = vst [vmem:[#allocation18_spill] sm:$0xff] %v6944_v0  ;;  %2514 = vst.msk [vmem:[#allocation2 + $0x260] sm:$0xff] %vm922_vm8, %v2476_v35  ;;  %v6972_v51 = vcombine.low %v2056_v18, %v2059_v2  ;;  %v1645_v56 = vrot.slane %v1643_v9, 5  ;;  %v1649_v35 = vrot.slane %v1647_v57, 4  ;;  %v6975_v38 = vcombine.low %v1622_v49, %v1632_v11 }
  0xcc   :  { %1973 = vrot.lane.b32.xlu0 %v6289_v48, %s5380_s20  ;;  %1502 = vst.msk [vmem:[#allocation2 + $0x1f8] sm:$0xff] %vm178_vm3, %v6944_v0  ;;  %1259 = vrot.lane.b32.xlu1 %v6468_v24, %s5381_s21  ;;  %v1640_v58 = vor.u32 %v1639_v10, %v1636_v34  ;;  %v4990_v30 = vrot.slane %v6925_v40, 9  ;;  %v2062_v18 = vrot.slane %v4915_v31, 5  ;;  %v2065_v12 = vrot.slane %v6950_v8, 5  ;;  %v6992_v40 = vld [vmem:[%s9109_s0 + $0x124] sm:$0xf] }
  0xcd   :  { %v2567_v48 = vpop.permute.xlu0 %2566  ;;  %2641 = vst.msk [vmem:[#allocation2 + $0x1c0] sm:$0xff] %vm178_vm3, %v6972_v51  ;;  %v1650_v3 = vor.u32 %v1649_v35, %v1645_v56  ;;  %2364 = vst.msk [vmem:[#allocation2 + $0x1d0] sm:$0xff] %vm178_vm3, %v6975_v38  ;;  %v1661_v31 = vshll.u32 %v6987_v54, 16  ;;  %v1667_v49 = vshll.u32 %v6992_v40, 16 }
  0xce   :  { %v2204_v0 = vpop.permute.xlu1 %2203  ;;  %v2671_v37 = vld [vmem:[#allocation2 + $0x80] sm:$0xff]  ;;  %2605 = vst.msk [vmem:[#allocation2 + $0x260] sm:$0xff] %vm992_vm9, %v2567_v48  ;;  %v2063_v34 = vsel %vm5445_vm2, %v4990_v30, %v2062_v18  ;;  %v2064_v9 = vrot.slane %v2062_v18, 4  ;;  %v4919_v30 = vld [vmem:[%s9109_s0 + $0x128] sm:$0x1] }
  0xcf   :  { %2242 = vst.msk [vmem:[#allocation2 + $0x258] sm:$0xff] %vm922_vm8, %v2204_v0  ;;  %3070 = vmatprep.mubr.bf16.mxu0 %v2671_v37  ;;  %v1658_v37 = vshrl.u32 %v6987_v54, 16  ;;  %v1671_v0 = vshrl.u32 %v6992_v40, 16  ;;  %v1651_v57 = vrot.slane %v1650_v3, 4  ;;  %v1663_v48 = vrot.slane %v1661_v31, 5 }
  0xd0   :  { %964 = vrot.lane.b32.xlu0 %v6241_v29, %s5381_s21  ;;  %2485 = vrot.lane.b32.xlu1 %v6418_v32, %s5379_s15  ;;  %v1641_v29 = vrot.slane %v1640_v58, 4  ;;  %v2066_v58 = vsel %vm5445_vm2, %v2064_v9, %v2065_v12  ;;  %v1669_v3 = vrot.slane %v1667_v49, 5  ;;  %v5294_v49 = vld [vmem:[%s9110_s1 + $0x88] sm:$0xff]  }
  0xd1   :  { %v1092_v8 = vpop.permute.xlu0 %1091  ;;  %v2670_v47 = vld [vmem:[#allocation2 + $0x78] sm:$0xff]  ;;  %v1660_v15 = vrot.slane %v1658_v37, 4  ;;  %v1673_v11 = vrot.slane %v1671_v0, 4  ;;  %v1656_v35 = vsel %vm5499_vm6, %v1651_v57, %v1655_v19  ;;  %v7021_v18 = vcombine.low %v2063_v34, %v2066_v58  ;;  %v4921_v58 = vld [vmem:[%s9109_s0 + $0x130] sm:$0xf] }
  0xd2   :  { %v2273_v2 = vpop.permute.xlu1 %2272  ;;  %1133 = vst.msk [vmem:[#allocation2 + $0x98] sm:$0xff] %vm678_vm7, %v1092_v8  ;;  %3071 = vmatmul.mubr.bf16.gmra.mrb[20].mxu0 %v2670_v47  ;;  %v1646_v10 = vsel %vm5499_vm6, %v1641_v29, %v1645_v56  ;;  %v7025_v19 = vcombine.low %v6987_v54, %v6992_v40  ;;  %v2069_v34 = vrot.slane %v6992_v40, 5  ;;  %v4920_v40 = vld [vmem:[%s9109_s0 + $0x12c] sm:$0xf] }
  0xd3   :  { %2311 = vst.msk [vmem:[#allocation2 + $0x258] sm:$0xff] %vm992_vm9, %v2273_v2  ;;  %v7019_v56 = vcombine.low %v1646_v10, %v1656_v35  ;;  %v1664_v29 = vor.u32 %v1663_v48, %v1660_v15  ;;  %v1674_v12 = vor.u32 %v1673_v11, %v1669_v3  ;;  %v2072_v35 = vrot.slane %v4919_v30, 5 }
  0xd4   :  { %2576 = vrot.lane.b32.xlu0 %v6514_v45, %s5381_s21  ;;  %2213 = vrot.lane.b32.xlu1 %v6316_v20, %s5379_s15  ;;  %v1677_v45 = vshll.u32 %v4919_v30, 16  ;;  %2642 = vst.msk [vmem:[#allocation2 + $0x1d8] sm:$0xff] %vm178_vm3, %v7021_v18  ;;  %1503 = vst.msk [vmem:[#allocation2 + $0x210] sm:$0xff] %vm178_vm3, %v7025_v19  ;;  %v2071_v11 = vrot.slane %v2069_v34, 4 }
  0xd5   :  { %v1161_v37 = vpop.permute.xlu0 %1160  ;;  %v2731_v31 = vld [vmem:[#allocation2 + $0x260] sm:$0xff]  ;;  %2365 = vst.msk [vmem:[#allocation2 + $0x1e8] sm:$0xff] %vm178_vm3, %v7019_v56  ;;  %v1665_v20 = vrot.slane %v1664_v29, 4  ;;  %v1675_v47 = vrot.slane %v1674_v12, 4  ;;  %v1685_v29 = vshll.u32 %v4920_v40, 16  ;;  %v1691_v12 = vshll.u32 %v4921_v58, 16 }
  0xd6   :  { %v643_v0 = vpop.permute.xlu1 %642  ;;  %1202 = vst.msk [vmem:[#allocation2 + $0x98] sm:$0xff] %vm922_vm8, %v1161_v37  ;;  %3230 = vmatprep.mubr.bf16.mxu1 %v2731_v31  ;;  %v1679_v8 = vrot.slane %v1677_v45, 5  ;;  %v2073_v30 = vsel %vm5445_vm2, %v2071_v11, %v2072_v35  ;;  %v1695_v31 = vshrl.u32 %v4921_v58, 16  ;;  %v2076_v11 = vrot.slane %v4921_v58, 5 }
  0xd7   :  { %685 = vst.msk [vmem:[#allocation2 + $0x90] sm:$0xff] %vm678_vm7, %v643_v0  ;;  %v1670_v57 = vsel %vm5499_vm6, %v1665_v20, %v1669_v3  ;;  %v1682_v3 = vshrl.u32 %v4920_v40, 16  ;;  %v1687_v0 = vrot.slane %v1685_v29, 5  ;;  %v4922_v20 = vld [vmem:[%s9109_s0 + $0x134] sm:$0x1]  ;;  %v4992_v29 = vrot.slane %v4920_v40, 9 }
  0xd8   :  { %1101 = vrot.lane.b32.xlu0 %v6488_v59, %s5380_s20  ;;  %2282 = vrot.lane.b32.xlu1 %v6306_v62, %s5381_s21  ;;  %v1680_v2 = vsel %vm5499_vm6, %v1675_v47, %v1679_v8  ;;  %v4991_v62 = vrot.slane %v6987_v54, 9  ;;  %v1693_v8 = vrot.slane %v1691_v12, 5  ;;  %v1697_v47 = vrot.slane %v1695_v31, 4  ;;  %v4924_v12 = vld [vmem:[%s9109_s0 + $0x13c] sm:$0xf] }
  0xd9   :  { %v887_v9 = vpop.permute.xlu0 %886  ;;  %v7048_v48 = vcombine.low %v1670_v57, %v1680_v2  ;;  %v7082_v2 = vcombine.low %v4920_v40, %v4921_v58  ;;  %v2079_v31 = vrot.slane %v4922_v20, 5  ;;  %v4923_v58 = vld [vmem:[%s9109_s0 + $0x138] sm:$0xf]  ;;  %v9222_v40 = vcombine.low %v6493_v60, %v6502_v55 }
  0xda   :  { %v2409_v10 = vpop.permute.xlu1 %2408  ;;  %v2730_v15 = vld [vmem:[#allocation2 + $0x258] sm:$0xff]  ;;  %929 = vst.msk [vmem:[#allocation2 + $0x90] sm:$0xff] %vm922_vm8, %v887_v9  ;;  %v2070_v54 = vsel %vm5445_vm2, %v4991_v62, %v2069_v34  ;;  %v1701_v34 = vshll.u32 %v4922_v20, 16 }
  0xdb   :  { %2446 = vst.msk [vmem:[#allocation2 + $0x278] sm:$0xff] %vm678_vm7, %v2409_v10  ;;  %3231 = vmatmul.mubr.bf16.vlgmr.msra.gmra.mrb[0].mxu1 %v2730_v15  ;;  %v7069_v37 = vcombine.low %v2070_v54, %v2073_v30  ;;  %v1698_v10 = vor.u32 %v1697_v47, %v1693_v8 }
  0xdc   :  { %1170 = vrot.lane.b32.xlu0 %v6463_v13, %s5379_s15  ;;  %652 = vrot.lane.b32.xlu1 %v6347_v44, %s5380_s20  ;;  %2366 = vst.msk [vmem:[#allocation2 + $0x200] sm:$0xff] %vm178_vm3, %v7048_v48  ;;  %v1703_v62 = vrot.slane %v1701_v34, 5  ;;  %1504 = vst.msk [vmem:[#allocation2 + $0x228] sm:$0xff] %vm178_vm3, %v7082_v2  ;;  %v1715_v34 = vshll.u32 %v4924_v12, 16 }
  0xdd   :  { %5126 = vmatpush3.bf16.msra.mxu1 %v6823_v42  ;;  %v1966_v45 = vpop.permute.xlu0 %1965  ;;  %v1684_v42 = vrot.slane %v1682_v3, 4  ;;  %2643 = vst.msk [vmem:[#allocation2 + $0x1f0] sm:$0xff] %vm178_vm3, %v7069_v37 }
  0xde   :  { %5127 = vmatprep.subr.bf16.mxu1 %v5294_v49  ;;  %v1252_v44 = vpop.permute.xlu1 %1251  ;;  %2003 = vst.msk [vmem:[#allocation2 + $0x270] sm:$0xff] %vm678_vm7, %v1966_v45  ;;  %v2078_v45 = vrot.slane %v2076_v11, 4 }
  0xdf   :  { %1293 = vst.msk [vmem:[#allocation2 + $0x98] sm:$0xff] %vm992_vm9, %v1252_v44  ;;  %v1688_v57 = vor.u32 %v1687_v0, %v1684_v42  ;;  %v2077_v44 = vsel %vm5445_vm2, %v4992_v29, %v2076_v11  ;;  %v1706_v42 = vshrl.u32 %v4923_v58, 16  ;;  %v1709_v0 = vshll.u32 %v4923_v58, 16 }
  0xe0   :  { %896 = vrot.lane.b32.xlu0 %v6369_v17, %s5379_s15  ;;  %2418 = vrot.lane.b32.xlu1 %v6519_v61, %s5380_s20  ;;  %v1699_v61 = vrot.slane %v1698_v10, 4  ;;  %v4925_v10 = vld [vmem:[%s9109_s0 + $0x140] sm:$0x1] }
  0xe1   :  { %5128 = vmatpush3.bf16.msra.mxu1 %v5294_v49  ;;  %v957_v9 = vpop.permute.xlu0 %956  ;;  %v1689_v15 = vrot.slane %v1688_v57, 4  ;;  %v1719_v57 = vshrl.u32 %v4924_v12, 16  ;;  %v1708_v60 = vrot.slane %v1706_v42, 4  ;;  %v1711_v55 = vrot.slane %v1709_v0, 5 }
  0xe2   :  { %v2478_v17 = vpop.permute.xlu1 %2477  ;;  %999 = vst.msk [vmem:[#allocation2 + $0x90] sm:$0xff] %vm992_vm9, %v957_v9  ;;  %v1704_v54 = vsel %vm5499_vm6, %v1699_v61, %v1703_v62  ;;  %v1725_v61 = vshll.u32 %v4925_v10, 16  ;;  %v4993_v0 = vrot.slane %v4923_v58, 9 }
  0xe3   :  { %2515 = vst.msk [vmem:[#allocation2 + $0x278] sm:$0xff] %vm922_vm8, %v2478_v17  ;;  %v1694_v49 = vsel %vm5499_vm6, %v1689_v15, %v1693_v8  ;;  %v1717_v17 = vrot.slane %v1715_v34, 5  ;;  %v1721_v15 = vrot.slane %v1719_v57, 4  ;;  %v1712_v62 = vor.u32 %v1711_v55, %v1708_v60 }
  0xe4   :  { %1975 = vrot.lane.b32.xlu0 %v6392_v41, %s5380_s20  ;;  %1261 = vrot.lane.b32.xlu1 %v6556_v33, %s5381_s21  ;;  %v7097_v41 = vcombine.low %v1694_v49, %v1704_v54 }
  0xe5   :  { %v2569_v35 = vpop.permute.xlu0 %2568  ;;  %v1722_v54 = vor.u32 %v1721_v15, %v1717_v17 }
  0xe6   :  { %v2206_v30 = vpop.permute.xlu1 %2205  ;;  %v2674_v3 = vld [vmem:[#allocation2 + $0x98] sm:$0xff]  ;;  %2606 = vst.msk [vmem:[#allocation2 + $0x278] sm:$0xff] %vm992_vm9, %v2569_v35  ;;  %v7131_v35 = vcombine.low %v4923_v58, %v4924_v12 }
  0xe7   :  { %2243 = vst.msk [vmem:[#allocation2 + $0x270] sm:$0xff] %vm922_vm8, %v2206_v30  ;;  %3078 = vmatprep.mubr.bf16.mxu0 %v2674_v3  ;;  %v1713_v30 = vrot.slane %v1712_v62, 4  ;;  %v1727_v3 = vrot.slane %v1725_v61, 5 }
  0xe8   :  { %966 = vrot.lane.b32.xlu0 %v6355_v39, %s5381_s21  ;;  %2487 = vrot.lane.b32.xlu1 %v9222_v40, %s5379_s15  ;;  %2367 = vst.msk [vmem:[#allocation2 + $0x218] sm:$0xff] %vm178_vm3, %v7097_v41  ;;  %v2080_v39 = vsel %vm5445_vm2, %v2078_v45, %v2079_v31  ;;  %1505 = vst.msk [vmem:[#allocation2 + $0x240] sm:$0xff] %vm178_vm3, %v7131_v35  ;;  %v2083_v45 = vrot.slane %v4924_v12, 5 }
  0xe9   :  { %v1094_v20 = vpop.permute.xlu0 %1093  ;;  %v2673_v8 = vld [vmem:[#allocation2 + $0x90] sm:$0xff]  ;;  %v7118_v47 = vcombine.low %v2077_v44, %v2080_v39  ;;  %v1718_v29 = vsel %vm5499_vm6, %v1713_v30, %v1717_v17 }
  0xea   :  { %v2275_v9 = vpop.permute.xlu1 %2274  ;;  %1134 = vst.msk [vmem:[#allocation2 + $0xb0] sm:$0xff] %vm678_vm7, %v1094_v20  ;;  %3079 = vmatmul.mubr.bf16.gmra.mrb[24].mxu0 %v2673_v8  ;;  %v2085_v20 = vrot.slane %v2083_v45, 4  ;;  %v2086_v8 = vrot.slane %v4925_v10, 5 }
  0xeb   :  { %2312 = vst.msk [vmem:[#allocation2 + $0x270] sm:$0xff] %vm992_vm9, %v2275_v9 }
  0xec   :  { %2578 = vrot.lane.b32.xlu0 %v6599_v27, %s5381_s21  ;;  %2644 = vst.msk [vmem:[#allocation2 + $0x208] sm:$0xff] %vm178_vm3, %v7118_v47  ;;  %2215 = vrot.lane.b32.xlu1 %v6426_v16, %s5379_s15  ;;  %v1723_v16 = vrot.slane %v1722_v54, 4  ;;  %v2087_v58 = vsel %vm5445_vm2, %v2085_v20, %v2086_v8  ;;  %v7202_v54 = vld [vmem:[%s9109_s0 + $0xdc] sm:$0xf] }
  0xed   :  { %v1163_v49 = vpop.permute.xlu0 %1162  ;;  %v2734_v11 = vld [vmem:[#allocation2 + $0x278] sm:$0xff] }
  0xee   :  { %v645_v27 = vpop.permute.xlu1 %644  ;;  %1203 = vst.msk [vmem:[#allocation2 + $0xb0] sm:$0xff] %vm922_vm8, %v1163_v49  ;;  %3238 = vmatprep.mubr.bf16.mxu1 %v2734_v11  ;;  %v1728_v40 = vsel %vm5499_vm6, %v1723_v16, %v1727_v3  ;;  %v1523_v3 = vshll.u32 %v7202_v54, 16  ;;  %v1527_v16 = vshrl.u32 %v7202_v54, 16 }
  0xef   :  { %686 = vst.msk [vmem:[#allocation2 + $0xa8] sm:$0xff] %vm678_vm7, %v645_v27  ;;  %v7146_v42 = vcombine.low %v1718_v29, %v1728_v40 }
  0xf0   :  { %1103 = vrot.lane.b32.xlu0 %v6604_v1, %s5380_s20  ;;  %2284 = vrot.lane.b32.xlu1 %v6418_v32, %s5381_s21  ;;  %v2084_v32 = vsel %vm5445_vm2, %v4993_v0, %v2083_v45  ;;  %v1525_v40 = vrot.slane %v1523_v3, 5  ;;  %v4901_v0 = vld [vmem:[%s9109_s0 + $0xe0] sm:$0x1]  ;;  %v9226_v3 = vld [vmem:[#allocation13_spill] sm:$0xff] }
  0xf1   :  { %v889_v31 = vpop.permute.xlu0 %888  ;;  %2368 = vst.msk [vmem:[#allocation2 + $0x230] sm:$0xff] %vm178_vm3, %v7146_v42  ;;  %v7159_v57 = vcombine.low %v2084_v32, %v2087_v58  ;;  %v1533_v32 = vshll.u32 %v4901_v0, 16 }
  0xf2   :  { %v2411_v44 = vpop.permute.xlu1 %2410  ;;  %v2733_v39 = vld [vmem:[#allocation2 + $0x270] sm:$0xff]  ;;  %930 = vst.msk [vmem:[#allocation2 + $0xa8] sm:$0xff] %vm922_vm8, %v889_v31 }
  0xf3   :  { %2447 = vst.msk [vmem:[#allocation2 + $0x290] sm:$0xff] %vm678_vm7, %v2411_v44  ;;  %3239 = vmatmul.mubr.bf16.gmra.mrb[4].mxu1 %v2733_v39  ;;  %v1529_v44 = vrot.slane %v1527_v16, 4 }
  0xf4   :  { %1172 = vrot.lane.b32.xlu0 %v6566_v25, %s5379_s15  ;;  %654 = vrot.lane.b32.xlu1 %v6468_v24, %s5380_s20  ;;  %2645 = vst.msk [vmem:[#allocation2 + $0x220] sm:$0xff] %vm178_vm3, %v7159_v57 }
  0xf5   :  { %v1968_v12 = vpop.permute.xlu0 %1967  ;;  %v1530_v8 = vor.u32 %v1529_v44, %v1525_v40 }
  0xf6   :  { %v1254_v34 = vpop.permute.xlu1 %1253  ;;  %2004 = vst.msk [vmem:[#allocation2 + $0x288] sm:$0xff] %vm678_vm7, %v1968_v12 }
  0xf7   :  { %1294 = vst.msk [vmem:[#allocation2 + $0xb0] sm:$0xff] %vm992_vm9, %v1254_v34 }
  0xf8   :  { %1263 = vrot.lane.b32.xlu0 %v6655_v7, %s5381_s21  ;;  %898 = vrot.lane.b32.xlu1 %v6488_v59, %s5379_s15 }
  0xf9   :  { %v959_v24 = vpop.permute.xlu0 %958 }
  0xfa   :  { %v2480_v9 = vpop.permute.xlu1 %2479  ;;  %1000 = vst.msk [vmem:[#allocation2 + $0xa8] sm:$0xff] %vm992_vm9, %v959_v24 }
  0xfb   :  { %2516 = vst.msk [vmem:[#allocation2 + $0x290] sm:$0xff] %vm922_vm8, %v2480_v9 }
  0xfc   :  { %1105 = vrot.lane.b32.xlu0 %v6640_v22, %s5380_s20  ;;  %968 = vrot.lane.b32.xlu1 %v6463_v13, %s5381_s21 }
  0xfd   :  { %v2571_v60 = vpop.permute.xlu0 %2570 }
  0xfe   :  { %v2208_v55 = vpop.permute.xlu1 %2207  ;;  %v2677_v10 = vld [vmem:[#allocation2 + $0xb0] sm:$0xff]  ;;  %2607 = vst.msk [vmem:[#allocation2 + $0x290] sm:$0xff] %vm992_vm9, %v2571_v60  ;;  %v1531_v60 = vrot.slane %v1530_v8, 4 }
  0xff   :  { %2244 = vst.msk [vmem:[#allocation2 + $0x288] sm:$0xff] %vm922_vm8, %v2208_v55  ;;  %3086 = vmatprep.mubr.bf16.mxu0 %v2677_v10  ;;  %v1535_v55 = vrot.slane %v1533_v32, 5  ;;  %v2027_v10 = vrot.slane %v7202_v54, 5 }
 0x100   :  { %1174 = vrot.lane.b32.xlu0 %v6614_v23, %s5379_s15  ;;  %656 = vrot.lane.b32.xlu1 %v6556_v33, %s5380_s20 }
 0x101   :  { %v1096_v59 = vpop.permute.xlu0 %1095  ;;  %v2676_v17 = vld [vmem:[#allocation2 + $0xa8] sm:$0xff] }
 0x102   :  { %v2277_v15 = vpop.permute.xlu1 %2276  ;;  %1135 = vst.msk [vmem:[#allocation2 + $0xc8] sm:$0xff] %vm678_vm7, %v1096_v59  ;;  %3087 = vmatmul.mubr.bf16.gmra.mrb[28].mxu0 %v2676_v17 }
 0x103   :  { %2313 = vst.msk [vmem:[#allocation2 + $0x288] sm:$0xff] %vm992_vm9, %v2277_v15 }
 0x104   :  { %1265 = vrot.lane.b32.xlu0 %v6690_v28, %s5381_s21  ;;  %900 = vrot.lane.b32.xlu1 %v6604_v1, %s5379_s15  ;;  %v7197_v1 = vld [vmem:[%s9109_s0 + $0xd8] sm:$0xf] }
 0x105   :  { %v1165_v13 = vpop.permute.xlu0 %1164  ;;  %v2737_v62 = vld [vmem:[#allocation2 + $0x290] sm:$0xff]  ;;  %v1514_v27 = vshrl.u32 %v7197_v1, 16  ;;  %v1517_v30 = vshll.u32 %v7197_v1, 16 }
 0x106   :  { %v647_v61 = vpop.permute.xlu1 %646  ;;  %1204 = vst.msk [vmem:[#allocation2 + $0xc8] sm:$0xff] %vm922_vm8, %v1165_v13  ;;  %3246 = vmatprep.mubr.bf16.mxu1 %v2737_v62  ;;  %v1536_v13 = vsel %vm5499_vm6, %v1531_v60, %v1535_v55  ;;  %v2029_v62 = vrot.slane %v2027_v10, 4 }
 0x107   :  { %687 = vst.msk [vmem:[#allocation2 + $0xc0] sm:$0xff] %vm678_vm7, %v647_v61  ;;  %v1516_v45 = vrot.slane %v1514_v27, 4  ;;  %v1519_v31 = vrot.slane %v1517_v30, 5  ;;  %v2030_v61 = vrot.slane %v4901_v0, 5  ;;  %v9225_v30 = vld [vmem:[#allocation14_spill] sm:$0xff] }
 0x108   :  { %1107 = vrot.lane.b32.xlu0 %v6692_v21, %s5380_s20  ;;  %970 = vrot.lane.b32.xlu1 %v6566_v25, %s5381_s21 }
 0x109   :  { %v891_v33 = vpop.permute.xlu0 %890  ;;  %v1520_v20 = vor.u32 %v1519_v31, %v1516_v45  ;;  %v9227_v45 = vld [vmem:[#allocation15_spill] sm:$0xff] }
 0x10a   :  { %v2413_v49 = vpop.permute.xlu1 %2412  ;;  %v2736_v11 = vld [vmem:[#allocation2 + $0x288] sm:$0xff]  ;;  %931 = vst.msk [vmem:[#allocation2 + $0xc0] sm:$0xff] %vm922_vm8, %v891_v33 }
 0x10b   :  { %2448 = vst.msk [vmem:[#allocation2 + $0x2a8] sm:$0xff] %vm678_vm7, %v2413_v49  ;;  %3247 = vmatmul.mubr.bf16.gmra.mrb[8].mxu1 %v2736_v11  ;;  %v1521_v9 = vrot.slane %v1520_v20, 4  ;;  %v2031_v49 = vsel %vm5445_vm2, %v2029_v62, %v2030_v61 }
 0x10c   :  { %1176 = vrot.lane.b32.xlu0 %v6662_v36, %s5379_s15  ;;  %658 = vrot.lane.b32.xlu1 %v6655_v7, %s5380_s20 }
 0x10d   :  { %v1970_v25 = vpop.permute.xlu0 %1969  ;;  %v1526_v15 = vsel %vm5499_vm6, %v1521_v9, %v1525_v40 }
 0x10e   :  { %v1256_v29 = vpop.permute.xlu1 %1255  ;;  %2005 = vst.msk [vmem:[#allocation2 + $0x2a0] sm:$0xff] %vm678_vm7, %v1970_v25 }
 0x10f   :  { %1295 = vst.msk [vmem:[#allocation2 + $0xc8] sm:$0xff] %vm992_vm9, %v1256_v29 }
 0x110   :  { %1267 = vrot.lane.b32.xlu0 %v6753_v53, %s5381_s21  ;;  %902 = vrot.lane.b32.xlu1 %v6640_v22, %s5379_s15  ;;  %v4953_v22 = vcombine.low %v7197_v1, %v7202_v54 }
 0x111   :  { %v961_v7 = vpop.permute.xlu0 %960 }
 0x112   :  { %v2482_v39 = vpop.permute.xlu1 %2481  ;;  %1001 = vst.msk [vmem:[#allocation2 + $0xc0] sm:$0xff] %vm992_vm9, %v961_v7 }
 0x113   :  { %2517 = vst.msk [vmem:[#allocation2 + $0x2a8] sm:$0xff] %vm922_vm8, %v2482_v39 }
 0x114   :  { %1109 = vrot.lane.b32.xlu0 %v6744_v14, %s5380_s20  ;;  %972 = vrot.lane.b32.xlu1 %v6614_v23, %s5381_s21  ;;  %1497 = vst.msk [vmem:[#allocation2 + $0x180] sm:$0xff] %vm178_vm3, %v4953_v22  ;;  %v9223_v14 = vld [vmem:[#allocation12_spill] sm:$0xff] }
 0x115   :  { %v9224_v34 = vcombine.low %v6687_v50, %v9223_v14  ;;  %v4985_v50 = vrot.slane %v7197_v1, 9 }
 0x116   :  { %v2573_v53 = vpop.permute.xlu0 %2572  ;;  %v2210_v58 = vpop.permute.xlu1 %2209  ;;  %v2680_v12 = vld [vmem:[#allocation2 + $0xc8] sm:$0xff] }
 0x117   :  { %2608 = vst.msk [vmem:[#allocation2 + $0x2a8] sm:$0xff] %vm992_vm9, %v2573_v53  ;;  %3094 = vmatprep.mubr.bf16.mxu0 %v2680_v12  ;;  %v2028_v46 = vsel %vm5445_vm2, %v4985_v50, %v2027_v10 }
 0x118   :  { %2245 = vst.msk [vmem:[#allocation2 + $0x2a0] sm:$0xff] %vm922_vm8, %v2210_v58  ;;  %1178 = vrot.lane.b32.xlu0 %v9224_v34, %s5379_s15  ;;  %660 = vrot.lane.b32.xlu1 %v6690_v28, %s5380_s20 }
 0x119   :  { %v2679_v24 = vld [vmem:[#allocation2 + $0xc0] sm:$0xff] }
 0x11a   :  { %v1098_v23 = vpop.permute.xlu0 %1097  ;;  %v2279_v59 = vpop.permute.xlu1 %2278  ;;  %3095 = vmatmul.mubr.bf16.gmra.mrb[32].mxu0 %v2679_v24 }
 0x11b   :  { %1136 = vst.msk [vmem:[#allocation2 + $0xe0] sm:$0xff] %vm678_vm7, %v1098_v23  ;;  %v9230_v23 = vld [vmem:[#allocation18_spill] sm:$0xff] }
 0x11c   :  { %2314 = vst.msk [vmem:[#allocation2 + $0x2a0] sm:$0xff] %vm992_vm9, %v2279_v59  ;;  %1269 = vrot.lane.b32.xlu0 %v6795_v6, %s5381_s21  ;;  %904 = vrot.lane.b32.xlu1 %v6692_v21, %s5379_s15  ;;  %v4969_v21 = vcombine.low %v1526_v15, %v1536_v13 }
 0x11e   :  { %v1167_v28 = vpop.permute.xlu0 %1166  ;;  %v2740_v17 = vld [vmem:[#allocation2 + $0x2a8] sm:$0xff]  ;;  %v649_v33 = vpop.permute.xlu1 %648 }
 0x11f   :  { %1205 = vst.msk [vmem:[#allocation2 + $0xe0] sm:$0xff] %vm922_vm8, %v1167_v28  ;;  %3254 = vmatprep.mubr.bf16.mxu1 %v2740_v17 }
 0x120   :  { %688 = vst.msk [vmem:[#allocation2 + $0xd8] sm:$0xff] %vm678_vm7, %v649_v33  ;;  %2388 = vrot.lane.b32.xlu0 %v6789_v43, %s5380_s20  ;;  %974 = vrot.lane.b32.xlu1 %v6662_v36, %s5381_s21  ;;  %v5001_v36 = vcombine.low %v2028_v46, %v2031_v49 }
 0x122   :  { %v893_v6 = vpop.permute.xlu0 %892  ;;  %v2415_v11 = vpop.permute.xlu1 %2414 }
 0x123   :  { %v2739_v1 = vld [vmem:[#allocation2 + $0x2a0] sm:$0xff]  ;;  %932 = vst.msk [vmem:[#allocation2 + $0xd8] sm:$0xff] %vm922_vm8, %v893_v6 }
 0x124   :  { %2449 = vst.msk [vmem:[#allocation2 + $0x2c0] sm:$0xff] %vm678_vm7, %v2415_v11  ;;  %3255 = vmatmul.mubr.bf16.gmra.mrb[12].mxu1 %v2739_v1  ;;  %2457 = vrot.lane.b32.xlu0 %v6791_v52, %s5379_s15 }
 0x125   :  { %1945 = vrot.lane.b32.xlu1 %v4969_v21, %s5380_s20 }
 0x126   :  { %v1972_v54 = vpop.permute.xlu0 %1971  ;;  %v1258_v25 = vpop.permute.xlu1 %1257 }
 0x127   :  { %2006 = vst.msk [vmem:[#allocation2 + $0x2b8] sm:$0xff] %vm678_vm7, %v1972_v54 }
 0x128   :  { %1296 = vst.msk [vmem:[#allocation2 + $0xe0] sm:$0xff] %vm992_vm9, %v1258_v25  ;;  %2548 = vrot.lane.b32.xlu0 %v6851_v63, %s5381_s21  ;;  %v2657_v25 = vld [vmem:[#allocation2 + $0x10] sm:$0xff] }
 0x129   :  { %2185 = vrot.lane.b32.xlu1 %v5001_v36, %s5379_s15 }
 0x12a   :  { %v963_v5 = vpop.permute.xlu0 %962  ;;  %v2484_v27 = vpop.permute.xlu1 %2483 }
 0x12b   :  { %1002 = vst.msk [vmem:[#allocation2 + $0xd8] sm:$0xff] %vm992_vm9, %v963_v5 }
 0x12c   :  { %2518 = vst.msk [vmem:[#allocation2 + $0x2c0] sm:$0xff] %vm922_vm8, %v2484_v27  ;;  %2390 = vrot.lane.b32.xlu0 %v9225_v30, %s5380_s20 }
 0x12d   :  { %2254 = vrot.lane.b32.xlu1 %v9226_v3, %s5381_s21  ;;  %v2660_v3 = vld [vmem:[#allocation2 + $0x28] sm:$0xff] }
 0x12e   :  { %v2575_v16 = vpop.permute.xlu0 %2574  ;;  %v2212_v29 = vpop.permute.xlu1 %2211 }
 0x12f   :  { %v2683_v7 = vld [vmem:[#allocation2 + $0xe0] sm:$0xff]  ;;  %2609 = vst.msk [vmem:[#allocation2 + $0x2c0] sm:$0xff] %vm992_vm9, %v2575_v16 }
 0x130   :  { %2246 = vst.msk [vmem:[#allocation2 + $0x2b8] sm:$0xff] %vm922_vm8, %v2212_v29  ;;  %3102 = vmatprep.mubr.bf16.mxu0 %v2683_v7  ;;  %2459 = vrot.lane.b32.xlu0 %v9227_v45, %s5379_s15  ;;  %v2663_v29 = vld [vmem:[#allocation2 + $0x40] sm:$0xff] }
 0x131   :  { %1947 = vrot.lane.b32.xlu1 %v6902_v26, %s5380_s20  ;;  %v9228_v26 = vld [vmem:[#allocation17_spill] sm:$0xff] }
 0x132   :  { %v1100_v31 = vpop.permute.xlu0 %1099  ;;  %v2682_v40 = vld [vmem:[#allocation2 + $0xd8] sm:$0xff]  ;;  %v2281_v44 = vpop.permute.xlu1 %2280 }
 0x133   :  { %1137 = vst.msk [vmem:[#allocation2 + $0xf8] sm:$0xff] %vm678_vm7, %v1100_v31  ;;  %3103 = vmatmul.mubr.bf16.gmra.mrb[36].mxu0 %v2682_v40 }
 0x134   :  { %2315 = vst.msk [vmem:[#allocation2 + $0x2b8] sm:$0xff] %vm992_vm9, %v2281_v44  ;;  %2550 = vrot.lane.b32.xlu0 %v6934_v4, %s5381_s21 }
 0x135   :  { %2187 = vrot.lane.b32.xlu1 %v6789_v43, %s5379_s15  ;;  %v9229_v43 = vld [vmem:[#allocation16_spill] sm:$0xff] }
 0x136   :  { %v1169_v39 = vpop.permute.xlu0 %1168  ;;  %v2743_v0 = vld [vmem:[#allocation2 + $0x2c0] sm:$0xff]  ;;  %v651_v22 = vpop.permute.xlu1 %650 }
 0x137   :  { %1206 = vst.msk [vmem:[#allocation2 + $0xf8] sm:$0xff] %vm922_vm8, %v1169_v39  ;;  %3262 = vmatprep.mubr.bf16.mxu1 %v2743_v0 }
 0x138   :  { %689 = vst.msk [vmem:[#allocation2 + $0xf0] sm:$0xff] %vm678_vm7, %v651_v22  ;;  %2392 = vrot.lane.b32.xlu0 %v9228_v26, %s5380_s20  ;;  %v9231_v22 = vld [vmem:[#allocation11_spill] sm:$0xff] }
 0x139   :  { %2256 = vrot.lane.b32.xlu1 %v6791_v52, %s5381_s21 }
 0x13a   :  { %v895_v53 = vpop.permute.xlu0 %894  ;;  %v2417_v20 = vpop.permute.xlu1 %2416 }
 0x13b   :  { %v2742_v8 = vld [vmem:[#allocation2 + $0x2b8] sm:$0xff]  ;;  %933 = vst.msk [vmem:[#allocation2 + $0xf0] sm:$0xff] %vm922_vm8, %v895_v53  ;;  %v2669_v53 = vld [vmem:[#allocation2 + $0x70] sm:$0xff] }
 0x13c   :  { %2450 = vst.msk [vmem:[#allocation2 + $0x2d8] sm:$0xff] %vm678_vm7, %v2417_v20  ;;  %3263 = vmatmul.mubr.bf16.gmra.mrb[16].mxu1 %v2742_v8  ;;  %2461 = vrot.lane.b32.xlu0 %v9229_v43, %s5379_s15  ;;  %v9232_v8 = vld [vmem:[#allocation8_spill] sm:$0xff] }
 0x13d   :  { %1949 = vrot.lane.b32.xlu1 %v6851_v63, %s5380_s20 }
 0x13e   :  { %v1974_v32 = vpop.permute.xlu0 %1973  ;;  %v1260_v58 = vpop.permute.xlu1 %1259 }
 0x13f   :  { %2007 = vst.msk [vmem:[#allocation2 + $0x2d0] sm:$0xff] %vm678_vm7, %v1974_v32 }
 0x140   :  { %1297 = vst.msk [vmem:[#allocation2 + $0xf8] sm:$0xff] %vm992_vm9, %v1260_v58  ;;  %2552 = vrot.lane.b32.xlu0 %v6975_v38, %s5381_s21 }
 0x141   :  { %2189 = vrot.lane.b32.xlu1 %v9225_v30, %s5379_s15 }
 0x142   :  { %v965_v52 = vpop.permute.xlu0 %964  ;;  %v2486_v12 = vpop.permute.xlu1 %2485 }
 0x143   :  { %1003 = vst.msk [vmem:[#allocation2 + $0xf0] sm:$0xff] %vm992_vm9, %v965_v52 }
 0x144   :  { %2519 = vst.msk [vmem:[#allocation2 + $0x2d8] sm:$0xff] %vm922_vm8, %v2486_v12  ;;  %2394 = vrot.lane.b32.xlu0 %v6972_v51, %s5380_s20  ;;  %v9233_v12 = vld [vmem:[#allocation9_spill] sm:$0xff] }
 0x145   :  { %2258 = vrot.lane.b32.xlu1 %v9227_v45, %s5381_s21 }
 0x146   :  { %v2577_v63 = vpop.permute.xlu0 %2576  ;;  %v2214_v14 = vpop.permute.xlu1 %2213 }
 0x147   :  { %v2686_v34 = vld [vmem:[#allocation2 + $0xf8] sm:$0xff]  ;;  %2610 = vst.msk [vmem:[#allocation2 + $0x2d8] sm:$0xff] %vm992_vm9, %v2577_v63  ;;  %v2672_v63 = vld [vmem:[#allocation2 + $0x88] sm:$0xff] }
 0x148   :  { %2247 = vst.msk [vmem:[#allocation2 + $0x2d0] sm:$0xff] %vm922_vm8, %v2214_v14  ;;  %3110 = vmatprep.mubr.bf16.mxu0 %v2686_v34  ;;  %2463 = vrot.lane.b32.xlu0 %v9230_v23, %s5379_s15 }
 0x149   :  { %1951 = vrot.lane.b32.xlu1 %v6934_v4, %s5380_s20 }
 0x14a   :  { %v1102_v24 = vpop.permute.xlu0 %1101  ;;  %v2685_v9 = vld [vmem:[#allocation2 + $0xf0] sm:$0xff]  ;;  %v2283_v60 = vpop.permute.xlu1 %2282 }
 0x14b   :  { %1138 = vst.msk [vmem:[#allocation2 + $0x110] sm:$0xff] %vm678_vm7, %v1102_v24  ;;  %3111 = vmatmul.mubr.bf16.gmra.mrb[40].mxu0 %v2685_v9  ;;  %v2675_v9 = vld [vmem:[#allocation2 + $0xa0] sm:$0xff] }
 0x14c   :  { %2316 = vst.msk [vmem:[#allocation2 + $0x2d0] sm:$0xff] %vm992_vm9, %v2283_v60  ;;  %2554 = vrot.lane.b32.xlu0 %v7019_v56, %s5381_s21  ;;  %v9234_v60 = vld [vmem:[#allocation7_spill] sm:$0xff] }
 0x14d   :  { %2191 = vrot.lane.b32.xlu1 %v9228_v26, %s5379_s15 }
 0x14e   :  { %v1171_v55 = vpop.permute.xlu0 %1170  ;;  %v2746_v10 = vld [vmem:[#allocation2 + $0x2d8] sm:$0xff]  ;;  %v653_v59 = vpop.permute.xlu1 %652 }
 0x14f   :  { %1207 = vst.msk [vmem:[#allocation2 + $0x110] sm:$0xff] %vm922_vm8, %v1171_v55  ;;  %3270 = vmatprep.mubr.bf16.mxu1 %v2746_v10  ;;  %v9235_v10 = vld [vmem:[#allocation10_spill] sm:$0xff] }
 0x150   :  { %690 = vst.msk [vmem:[#allocation2 + $0x108] sm:$0xff] %vm678_vm7, %v653_v59  ;;  %2396 = vrot.lane.b32.xlu0 %v7021_v18, %s5380_s20  ;;  %v2678_v59 = vld [vmem:[#allocation2 + $0xb8] sm:$0xff] }
 0x151   :  { %2260 = vrot.lane.b32.xlu1 %v9229_v43, %s5381_s21 }
 0x152   :  { %v897_v4 = vpop.permute.xlu0 %896  ;;  %v2419_v50 = vpop.permute.xlu1 %2418 }
 0x153   :  { %v2745_v28 = vld [vmem:[#allocation2 + $0x2d0] sm:$0xff]  ;;  %934 = vst.msk [vmem:[#allocation2 + $0x108] sm:$0xff] %vm922_vm8, %v897_v4 }
 0x154   :  { %2451 = vst.msk [vmem:[#allocation2 + $0x2f0] sm:$0xff] %vm678_vm7, %v2419_v50  ;;  %3271 = vmatmul.mubr.bf16.gmra.mrb[20].mxu1 %v2745_v28  ;;  %2465 = vrot.lane.b32.xlu0 %v7025_v19, %s5379_s15  ;;  %v2681_v50 = vld [vmem:[#allocation2 + $0xd0] sm:$0xff] }
 0x155   :  { %1953 = vrot.lane.b32.xlu1 %v6975_v38, %s5380_s20 }
 0x156   :  { %v1976_v17 = vpop.permute.xlu0 %1975  ;;  %v1262_v15 = vpop.permute.xlu1 %1261 }
 0x157   :  { %2008 = vst.msk [vmem:[#allocation2 + $0x2e8] sm:$0xff] %vm678_vm7, %v1976_v17 }
 0x158   :  { %1298 = vst.msk [vmem:[#allocation2 + $0x110] sm:$0xff] %vm992_vm9, %v1262_v15  ;;  %2556 = vrot.lane.b32.xlu0 %v7048_v48, %s5381_s21 }
 0x159   :  { %2193 = vrot.lane.b32.xlu1 %v6972_v51, %s5379_s15 }
 0x15a   :  { %v967_v13 = vpop.permute.xlu0 %966  ;;  %v2488_v62 = vpop.permute.xlu1 %2487 }
 0x15b   :  { %1004 = vst.msk [vmem:[#allocation2 + $0x108] sm:$0xff] %vm992_vm9, %v967_v13 }
 0x15c   :  { %2520 = vst.msk [vmem:[#allocation2 + $0x2f0] sm:$0xff] %vm922_vm8, %v2488_v62  ;;  %2398 = vrot.lane.b32.xlu0 %v7069_v37, %s5380_s20 }
 0x15d   :  { %2262 = vrot.lane.b32.xlu1 %v9230_v23, %s5381_s21 }
 0x15e   :  { %v2579_v38 = vpop.permute.xlu0 %2578  ;;  %v2216_v61 = vpop.permute.xlu1 %2215 }
 0x15f   :  { %v2689_v33 = vld [vmem:[#allocation2 + $0x110] sm:$0xff]  ;;  %2611 = vst.msk [vmem:[#allocation2 + $0x2f0] sm:$0xff] %vm992_vm9, %v2579_v38 }
 0x160   :  { %2248 = vst.msk [vmem:[#allocation2 + $0x2e8] sm:$0xff] %vm922_vm8, %v2216_v61  ;;  %3118 = vmatprep.mubr.bf16.mxu0 %v2689_v33  ;;  %2467 = vrot.lane.b32.xlu0 %v7082_v2, %s5379_s15  ;;  %v2684_v33 = vld [vmem:[#allocation2 + $0xe8] sm:$0xff] }
 0x161   :  { %1955 = vrot.lane.b32.xlu1 %v7019_v56, %s5380_s20 }
 0x162   :  { %v1104_v51 = vpop.permute.xlu0 %1103  ;;  %v2688_v21 = vld [vmem:[#allocation2 + $0x108] sm:$0xff]  ;;  %v2285_v6 = vpop.permute.xlu1 %2284 }
 0x163   :  { %1139 = vst.msk [vmem:[#allocation2 + $0x128] sm:$0xff] %vm678_vm7, %v1104_v51  ;;  %3119 = vmatmul.mubr.bf16.gmra.mrb[44].mxu0 %v2688_v21  ;;  %v2687_v21 = vld [vmem:[#allocation2 + $0x100] sm:$0xff] }
 0x164   :  { %2317 = vst.msk [vmem:[#allocation2 + $0x2e8] sm:$0xff] %vm992_vm9, %v2285_v6  ;;  %2558 = vrot.lane.b32.xlu0 %v7097_v41, %s5381_s21 }
 0x165   :  { %2195 = vrot.lane.b32.xlu1 %v7021_v18, %s5379_s15 }
 0x166   :  { %v1173_v46 = vpop.permute.xlu0 %1172  ;;  %v2749_v49 = vld [vmem:[#allocation2 + $0x2f0] sm:$0xff]  ;;  %v655_v11 = vpop.permute.xlu1 %654 }
 0x167   :  { %1208 = vst.msk [vmem:[#allocation2 + $0x128] sm:$0xff] %vm922_vm8, %v1173_v46  ;;  %v7362_v56 = vpop.f32.mrb[0].mxu0  ;;  %3278 = vmatprep.mubr.bf16.mxu1 %v2749_v49 }
 0x168   :  { %691 = vst.msk [vmem:[#allocation2 + $0x120] sm:$0xff] %vm678_vm7, %v655_v11  ;;  %2400 = vrot.lane.b32.xlu0 %v7118_v47, %s5380_s20  ;;  %v3034_v1 = vpop.f32.mrb[1].mxu0 }
 0x169   :  { %2264 = vrot.lane.b32.xlu1 %v7025_v19, %s5381_s21  ;;  %v7369_v36 = vpop.f32.mrb[2].mxu0 }
 0x16a   :  { %v1264_v18 = vpop.permute.xlu0 %1263  ;;  %v3037_v54 = vpop.f32.mrb[3].mxu0 }
 0x16b   :  { %v899_v5 = vpop.permute.xlu1 %898  ;;  %v2748_v27 = vld [vmem:[#allocation2 + $0x2e8] sm:$0xff]  ;;  %1299 = vst.msk [vmem:[#allocation2 + $0x128] sm:$0xff] %vm992_vm9, %v1264_v18 }
 0x16c   :  { %935 = vst.msk [vmem:[#allocation2 + $0x120] sm:$0xff] %vm922_vm8, %v899_v5  ;;  %3279 = vmatmul.mubr.bf16.gmra.mrb[24].mxu1 %v2748_v27  ;;  %2469 = vrot.lane.b32.xlu0 %v7131_v35, %s5379_s15 }
 0x16d   :  { %1957 = vrot.lane.b32.xlu1 %v7048_v48, %s5380_s20  ;;  %5129 = vmatprep.mubr.msk.bf16.mxu1 %vm178_vm3, %v2657_v25  ;;  %v2690_v25 = vld [vmem:[#allocation2 + $0x118] sm:$0xff] }
 0x16e   :  { %v1106_v19 = vpop.permute.xlu0 %1105 }
 0x16f   :  { %v969_v30 = vpop.permute.xlu1 %968  ;;  %1140 = vst.msk [vmem:[#allocation2 + $0x140] sm:$0xff] %vm678_vm7, %v1106_v19  ;;  %v2693_v19 = vld [vmem:[#allocation2 + $0x130] sm:$0xff] }
 0x170   :  { %1005 = vst.msk [vmem:[#allocation2 + $0x120] sm:$0xff] %vm992_vm9, %v969_v30  ;;  %2560 = vrot.lane.b32.xlu0 %v7146_v42, %s5381_s21 }
 0x171   :  { %2197 = vrot.lane.b32.xlu1 %v7069_v37, %s5379_s15 }
 0x172   :  { %v1175_v16 = vpop.permute.xlu0 %1174  ;;  %v2692_v7 = vld [vmem:[#allocation2 + $0x128] sm:$0xff]  ;;  %v7384_v48 = vpop.f32.mrb[4].mxu0 }
 0x173   :  { %v657_v45 = vpop.permute.xlu1 %656  ;;  %1209 = vst.msk [vmem:[#allocation2 + $0x140] sm:$0xff] %vm922_vm8, %v1175_v16  ;;  %3126 = vmatprep.mubr.bf16.mxu0 %v2692_v7  ;;  %v3042_v31 = vpop.f32.mrb[5].mxu0  ;;  %v2696_v7 = vld [vmem:[#allocation2 + $0x148] sm:$0xff] }
 0x174   :  { %692 = vst.msk [vmem:[#allocation2 + $0x138] sm:$0xff] %vm678_vm7, %v657_v45  ;;  %5130 = vmatmul.mubr.msk.bf16.vlgmr.msra.gmra.mrb[28].mxu1 %vm178_vm3, %v2660_v3  ;;  %2402 = vrot.lane.b32.xlu0 %v7159_v57, %s5380_s20  ;;  %v7393_v37 = vpop.f32.mrb[6].mxu0 }
 0x175   :  { %2266 = vrot.lane.b32.xlu1 %v7082_v2, %s5381_s21  ;;  %5133 = vmatprep.mubr.msk.bf16.mxu1 %vm178_vm3, %v2663_v29  ;;  %v3045_v40 = vpop.f32.mrb[7].mxu0  ;;  %v2666_v2 = vld [vmem:[#allocation2 + $0x58] sm:$0xff] }
 0x176   :  { %v1266_v44 = vpop.permute.xlu0 %1265  ;;  %v2699_v40 = vld [vmem:[#allocation2 + $0x160] sm:$0xff] }
 0x177   :  { %v901_v39 = vpop.permute.xlu1 %900  ;;  %1300 = vst.msk [vmem:[#allocation2 + $0x140] sm:$0xff] %vm992_vm9, %v1266_v44  ;;  %v2691_v0 = vld [vmem:[#allocation2 + $0x120] sm:$0xff] }
 0x178   :  { %936 = vst.msk [vmem:[#allocation2 + $0x138] sm:$0xff] %vm922_vm8, %v901_v39  ;;  %2471 = vrot.lane.b32.xlu0 %v9231_v22, %s5379_s15  ;;  %3127 = vmatmul.mubr.bf16.gmra.mrb[48].mxu0 %v2691_v0 }
 0x179   :  { %1959 = vrot.lane.b32.xlu1 %v7097_v41, %s5380_s20 }
 0x17a   :  { %v1108_v26 = vpop.permute.xlu0 %1107 }
 0x17b   :  { %v971_v20 = vpop.permute.xlu1 %970  ;;  %1141 = vst.msk [vmem:[#allocation2 + $0x158] sm:$0xff] %vm678_vm7, %v1108_v26 }
 0x17c   :  { %1006 = vst.msk [vmem:[#allocation2 + $0x138] sm:$0xff] %vm992_vm9, %v971_v20  ;;  %5134 = vmatmul.mubr.msk.bf16.gmra.mrb[32].mxu1 %vm178_vm3, %v2666_v2  ;;  %2562 = vrot.lane.b32.xlu0 %v9232_v8, %s5381_s21  ;;  %v2702_v20 = vld [vmem:[#allocation2 + $0x178] sm:$0xff] }
 0x17d   :  { %2199 = vrot.lane.b32.xlu1 %v7118_v47, %s5379_s15  ;;  %5137 = vmatprep.mubr.msk.bf16.mxu1 %vm178_vm3, %v2669_v53 }
 0x17e   :  { %v1177_v43 = vpop.permute.xlu0 %1176  ;;  %v2695_v41 = vld [vmem:[#allocation2 + $0x140] sm:$0xff]  ;;  %v7410_v58 = vpop.f32.mrb[8].mxu0 }
 0x17f   :  { %v659_v32 = vpop.permute.xlu1 %658  ;;  %1210 = vst.msk [vmem:[#allocation2 + $0x158] sm:$0xff] %vm922_vm8, %v1177_v43  ;;  %3134 = vmatprep.mubr.bf16.mxu0 %v2695_v41  ;;  %v3050_v52 = vpop.f32.mrb[9].mxu0  ;;  %v2705_v41 = vld [vmem:[#allocation2 + $0x190] sm:$0xff] }
 0x180   :  { %693 = vst.msk [vmem:[#allocation2 + $0x150] sm:$0xff] %vm678_vm7, %v659_v32  ;;  %2404 = vrot.lane.b32.xlu0 %v9233_v12, %s5380_s20  ;;  %v7418_v47 = vpop.f32.mrb[10].mxu0 }
 0x181   :  { %2268 = vrot.lane.b32.xlu1 %v7131_v35, %s5381_s21  ;;  %v3053_v14 = vpop.f32.mrb[11].mxu0 }
 0x182   :  { %v1268_v34 = vpop.permute.xlu0 %1267 }
 0x183   :  { %v903_v23 = vpop.permute.xlu1 %902  ;;  %1301 = vst.msk [vmem:[#allocation2 + $0x158] sm:$0xff] %vm992_vm9, %v1268_v34  ;;  %v2694_v24 = vld [vmem:[#allocation2 + $0x138] sm:$0xff] }
 0x184   :  { %937 = vst.msk [vmem:[#allocation2 + $0x150] sm:$0xff] %vm922_vm8, %v903_v23  ;;  %5138 = vmatmul.mubr.msk.bf16.gmra.mrb[36].mxu1 %vm178_vm3, %v2672_v63  ;;  %2473 = vrot.lane.b32.xlu0 %v9234_v60, %s5379_s15 }
 0x185   :  { %1961 = vrot.lane.b32.xlu1 %v7146_v42, %s5380_s20  ;;  %3135 = vmatmul.mubr.bf16.gmra.mrb[52].mxu0 %v2694_v24  ;;  %v2708_v24 = vld [vmem:[#allocation2 + $0x1a8] sm:$0xff] }
 0x186   :  { %v1110_v35 = vpop.permute.xlu0 %1109  ;;  %5141 = vmatprep.mubr.msk.bf16.mxu1 %vm178_vm3, %v2675_v9 }
 0x187   :  { %v973_v55 = vpop.permute.xlu1 %972  ;;  %1142 = vst.msk [vmem:[#allocation2 + $0x170] sm:$0xff] %vm678_vm7, %v1110_v35  ;;  %v2711_v35 = vld [vmem:[#allocation2 + $0x1c0] sm:$0xff] }
 0x188   :  { %1007 = vst.msk [vmem:[#allocation2 + $0x150] sm:$0xff] %vm992_vm9, %v973_v55  ;;  %2564 = vrot.lane.b32.xlu0 %v9235_v10, %s5381_s21 }
 0x189   :  { %2201 = vrot.lane.b32.xlu1 %v7159_v57, %s5379_s15 }
 0x18a   :  { %v1179_v4 = vpop.permute.xlu0 %1178  ;;  %v2698_v28 = vld [vmem:[#allocation2 + $0x158] sm:$0xff]  ;;  %v7434_v17 = vpop.f32.mrb[12].mxu0 }
 0x18b   :  { %v661_v42 = vpop.permute.xlu1 %660  ;;  %1211 = vst.msk [vmem:[#allocation2 + $0x170] sm:$0xff] %vm922_vm8, %v1179_v4  ;;  %3142 = vmatprep.mubr.bf16.mxu0 %v2698_v28  ;;  %v3058_v15 = vpop.f32.mrb[13].mxu0 }
 0x18c   :  { %694 = vst.msk [vmem:[#allocation2 + $0x168] sm:$0xff] %vm678_vm7, %v661_v42  ;;  %5142 = vmatmul.mubr.msk.bf16.gmra.mrb[40].mxu1 %vm178_vm3, %v2678_v59  ;;  %v7441_v13 = vpop.f32.mrb[14].mxu0  ;;  %v2717_v15 = vld [vmem:[#allocation2 + $0x1f0] sm:$0xff] }
 0x18d   :  { %2270 = vrot.lane.b32.xlu1 %v9231_v22, %s5381_s21  ;;  %5145 = vmatprep.mubr.msk.bf16.mxu1 %vm178_vm3, %v2681_v50  ;;  %v3061_v57 = vpop.f32.mrb[15].mxu0  ;;  %v2714_v50 = vld [vmem:[#allocation2 + $0x1d8] sm:$0xff] }
 0x18e   :  { %v1270_v62 = vpop.permute.xlu0 %1269 }
 0x18f   :  { %v905_v38 = vpop.permute.xlu1 %904  ;;  %1302 = vst.msk [vmem:[#allocation2 + $0x170] sm:$0xff] %vm992_vm9, %v1270_v62  ;;  %v2697_v61 = vld [vmem:[#allocation2 + $0x150] sm:$0xff] }
 0x190   :  { %938 = vst.msk [vmem:[#allocation2 + $0x168] sm:$0xff] %vm922_vm8, %v905_v38  ;;  %3143 = vmatmul.mubr.bf16.gmra.mrb[56].mxu0 %v2697_v61 }
 0x192   :  { %v2389_v51 = vpop.permute.xlu0 %2388 }
 0x193   :  { %v975_v6 = vpop.permute.xlu1 %974  ;;  %2436 = vst.msk [vmem:[#allocation2 + $0x188] sm:$0xff] %vm678_vm7, %v2389_v51 }
 0x194   :  { %1008 = vst.msk [vmem:[#allocation2 + $0x168] sm:$0xff] %vm992_vm9, %v975_v6  ;;  %5146 = vmatmul.mubr.msk.bf16.gmra.mrb[44].mxu1 %vm178_vm3, %v2684_v33  ;;  %v2720_v6 = vld [vmem:[#allocation2 + $0x208] sm:$0xff] }
 0x195   :  { %5149 = vmatprep.mubr.msk.bf16.mxu1 %vm178_vm3, %v2687_v21 }
 0x196   :  { %v2458_v46 = vpop.permute.xlu0 %2457  ;;  %v2701_v49 = vld [vmem:[#allocation2 + $0x170] sm:$0xff]  ;;  %v7450_v1 = vpop.f32.mrb[16].mxu0 }
 0x197   :  { %v1946_v11 = vpop.permute.xlu1 %1945  ;;  %2505 = vst.msk [vmem:[#allocation2 + $0x188] sm:$0xff] %vm922_vm8, %v2458_v46  ;;  %3150 = vmatprep.mubr.bf16.mxu0 %v2701_v49  ;;  %v3066_v18 = vpop.f32.mrb[17].mxu0 }
 0x198   :  { %1993 = vst.msk [vmem:[#allocation2 + $0x180] sm:$0xff] %vm678_vm7, %v1946_v11  ;;  %v7454_v54 = vpop.f32.mrb[18].mxu0  ;;  %v2723_v11 = vld [vmem:[#allocation2 + $0x220] sm:$0xff] }
 0x199   :  { %v3069_v5 = vpop.f32.mrb[19].mxu0 }
 0x19a   :  { %v2549_v27 = vpop.permute.xlu0 %2548 }
 0x19b   :  { %v2186_v30 = vpop.permute.xlu1 %2185  ;;  %2596 = vst.msk [vmem:[#allocation2 + $0x188] sm:$0xff] %vm992_vm9, %v2549_v27  ;;  %v2700_v3 = vld [vmem:[#allocation2 + $0x168] sm:$0xff] }
 0x19c   :  { %2233 = vst.msk [vmem:[#allocation2 + $0x180] sm:$0xff] %vm922_vm8, %v2186_v30  ;;  %5150 = vmatmul.mubr.msk.bf16.gmra.mrb[48].mxu1 %vm178_vm3, %v2690_v25  ;;  %3151 = vmatmul.mubr.bf16.gmra.mrb[60].mxu0 %v2700_v3 }
 0x19d   :  { %5153 = vmatprep.mubr.msk.bf16.mxu1 %vm178_vm3, %v2693_v19 }
 0x19e   :  { %v2391_v16 = vpop.permute.xlu0 %2390 }
 0x19f   :  { %v2255_v29 = vpop.permute.xlu1 %2254  ;;  %2437 = vst.msk [vmem:[#allocation2 + $0x1a0] sm:$0xff] %vm678_vm7, %v2391_v16  ;;  %v2726_v16 = vld [vmem:[#allocation2 + $0x238] sm:$0xff] }
 0x1a0   :  { %2302 = vst.msk [vmem:[#allocation2 + $0x180] sm:$0xff] %vm992_vm9, %v2255_v29 }
 0x1a2   :  { %v2460_v45 = vpop.permute.xlu0 %2459  ;;  %v2704_v31 = vld [vmem:[#allocation2 + $0x188] sm:$0xff] }
 0x1a3   :  { %v1948_v44 = vpop.permute.xlu1 %1947  ;;  %2506 = vst.msk [vmem:[#allocation2 + $0x1a0] sm:$0xff] %vm922_vm8, %v2460_v45  ;;  %3158 = vmatprep.mubr.bf16.mxu0 %v2704_v31  ;;  %v2729_v45 = vld [vmem:[#allocation2 + $0x250] sm:$0xff] }
 0x1a4   :  { %1994 = vst.msk [vmem:[#allocation2 + $0x198] sm:$0xff] %vm678_vm7, %v1948_v44  ;;  %5154 = vmatmul.mubr.msk.bf16.gmra.mrb[52].mxu1 %vm178_vm3, %v2696_v7 }
 0x1a5   :  { %5157 = vmatprep.mubr.msk.bf16.mxu1 %vm178_vm3, %v2699_v40  ;;  %v7466_v0 = vpop.f32.mrb[20].mxu0 }
 0x1a6   :  { %v2551_v39 = vpop.permute.xlu0 %2550  ;;  %v3074_v2 = vpop.f32.mrb[21].mxu0 }
 0x1a7   :  { %v2188_v22 = vpop.permute.xlu1 %2187  ;;  %2597 = vst.msk [vmem:[#allocation2 + $0x1a0] sm:$0xff] %vm992_vm9, %v2551_v39  ;;  %v2703_v26 = vld [vmem:[#allocation2 + $0x180] sm:$0xff]  ;;  %v7470_v53 = vpop.f32.mrb[22].mxu0 }
 0x1a8   :  { %2234 = vst.msk [vmem:[#allocation2 + $0x198] sm:$0xff] %vm922_vm8, %v2188_v22  ;;  %3159 = vmatmul.mubr.bf16.gmra.mrb[64].mxu0 %v2703_v26  ;;  %v3077_v8 = vpop.f32.mrb[23].mxu0  ;;  %v2732_v22 = vld [vmem:[#allocation2 + $0x268] sm:$0xff] }
 0x1aa   :  { %v2393_v43 = vpop.permute.xlu0 %2392 }
 0x1ab   :  { %v2257_v32 = vpop.permute.xlu1 %2256  ;;  %2438 = vst.msk [vmem:[#allocation2 + $0x1b8] sm:$0xff] %vm678_vm7, %v2393_v43 }
 0x1ac   :  { %2303 = vst.msk [vmem:[#allocation2 + $0x198] sm:$0xff] %vm992_vm9, %v2257_v32  ;;  %5158 = vmatmul.mubr.msk.bf16.gmra.mrb[56].mxu1 %vm178_vm3, %v2702_v20  ;;  %v2735_v20 = vld [vmem:[#allocation2 + $0x280] sm:$0xff] }
 0x1ad   :  { %5161 = vmatprep.mubr.msk.bf16.mxu1 %vm178_vm3, %v2705_v41 }
 0x1ae   :  { %v2462_v52 = vpop.permute.xlu0 %2461  ;;  %v2707_v12 = vld [vmem:[#allocation2 + $0x1a0] sm:$0xff]  ;;  %v7476_v14 = vpop.f32.mrb[0].mxu1 }
 0x1af   :  { %v1950_v63 = vpop.permute.xlu1 %1949  ;;  %2507 = vst.msk [vmem:[#allocation2 + $0x1b8] sm:$0xff] %vm922_vm8, %v2462_v52  ;;  %3166 = vmatprep.mubr.bf16.mxu0 %v2707_v12  ;;  %v3234_v34 = vpop.f32.mrb[1].mxu1 }
 0x1b0   :  { %1995 = vst.msk [vmem:[#allocation2 + $0x1b0] sm:$0xff] %vm678_vm7, %v1950_v63  ;;  %v7480_v23 = vpop.f32.mrb[2].mxu1  ;;  %v2738_v34 = vld [vmem:[#allocation2 + $0x298] sm:$0xff] }
 0x1b1   :  { %v3237_v9 = vpop.f32.mrb[3].mxu1 }
 0x1b2   :  { %v2553_v60 = vpop.permute.xlu0 %2552 }
 0x1b3   :  { %v2190_v55 = vpop.permute.xlu1 %2189  ;;  %v2706_v10 = vld [vmem:[#allocation2 + $0x198] sm:$0xff]  ;;  %2598 = vst.msk [vmem:[#allocation2 + $0x1b8] sm:$0xff] %vm992_vm9, %v2553_v60  ;;  %v2741_v60 = vld [vmem:[#allocation2 + $0x2b0] sm:$0xff] }
 0x1b4   :  { %2235 = vst.msk [vmem:[#allocation2 + $0x1b0] sm:$0xff] %vm922_vm8, %v2190_v55  ;;  %3167 = vmatmul.mubr.bf16.gmra.mrb[68].mxu0 %v2706_v10  ;;  %5162 = vmatmul.mubr.msk.bf16.gmra.mrb[60].mxu1 %vm178_vm3, %v2708_v24 }
 0x1b5   :  { %5165 = vmatprep.mubr.msk.bf16.mxu1 %vm178_vm3, %v2711_v35 }
 0x1b6   :  { %v2395_v59 = vpop.permute.xlu0 %2394 }
 0x1b7   :  { %v2259_v4 = vpop.permute.xlu1 %2258  ;;  %2439 = vst.msk [vmem:[#allocation2 + $0x1d0] sm:$0xff] %vm678_vm7, %v2395_v59 }
 0x1b8   :  { %2304 = vst.msk [vmem:[#allocation2 + $0x1b0] sm:$0xff] %vm992_vm9, %v2259_v4 }
 0x1ba   :  { %v2464_v28 = vpop.permute.xlu0 %2463  ;;  %v2710_v42 = vld [vmem:[#allocation2 + $0x1b8] sm:$0xff] }
 0x1bb   :  { %v1952_v57 = vpop.permute.xlu1 %1951  ;;  %2508 = vst.msk [vmem:[#allocation2 + $0x1d0] sm:$0xff] %vm922_vm8, %v2464_v28  ;;  %3174 = vmatprep.mubr.bf16.mxu0 %v2710_v42  ;;  %v2744_v42 = vld [vmem:[#allocation2 + $0x2c8] sm:$0xff] }
 0x1bc   :  { %1996 = vst.msk [vmem:[#allocation2 + $0x1c8] sm:$0xff] %vm678_vm7, %v1952_v57  ;;  %5166 = vmatmul.mubr.msk.bf16.gmra.mrb[64].mxu1 %vm178_vm3, %v2714_v50 }
 0x1bd   :  { %5169 = vmatprep.mubr.msk.bf16.mxu1 %vm178_vm3, %v2717_v15  ;;  %v7492_v38 = vpop.f32.mrb[24].mxu0 }
 0x1be   :  { %v2555_v62 = vpop.permute.xlu0 %2554  ;;  %v3082_v51 = vpop.f32.mrb[25].mxu0 }
 0x1bf   :  { %v2192_v61 = vpop.permute.xlu1 %2191  ;;  %v2709_v33 = vld [vmem:[#allocation2 + $0x1b0] sm:$0xff]  ;;  %2599 = vst.msk [vmem:[#allocation2 + $0x1d0] sm:$0xff] %vm992_vm9, %v2555_v62  ;;  %v7496_v21 = vpop.f32.mrb[26].mxu0  ;;  %v2747_v62 = vld [vmem:[#allocation2 + $0x2e0] sm:$0xff] }
 0x1c0   :  { %2236 = vst.msk [vmem:[#allocation2 + $0x1c8] sm:$0xff] %vm922_vm8, %v2192_v61  ;;  %3175 = vmatmul.mubr.bf16.gmra.mrb[72].mxu0 %v2709_v33  ;;  %v3085_v46 = vpop.f32.mrb[27].mxu0 }
 0x1c1   :  { %v2750_v46 = vld [vmem:[#allocation2 + $0x2f8] sm:$0xff] }
 0x1c2   :  { %v2397_v49 = vpop.permute.xlu0 %2396 }
 0x1c3   :  { %v2261_v18 = vpop.permute.xlu1 %2260  ;;  %2440 = vst.msk [vmem:[#allocation2 + $0x1e8] sm:$0xff] %vm678_vm7, %v2397_v49 }
 0x1c4   :  { %2305 = vst.msk [vmem:[#allocation2 + $0x1c8] sm:$0xff] %vm992_vm9, %v2261_v18  ;;  %5170 = vmatmul.mubr.msk.bf16.gmra.mrb[68].mxu1 %vm178_vm3, %v2720_v6 }
 0x1c5   :  { %5173 = vmatprep.mubr.msk.bf16.mxu1 %vm178_vm3, %v2723_v11 }
 0x1c6   :  { %v2466_v25 = vpop.permute.xlu0 %2465  ;;  %v2713_v5 = vld [vmem:[#allocation2 + $0x1d0] sm:$0xff]  ;;  %v7502_v19 = vpop.f32.mrb[4].mxu1 }
 0x1c7   :  { %v1954_v27 = vpop.permute.xlu1 %1953  ;;  %2509 = vst.msk [vmem:[#allocation2 + $0x1e8] sm:$0xff] %vm922_vm8, %v2466_v25  ;;  %3182 = vmatprep.mubr.bf16.mxu0 %v2713_v5  ;;  %v3242_v30 = vpop.f32.mrb[5].mxu1 }
 0x1c8   :  { %1997 = vst.msk [vmem:[#allocation2 + $0x1e0] sm:$0xff] %vm678_vm7, %v1954_v27  ;;  %v7506_v3 = vpop.f32.mrb[6].mxu1 }
 0x1c9   :  { %v3245_v29 = vpop.f32.mrb[7].mxu1 }
 0x1ca   :  { %v2557_v7 = vpop.permute.xlu0 %2556 }
 0x1cb   :  { %v2194_v31 = vpop.permute.xlu1 %2193  ;;  %v2712_v40 = vld [vmem:[#allocation2 + $0x1c8] sm:$0xff]  ;;  %2600 = vst.msk [vmem:[#allocation2 + $0x1e8] sm:$0xff] %vm992_vm9, %v2557_v7 }
 0x1cc   :  { %2237 = vst.msk [vmem:[#allocation2 + $0x1e0] sm:$0xff] %vm922_vm8, %v2194_v31  ;;  %3183 = vmatmul.mubr.bf16.gmra.mrb[76].mxu0 %v2712_v40  ;;  %5174 = vmatmul.mubr.msk.bf16.gmra.mrb[72].mxu1 %vm178_vm3, %v2726_v16 }
 0x1cd   :  { %5177 = vmatprep.mubr.msk.bf16.mxu1 %vm178_vm3, %v2729_v45 }
 0x1ce   :  { %v2399_v44 = vpop.permute.xlu0 %2398 }
 0x1cf   :  { %v2263_v39 = vpop.permute.xlu1 %2262  ;;  %2441 = vst.msk [vmem:[#allocation2 + $0x200] sm:$0xff] %vm678_vm7, %v2399_v44 }
 0x1d0   :  { %2306 = vst.msk [vmem:[#allocation2 + $0x1e0] sm:$0xff] %vm992_vm9, %v2263_v39 }
 0x1d2   :  { %v2468_v2 = vpop.permute.xlu0 %2467  ;;  %v2716_v26 = vld [vmem:[#allocation2 + $0x1e8] sm:$0xff] }
 0x1d3   :  { %v1956_v8 = vpop.permute.xlu1 %1955  ;;  %2510 = vst.msk [vmem:[#allocation2 + $0x200] sm:$0xff] %vm922_vm8, %v2468_v2  ;;  %3190 = vmatprep.mubr.bf16.mxu0 %v2716_v26 }
 0x1d4   :  { %1998 = vst.msk [vmem:[#allocation2 + $0x1f8] sm:$0xff] %vm678_vm7, %v1956_v8  ;;  %5178 = vmatmul.mubr.msk.bf16.gmra.mrb[76].mxu1 %vm178_vm3, %v2732_v22 }
 0x1d5   :  { %5181 = vmatprep.mubr.msk.bf16.mxu1 %vm178_vm3, %v2735_v20  ;;  %v7518_v41 = vpop.f32.mrb[28].mxu0 }
 0x1d6   :  { %v2559_v43 = vpop.permute.xlu0 %2558  ;;  %v3090_v12 = vpop.f32.mrb[29].mxu0 }
 0x1d7   :  { %v2196_v32 = vpop.permute.xlu1 %2195  ;;  %v2715_v52 = vld [vmem:[#allocation2 + $0x1e0] sm:$0xff]  ;;  %2601 = vst.msk [vmem:[#allocation2 + $0x200] sm:$0xff] %vm992_vm9, %v2559_v43  ;;  %v7522_v63 = vpop.f32.mrb[30].mxu0 }
 0x1d8   :  { %2238 = vst.msk [vmem:[#allocation2 + $0x1f8] sm:$0xff] %vm922_vm8, %v2196_v32  ;;  %3191 = vmatmul.mubr.bf16.gmra.mrb[80].mxu0 %v2715_v52  ;;  %v3093_v24 = vpop.f32.mrb[31].mxu0 }
 0x1da   :  { %v2401_v9 = vpop.permute.xlu0 %2400 }
 0x1db   :  { %v2265_v35 = vpop.permute.xlu1 %2264  ;;  %2442 = vst.msk [vmem:[#allocation2 + $0x218] sm:$0xff] %vm678_vm7, %v2401_v9 }
 0x1dc   :  { %2307 = vst.msk [vmem:[#allocation2 + $0x1f8] sm:$0xff] %vm992_vm9, %v2265_v35  ;;  %5182 = vmatmul.mubr.msk.bf16.gmra.mrb[80].mxu1 %vm178_vm3, %v2738_v34 }
 0x1dd   :  { %5185 = vmatprep.mubr.msk.bf16.mxu1 %vm178_vm3, %v2741_v60 }
 0x1de   :  { %v2470_v55 = vpop.permute.xlu0 %2469  ;;  %v2719_v10 = vld [vmem:[#allocation2 + $0x200] sm:$0xff]  ;;  %v7528_v4 = vpop.f32.mrb[8].mxu1 }
 0x1df   :  { %v1958_v59 = vpop.permute.xlu1 %1957  ;;  %2511 = vst.msk [vmem:[#allocation2 + $0x218] sm:$0xff] %vm922_vm8, %v2470_v55  ;;  %3198 = vmatprep.mubr.bf16.mxu0 %v2719_v10  ;;  %v3250_v50 = vpop.f32.mrb[9].mxu1 }
 0x1e0   :  { %1999 = vst.msk [vmem:[#allocation2 + $0x210] sm:$0xff] %vm678_vm7, %v1958_v59  ;;  %v7532_v28 = vpop.f32.mrb[10].mxu1 }
 0x1e1   :  { %v3253_v15 = vpop.f32.mrb[11].mxu1 }
 0x1e2   :  { %v2561_v57 = vpop.permute.xlu0 %2560 }
 0x1e3   :  { %v2198_v61 = vpop.permute.xlu1 %2197  ;;  %v2718_v33 = vld [vmem:[#allocation2 + $0x1f8] sm:$0xff]  ;;  %2602 = vst.msk [vmem:[#allocation2 + $0x218] sm:$0xff] %vm992_vm9, %v2561_v57 }
 0x1e4   :  { %2239 = vst.msk [vmem:[#allocation2 + $0x210] sm:$0xff] %vm922_vm8, %v2198_v61  ;;  %3199 = vmatmul.mubr.bf16.gmra.mrb[84].mxu0 %v2718_v33  ;;  %5186 = vmatmul.mubr.msk.bf16.gmra.mrb[84].mxu1 %vm178_vm3, %v2744_v42 }
 0x1e5   :  { %5189 = vmatprep.mubr.msk.bf16.mxu1 %vm178_vm3, %v2747_v62 }
 0x1e6   :  { %v2403_v51 = vpop.permute.xlu0 %2402 }
 0x1e7   :  { %v2267_v6 = vpop.permute.xlu1 %2266  ;;  %2443 = vst.msk [vmem:[#allocation2 + $0x230] sm:$0xff] %vm678_vm7, %v2403_v51 }
 0x1e8   :  { %2308 = vst.msk [vmem:[#allocation2 + $0x210] sm:$0xff] %vm992_vm9, %v2267_v6 }
 0x1ea   :  { %v2472_v49 = vpop.permute.xlu0 %2471  ;;  %v2722_v11 = vld [vmem:[#allocation2 + $0x218] sm:$0xff] }
 0x1eb   :  { %v1960_v18 = vpop.permute.xlu1 %1959  ;;  %2512 = vst.msk [vmem:[#allocation2 + $0x230] sm:$0xff] %vm922_vm8, %v2472_v49  ;;  %3206 = vmatprep.mubr.bf16.mxu0 %v2722_v11 }
 0x1ec   :  { %2000 = vst.msk [vmem:[#allocation2 + $0x228] sm:$0xff] %vm678_vm7, %v1960_v18  ;;  %5190 = vmatmul.mubr.msk.bf16.gmra.mrb[88].mxu1 %vm178_vm3, %v2750_v46 }
 0x1ed   :  { %v7543_v5 = vpop.f32.mrb[32].mxu0 }
 0x1ee   :  { %v2563_v25 = vpop.permute.xlu0 %2562  ;;  %v3098_v16 = vpop.f32.mrb[33].mxu0 }
 0x1ef   :  { %v2200_v27 = vpop.permute.xlu1 %2199  ;;  %v2721_v30 = vld [vmem:[#allocation2 + $0x210] sm:$0xff]  ;;  %2603 = vst.msk [vmem:[#allocation2 + $0x230] sm:$0xff] %vm992_vm9, %v2563_v25  ;;  %v7547_v29 = vpop.f32.mrb[34].mxu0 }
 0x1f0   :  { %2240 = vst.msk [vmem:[#allocation2 + $0x228] sm:$0xff] %vm922_vm8, %v2200_v27  ;;  %3207 = vmatmul.mubr.bf16.gmra.mrb[88].mxu0 %v2721_v30  ;;  %v3101_v7 = vpop.f32.mrb[35].mxu0 }
 0x1f1   :  { %v7587_v7 = vld [vmem:[%s9111_s2] ss:$0 sm:$0xff] }
 0x1f2   :  { %v2405_v45 = vpop.permute.xlu0 %2404 }
 0x1f3   :  { %v2269_v31 = vpop.permute.xlu1 %2268  ;;  %2444 = vst.msk [vmem:[#allocation2 + $0x248] sm:$0xff] %vm678_vm7, %v2405_v45  ;;  %v3041_v45 = vadd.f32 %v7587_v7, %v7384_v48 }
 0x1f4   :  { %2309 = vst.msk [vmem:[#allocation2 + $0x228] sm:$0xff] %vm992_vm9, %v2269_v31  ;;  %v3033_v31 = vadd.f32 %v7587_v7, %v7362_v56 }
 0x1f6   :  { %v2474_v40 = vpop.permute.xlu0 %2473  ;;  %v2725_v44 = vld [vmem:[#allocation2 + $0x230] sm:$0xff] }
 0x1f7   :  { %v1962_v39 = vpop.permute.xlu1 %1961  ;;  %v7551_v22 = vpop.f32.mrb[12].mxu1  ;;  %2513 = vst.msk [vmem:[#allocation2 + $0x248] sm:$0xff] %vm922_vm8, %v2474_v40  ;;  %3214 = vmatprep.mubr.bf16.mxu0 %v2725_v44  ;;  %v3044_v44 = vadd.f32 %v7587_v7, %v7393_v37 }
 0x1f8   :  { %2001 = vst.msk [vmem:[#allocation2 + $0x240] sm:$0xff] %vm678_vm7, %v1962_v39  ;;  %v3258_v2 = vpop.f32.mrb[13].mxu1 }
 0x1f9   :  { %v7555_v26 = vpop.f32.mrb[14].mxu1 }
 0x1fa   :  { %v3261_v20 = vpop.f32.mrb[15].mxu1  ;;  %v2565_v8 = vpop.permute.xlu0 %2564 }
 0x1fb   :  { %v2202_v43 = vpop.permute.xlu1 %2201  ;;  %v2724_v32 = vld [vmem:[#allocation2 + $0x228] sm:$0xff]  ;;  %2604 = vst.msk [vmem:[#allocation2 + $0x248] sm:$0xff] %vm992_vm9, %v2565_v8  ;;  %v3036_v20 = vadd.f32 %v7587_v7, %v7369_v36  ;;  %v3057_v36 = vadd.f32 %v7587_v7, %v7434_v17 }
 0x1fc   :  { %2241 = vst.msk [vmem:[#allocation2 + $0x240] sm:$0xff] %vm922_vm8, %v2202_v43  ;;  %3215 = vmatmul.mubr.bf16.gmra.mrb[92].mxu0 %v2724_v32 }
 0x1ff   :  { %v2271_v52 = vpop.permute.xlu1 %2270 }
 0x200   :  { %2310 = vst.msk [vmem:[#allocation2 + $0x240] sm:$0xff] %vm992_vm9, %v2271_v52 }
 0x202   :  { %v2728_v12 = vld [vmem:[#allocation2 + $0x248] sm:$0xff] }
 0x203   :  { %3222 = vmatprep.mubr.bf16.mxu0 %v2728_v12 }
 0x206   :  { %v7560_v34 = vpop.f32.mrb[36].mxu0 }
 0x207   :  { %v2727_v24 = vld [vmem:[#allocation2 + $0x240] sm:$0xff]  ;;  %v3106_v9 = vpop.f32.mrb[37].mxu0 }
 0x208   :  { %3223 = vmatmul.mubr.bf16.gmra.mrb[96].mxu0 %v2727_v24  ;;  %v7562_v60 = vpop.f32.mrb[38].mxu0 }
 0x209   :  { %v3109_v35 = vpop.f32.mrb[39].mxu0 }
 0x20f   :  { %v7564_v55 = vpop.f32.mrb[16].mxu1 }
 0x210   :  { %v3266_v10 = vpop.f32.mrb[17].mxu1 }
 0x211   :  { %v7566_v59 = vpop.f32.mrb[18].mxu1 }
 0x212   :  { %v3269_v50 = vpop.f32.mrb[19].mxu1 }
 0x21e   :  { %v7568_v42 = vpop.f32.mrb[40].mxu0 }
 0x21f   :  { %v3114_v15 = vpop.f32.mrb[41].mxu0 }
 0x220   :  { %v7570_v57 = vpop.f32.mrb[42].mxu0  ;;  %v3049_v15 = vadd.f32 %v7587_v7, %v7410_v58 }
 0x221   :  { %v3117_v62 = vpop.f32.mrb[43].mxu0 }
 0x227   :  { %v7572_v61 = vpop.f32.mrb[20].mxu1 }
 0x228   :  { %v3274_v33 = vpop.f32.mrb[21].mxu1 }
 0x229   :  { %v7574_v51 = vpop.f32.mrb[22].mxu1  ;;  %v3060_v33 = vadd.f32 %v7587_v7, %v7441_v13 }
 0x22a   :  { %v3277_v6 = vpop.f32.mrb[23].mxu1 }
 0x236   :  { %v7576_v46 = vpop.f32.mrb[44].mxu0 }
 0x237   :  { %v3122_v49 = vpop.f32.mrb[45].mxu0 }
 0x238   :  { %v7578_v11 = vpop.f32.mrb[46].mxu0 }
 0x239   :  { %v3125_v18 = vpop.f32.mrb[47].mxu0 }
 0x23a   :  { %v3052_v18 = vadd.f32 %v7587_v7, %v7418_v47 }
 0x23f   :  { %v7580_v25 = vpop.f32.mrb[24].mxu1 }
 0x240   :  { %v3282_v27 = vpop.f32.mrb[25].mxu1 }
 0x241   :  { %v7582_v30 = vpop.f32.mrb[26].mxu1 }
 0x242   :  { %v3285_v16 = vpop.f32.mrb[27].mxu1 }
 0x247   :  { %v5131_v40 = vpop.f32.mrb[28].mxu1 }
 0x248   :  { %v3330_v39 = vadd.f32 %v5131_v40, %v3041_v45  ;;  %v3321_v2 = vpop.f32.mrb[29].mxu1 }
 0x249   :  { %v3322_v8 = vadd.f32 %v3321_v2, %v3033_v31  ;;  %v5132_v43 = vpop.f32.mrb[30].mxu1  ;;  %v3073_v2 = vadd.f32 %v7587_v7, %v7466_v0 }
 0x24a   :  { %v3578_v32 = vmax.f32 %v3330_v39, 0.0  ;;  %v3333_v52 = vadd.f32 %v5132_v43, %v3044_v44  ;;  %v3324_v12 = vpop.f32.mrb[31].mxu1 }
 0x24b   :  { %v3576_v24 = vmax.f32 %v3322_v8, 0.0  ;;  %v3325_v48 = vadd.f32 %v3324_v12, %v3036_v20  ;;  %v7597_v9 = vpop.f32.mrb[48].mxu0  ;;  %v3065_v20 = vadd.f32 %v7587_v7, %v7450_v1  ;;  %v3068_v1 = vadd.f32 %v7587_v7, %v7454_v54 }
 0x24c   :  { %3643 = vst.msk [vmem:[#allocation3 + $0x10] sm:$0xff] %vm3640_vm10, %v3578_v32  ;;  %v3579_v56 = vmax.f32 %v3333_v52, 0.0  ;;  %v3130_v35 = vpop.f32.mrb[49].mxu0  ;;  %v3076_v32 = vadd.f32 %v7587_v7, %v7470_v53 }
 0x24d   :  { %3641 = vst.msk [vmem:[#allocation3] sm:$0xff] %vm3640_vm10, %v3576_v24  ;;  %v3577_v37 = vmax.f32 %v3325_v48, 0.0  ;;  %v7601_v10 = vpop.f32.mrb[50].mxu0 }
 0x24e   :  { %3644 = vst.msk [vmem:[#allocation3 + $0x18] sm:$0xff] %vm3640_vm10, %v3579_v56  ;;  %v3133_v50 = vpop.f32.mrb[51].mxu0 }
 0x24f   :  { %3642 = vst.msk [vmem:[#allocation3 + $0x8] sm:$0xff] %vm3640_vm10, %v3577_v37  ;;  %v5135_v62 = vpop.f32.mrb[32].mxu1 }
 0x250   :  { %v3346_v6 = vadd.f32 %v5135_v62, %v3057_v36  ;;  %v3337_v49 = vpop.f32.mrb[33].mxu1 }
 0x251   :  { %v3338_v27 = vadd.f32 %v3337_v49, %v3049_v15  ;;  %v5136_v16 = vpop.f32.mrb[34].mxu1  ;;  %v3089_v49 = vadd.f32 %v7587_v7, %v7518_v41  ;;  %v3084_v41 = vadd.f32 %v7587_v7, %v7496_v21 }
 0x252   :  { %v3582_v17 = vmax.f32 %v3346_v6, 0.0  ;;  %v3349_v45 = vadd.f32 %v5136_v16, %v3060_v33  ;;  %v3340_v31 = vpop.f32.mrb[35].mxu1 }
 0x253   :  { %v3580_v40 = vmax.f32 %v3338_v27, 0.0  ;;  %v3341_v44 = vadd.f32 %v3340_v31, %v3052_v18  ;;  %v3707_v39 = vld [vmem:[#allocation3 + $0x10] sm:$0xff]  ;;  %v3081_v18 = vadd.f32 %v7587_v7, %v7492_v38 }
 0x254   :  { %3647 = vst.msk [vmem:[#allocation3 + $0x30] sm:$0xff] %vm3640_vm10, %v3582_v17  ;;  %v3583_v58 = vmax.f32 %v3349_v45, 0.0  ;;  %3773 = vrot.lane.b32.xlu0 %v3707_v39, %s5381_s21  ;;  %v7626_v43 = vld [vmem:[#allocation3] sm:$0xff]  ;;  %v3092_v17 = vadd.f32 %v7587_v7, %v7522_v63 }
 0x255   :  { %3645 = vst.msk [vmem:[#allocation3 + $0x20] sm:$0xff] %vm3640_vm10, %v3580_v40  ;;  %v3581_v13 = vmax.f32 %v3341_v44, 0.0  ;;  %v7638_v62 = vld [vmem:[#allocation3 + $0x18] sm:$0xff] }
 0x256   :  { %3648 = vst.msk [vmem:[#allocation3 + $0x38] sm:$0xff] %vm3640_vm10, %v3583_v58  ;;  %v7619_v47 = vld [vmem:[#allocation3 + $0x8] sm:$0xff] }
 0x257   :  { %3646 = vst.msk [vmem:[#allocation3 + $0x28] sm:$0xff] %vm3640_vm10, %v3581_v13  ;;  %v5139_v8 = vpop.f32.mrb[36].mxu1  ;;  %3771 = vrot.lane.b32.xlu1 %v7619_v47, %s5381_s21 }
 0x258   :  { %v3362_v52 = vadd.f32 %v5139_v8, %v3073_v2  ;;  %v3353_v0 = vpop.f32.mrb[37].mxu1  ;;  %3769 = vrot.lane.b32.xlu0 %v7626_v43, %s5381_s21  ;;  %v7632_v12 = vpop.f32.mrb[52].mxu0 }
 0x259   :  { %v3354_v24 = vadd.f32 %v3353_v0, %v3065_v20  ;;  %v5140_v48 = vpop.f32.mrb[38].mxu1  ;;  %v3138_v56 = vpop.f32.mrb[53].mxu0  ;;  %v3105_v0 = vadd.f32 %v7587_v7, %v7560_v34  ;;  %v3100_v34 = vadd.f32 %v7587_v7, %v7547_v29  ;;  %v3121_v29 = vadd.f32 %v7587_v7, %v7576_v46 }
 0x25a   :  { %v3586_v35 = vmax.f32 %v3362_v52, 0.0  ;;  %v3365_v37 = vadd.f32 %v5140_v48, %v3076_v32  ;;  %v3356_v36 = vpop.f32.mrb[39].mxu1  ;;  %v7636_v50 = vpop.f32.mrb[54].mxu0 }
 0x25b   :  { %v3584_v15 = vmax.f32 %v3354_v24, 0.0  ;;  %v3357_v53 = vadd.f32 %v3356_v36, %v3068_v1  ;;  %v3141_v33 = vpop.f32.mrb[55].mxu0  ;;  %v7650_v16 = vld [vmem:[#allocation3 + $0x30] sm:$0xff]  ;;  %v3097_v24 = vadd.f32 %v7587_v7, %v7543_v5 }
 0x25c   :  { %3651 = vst.msk [vmem:[#allocation3 + $0x50] sm:$0xff] %vm3640_vm10, %v3586_v35  ;;  %v3587_v6 = vmax.f32 %v3365_v37, 0.0  ;;  %3775 = vrot.lane.b32.xlu0 %v7638_v62, %s5381_s21  ;;  %v7658_v20 = vld [vmem:[#allocation3 + $0x20] sm:$0xff]  ;;  %v3108_v35 = vadd.f32 %v7587_v7, %v7562_v60 }
 0x25d   :  { %3649 = vst.msk [vmem:[#allocation3 + $0x40] sm:$0xff] %vm3640_vm10, %v3584_v15  ;;  %v3585_v54 = vmax.f32 %v3357_v53, 0.0  ;;  %v7674_v56 = vld [vmem:[#allocation3 + $0x38] sm:$0xff] }
 0x25e   :  { %3652 = vst.msk [vmem:[#allocation3 + $0x58] sm:$0xff] %vm3640_vm10, %v3587_v6 }
 0x25f   :  { %3650 = vst.msk [vmem:[#allocation3 + $0x48] sm:$0xff] %vm3640_vm10, %v3585_v54  ;;  %v5143_v27 = vpop.f32.mrb[40].mxu1 }
 0x260   :  { %v3378_v45 = vadd.f32 %v5143_v27, %v3089_v49  ;;  %v3369_v31 = vpop.f32.mrb[41].mxu1  ;;  %3781 = vrot.lane.b32.xlu0 %v7650_v16, %s5381_s21 }
 0x261   :  { %v3370_v40 = vadd.f32 %v3369_v31, %v3081_v18  ;;  %v5144_v44 = vpop.f32.mrb[42].mxu1  ;;  %v7682_v18 = vld [vmem:[#allocation3 + $0x28] sm:$0xff] }
 0x262   :  { %v3590_v39 = vmax.f32 %v3378_v45, 0.0  ;;  %v3381_v38 = vadd.f32 %v5144_v44, %v3092_v17  ;;  %v3372_v58 = vpop.f32.mrb[43].mxu1  ;;  %v3113_v17 = vadd.f32 %v7587_v7, %v7568_v42 }
 0x263   :  { %v3588_v13 = vmax.f32 %v3370_v40, 0.0  ;;  %v3373_v2 = vadd.f32 %v3372_v58, %v3084_v41  ;;  %v7660_v8 = vpop.f32.mrb[56].mxu0  ;;  %v7694_v31 = vld [vmem:[#allocation3 + $0x50] sm:$0xff]  ;;  %v3124_v40 = vadd.f32 %v7587_v7, %v7578_v11 }
 0x264   :  { %3655 = vst.msk [vmem:[#allocation3 + $0x70] sm:$0xff] %vm3640_vm10, %v3590_v39  ;;  %v3591_v63 = vmax.f32 %v3381_v38, 0.0  ;;  %3777 = vrot.lane.b32.xlu0 %v7658_v20, %s5381_s21  ;;  %v3146_v32 = vpop.f32.mrb[57].mxu0  ;;  %v3116_v38 = vadd.f32 %v7587_v7, %v7570_v57 }
 0x265   :  { %3653 = vst.msk [vmem:[#allocation3 + $0x60] sm:$0xff] %vm3640_vm10, %v3588_v13  ;;  %v3589_v21 = vmax.f32 %v3373_v2, 0.0  ;;  %v7666_v52 = vpop.f32.mrb[58].mxu0 }
 0x266   :  { %3656 = vst.msk [vmem:[#allocation3 + $0x78] sm:$0xff] %vm3640_vm10, %v3591_v63  ;;  %v3149_v1 = vpop.f32.mrb[59].mxu0 }
 0x267   :  { %3654 = vst.msk [vmem:[#allocation3 + $0x68] sm:$0xff] %vm3640_vm10, %v3589_v21  ;;  %v5147_v48 = vpop.f32.mrb[44].mxu1 }
 0x268   :  { %v3394_v37 = vadd.f32 %v5147_v48, %v3105_v0  ;;  %v3385_v36 = vpop.f32.mrb[45].mxu1  ;;  %3783 = vrot.lane.b32.xlu0 %v7674_v56, %s5381_s21  ;;  %v3137_v48 = vadd.f32 %v7587_v7, %v7632_v12  ;;  %v3132_v12 = vadd.f32 %v7587_v7, %v7601_v10 }
 0x269   :  { %v3386_v15 = vadd.f32 %v3385_v36, %v3097_v24  ;;  %v5148_v53 = vpop.f32.mrb[46].mxu1  ;;  %v7702_v24 = vld [vmem:[#allocation3 + $0x40] sm:$0xff]  ;;  %v7714_v36 = vld [vmem:[#allocation3 + $0x58] sm:$0xff] }
 0x26a   :  { %v3594_v33 = vmax.f32 %v3394_v37, 0.0  ;;  %v3397_v5 = vadd.f32 %v5148_v53, %v3108_v35  ;;  %v3388_v6 = vpop.f32.mrb[47].mxu1  ;;  %v3129_v35 = vadd.f32 %v7587_v7, %v7597_v9 }
 0x26b   :  { %v3592_v54 = vmax.f32 %v3386_v15, 0.0  ;;  %v3389_v49 = vadd.f32 %v3388_v6, %v3100_v34  ;;  %v3140_v34 = vadd.f32 %v7587_v7, %v7636_v50 }
 0x26c   :  { %3659 = vst.msk [vmem:[#allocation3 + $0x90] sm:$0xff] %vm3640_vm10, %v3594_v33  ;;  %v3595_v60 = vmax.f32 %v3397_v5, 0.0  ;;  %3779 = vrot.lane.b32.xlu0 %v7682_v18, %s5381_s21 }
 0x26d   :  { %3657 = vst.msk [vmem:[#allocation3 + $0x80] sm:$0xff] %vm3640_vm10, %v3592_v54  ;;  %v3593_v27 = vmax.f32 %v3389_v49, 0.0 }
 0x26e   :  { %3660 = vst.msk [vmem:[#allocation3 + $0x98] sm:$0xff] %vm3640_vm10, %v3595_v60 }
 0x26f   :  { %3658 = vst.msk [vmem:[#allocation3 + $0x88] sm:$0xff] %vm3640_vm10, %v3593_v27  ;;  %v5151_v45 = vpop.f32.mrb[48].mxu1  ;;  %v3152_v41 = vpop.f32.mrb[60].mxu0  ;;  %v7722_v27 = vld [vmem:[#allocation3 + $0x48] sm:$0xff] }
 0x270   :  { %v3410_v44 = vadd.f32 %v5151_v45, %v3121_v29  ;;  %v3401_v39 = vpop.f32.mrb[49].mxu1  ;;  %3789 = vrot.lane.b32.xlu0 %v7694_v31, %s5381_s21  ;;  %v3154_v46 = vpop.f32.mrb[61].mxu0 }
 0x271   :  { %v3402_v58 = vadd.f32 %v3401_v39, %v3113_v17  ;;  %v5152_v42 = vpop.f32.mrb[50].mxu1  ;;  %v3155_v13 = vpop.f32.mrb[62].mxu0  ;;  %v3145_v39 = vadd.f32 %v7587_v7, %v7660_v8 }
 0x272   :  { %v3598_v2 = vmax.f32 %v3410_v44, 0.0  ;;  %v3413_v63 = vadd.f32 %v5152_v42, %v3124_v40  ;;  %v3404_v32 = vpop.f32.mrb[51].mxu1  ;;  %v3157_v21 = vpop.f32.mrb[63].mxu0  ;;  %v3153_v40 = vadd.f32 %v7587_v7, %v3152_v41  ;;  %v3148_v41 = vadd.f32 %v7587_v7, %v7666_v52 }
 0x273   :  { %v3596_v0 = vmax.f32 %v3402_v58, 0.0  ;;  %v3405_v1 = vadd.f32 %v3404_v32, %v3116_v38  ;;  %v7733_v38 = vld [vmem:[#allocation3 + $0x70] sm:$0xff]  ;;  %v3156_v58 = vadd.f32 %v7587_v7, %v3155_v13 }
 0x274   :  { %3663 = vst.msk [vmem:[#allocation3 + $0xb0] sm:$0xff] %vm3640_vm10, %v3598_v2  ;;  %v3599_v11 = vmax.f32 %v3413_v63, 0.0  ;;  %3785 = vrot.lane.b32.xlu0 %v7702_v24, %s5381_s21 }
 0x275   :  { %3661 = vst.msk [vmem:[#allocation3 + $0xa0] sm:$0xff] %vm3640_vm10, %v3596_v0  ;;  %v3597_v57 = vmax.f32 %v3405_v1, 0.0 }
 0x276   :  { %3664 = vst.msk [vmem:[#allocation3 + $0xb8] sm:$0xff] %vm3640_vm10, %v3599_v11 }
 0x277   :  { %3662 = vst.msk [vmem:[#allocation3 + $0xa8] sm:$0xff] %vm3640_vm10, %v3597_v57  ;;  %v5155_v37 = vpop.f32.mrb[52].mxu1  ;;  %v7740_v57 = vld [vmem:[#allocation3 + $0x60] sm:$0xff] }
 0x278   :  { %v3426_v15 = vadd.f32 %v5155_v37, %v3137_v48  ;;  %v3417_v53 = vpop.f32.mrb[53].mxu1  ;;  %3791 = vrot.lane.b32.xlu0 %v7714_v36, %s5381_s21 }
 0x279   :  { %v3418_v33 = vadd.f32 %v3417_v53, %v3129_v35  ;;  %v5156_v5 = vpop.f32.mrb[54].mxu1 }
 0x27a   :  { %v3602_v6 = vmax.f32 %v3426_v15, 0.0  ;;  %v3429_v9 = vadd.f32 %v5156_v5, %v3140_v34  ;;  %v3420_v54 = vpop.f32.mrb[55].mxu1  ;;  %v7749_v34 = vld [vmem:[#allocation3 + $0x78] sm:$0xff] }
 0x27b   :  { %v3600_v49 = vmax.f32 %v3418_v33, 0.0  ;;  %v3421_v60 = vadd.f32 %v3420_v54, %v3132_v12  ;;  %v3160_v29 = vpop.f32.mrb[64].mxu0 }
 0x27c   :  { %3667 = vst.msk [vmem:[#allocation3 + $0xd0] sm:$0xff] %vm3640_vm10, %v3602_v6  ;;  %v3603_v50 = vmax.f32 %v3429_v9, 0.0  ;;  %3787 = vrot.lane.b32.xlu0 %v7722_v27, %s5381_s21  ;;  %v3162_v17 = vpop.f32.mrb[65].mxu0  ;;  %v3161_v48 = vadd.f32 %v7587_v7, %v3160_v29 }
 0x27d   :  { %3665 = vst.msk [vmem:[#allocation3 + $0xc0] sm:$0xff] %vm3640_vm10, %v3600_v49  ;;  %v3601_v10 = vmax.f32 %v3421_v60, 0.0  ;;  %v3163_v45 = vpop.f32.mrb[66].mxu0 }
 0x27e   :  { %3668 = vst.msk [vmem:[#allocation3 + $0xd8] sm:$0xff] %vm3640_vm10, %v3603_v50  ;;  %v3165_v44 = vpop.f32.mrb[67].mxu0  ;;  %v3164_v33 = vadd.f32 %v7587_v7, %v3163_v45 }
 0x27f   :  { %3666 = vst.msk [vmem:[#allocation3 + $0xc8] sm:$0xff] %vm3640_vm10, %v3601_v10  ;;  %v5159_v46 = vpop.f32.mrb[56].mxu1  ;;  %v7756_v10 = vld [vmem:[#allocation3 + $0x68] sm:$0xff] }
 0x280   :  { %v3442_v42 = vadd.f32 %v5159_v46, %v3153_v40  ;;  %v3433_v2 = vpop.f32.mrb[57].mxu1  ;;  %3797 = vrot.lane.b32.xlu0 %v7733_v38, %s5381_s21 }
 0x281   :  { %v3434_v63 = vadd.f32 %v3433_v2, %v3145_v39  ;;  %v5160_v32 = vpop.f32.mrb[58].mxu1 }
 0x282   :  { %v3606_v21 = vmax.f32 %v3442_v42, 0.0  ;;  %v3445_v0 = vadd.f32 %v5160_v32, %v3156_v58  ;;  %v3436_v8 = vpop.f32.mrb[59].mxu1  ;;  %v7763_v58 = vld [vmem:[#allocation3 + $0x80] sm:$0xff] }
 0x283   :  { %v3604_v1 = vmax.f32 %v3434_v63, 0.0  ;;  %v3437_v11 = vadd.f32 %v3436_v8, %v3148_v41  ;;  %9236 = vst [vmem:[#allocation12_spill] sm:$0xff] %v7763_v58 }
 0x284   :  { %3671 = vst.msk [vmem:[#allocation3 + $0xf0] sm:$0xff] %vm3640_vm10, %v3606_v21  ;;  %v3607_v13 = vmax.f32 %v3445_v0, 0.0  ;;  %3793 = vrot.lane.b32.xlu0 %v7740_v57, %s5381_s21 }
 0x285   :  { %3669 = vst.msk [vmem:[#allocation3 + $0xe0] sm:$0xff] %vm3640_vm10, %v3604_v1  ;;  %v3605_v52 = vmax.f32 %v3437_v11, 0.0 }
 0x286   :  { %3672 = vst.msk [vmem:[#allocation3 + $0xf8] sm:$0xff] %vm3640_vm10, %v3607_v13 }
 0x287   :  { %3670 = vst.msk [vmem:[#allocation3 + $0xe8] sm:$0xff] %vm3640_vm10, %v3605_v52  ;;  %v3168_v35 = vpop.f32.mrb[68].mxu0  ;;  %v5163_v37 = vpop.f32.mrb[60].mxu1 }
 0x288   :  { %v3169_v15 = vadd.f32 %v7587_v7, %v3168_v35  ;;  %v3170_v53 = vpop.f32.mrb[69].mxu0  ;;  %v3449_v12 = vpop.f32.mrb[61].mxu1  ;;  %3799 = vrot.lane.b32.xlu0 %v7749_v34, %s5381_s21 }
 0x289   :  { %v3450_v5 = vadd.f32 %v3449_v12, %v3161_v48  ;;  %v3171_v6 = vpop.f32.mrb[70].mxu0  ;;  %v5164_v9 = vpop.f32.mrb[62].mxu1  ;;  %v7782_v53 = vld [vmem:[#allocation3 + $0x88] sm:$0xff] }
 0x28a   :  { %v3458_v54 = vadd.f32 %v5163_v37, %v3169_v15  ;;  %v3172_v49 = vadd.f32 %v7587_v7, %v3171_v6  ;;  %v3452_v60 = vpop.f32.mrb[63].mxu1  ;;  %v3173_v29 = vpop.f32.mrb[71].mxu0  ;;  %9237 = vst [vmem:[#allocation14_spill] sm:$0xff] %v7782_v53 }
 0x28b   :  { %v3608_v50 = vmax.f32 %v3450_v5, 0.0  ;;  %v3453_v17 = vadd.f32 %v3452_v60, %v3164_v33 }
 0x28c   :  { %v3610_v40 = vmax.f32 %v3458_v54, 0.0  ;;  %v3461_v44 = vadd.f32 %v5164_v9, %v3172_v49  ;;  %3795 = vrot.lane.b32.xlu0 %v7756_v10, %s5381_s21  ;;  %v7796_v9 = vld [vmem:[#allocation3 + $0x90] sm:$0xff] }
 0x28d   :  { %3673 = vst.msk [vmem:[#allocation3 + $0x100] sm:$0xff] %vm3640_vm10, %v3608_v50  ;;  %v3609_v45 = vmax.f32 %v3453_v17, 0.0  ;;  %9238 = vst [vmem:[#allocation13_spill] sm:$0xff] %v7796_v9 }
 0x28e   :  { %3675 = vst.msk [vmem:[#allocation3 + $0x110] sm:$0xff] %vm3640_vm10, %v3610_v40  ;;  %v3611_v39 = vmax.f32 %v3461_v44, 0.0  ;;  %v7809_v40 = vld [vmem:[#allocation3 + $0x98] sm:$0xff] }
 0x28f   :  { %3674 = vst.msk [vmem:[#allocation3 + $0x108] sm:$0xff] %vm3640_vm10, %v3609_v45  ;;  %v5167_v46 = vpop.f32.mrb[64].mxu1  ;;  %9239 = vst [vmem:[#allocation15_spill] sm:$0xff] %v7809_v40 }
 0x290   :  { %3676 = vst.msk [vmem:[#allocation3 + $0x118] sm:$0xff] %vm3640_vm10, %v3611_v39  ;;  %v3465_v42 = vpop.f32.mrb[65].mxu1  ;;  %3801 = vrot.lane.b32.xlu0 %v7763_v58, %s5381_s21 }
 0x291   :  { %v5168_v2 = vpop.f32.mrb[66].mxu1 }
 0x292   :  { %v3468_v41 = vpop.f32.mrb[67].mxu1 }
 0x293   :  { %v3176_v63 = vpop.f32.mrb[72].mxu0 }
 0x294   :  { %v3177_v32 = vadd.f32 %v7587_v7, %v3176_v63  ;;  %v3178_v21 = vpop.f32.mrb[73].mxu0  ;;  %v7769_v0 = vld [vmem:[#allocation3 + $0x100] sm:$0xff] }
 0x295   :  { %v3179_v8 = vpop.f32.mrb[74].mxu0  ;;  %4031 = vrot.lane.b32.xlu0 %v7769_v0, %s5381_s21  ;;  %v7791_v6 = vld [vmem:[#allocation3 + $0x110] sm:$0xff]  ;;  %v5298_v21 = vld [vmem:[%s9112_s3] sm:$0xff]  }
 0x296   :  { %v3466_v1 = vadd.f32 %v3465_v42, %v3177_v32  ;;  %v3180_v11 = vadd.f32 %v7587_v7, %v3179_v8  ;;  %v7774_v13 = vld [vmem:[#allocation3 + $0x108] sm:$0xff]  ;;  %v3181_v48 = vpop.f32.mrb[75].mxu0 }
 0x297   :  { %v7776_v52 = vpop.f32.mrb[68].mxu1  ;;  %4033 = vrot.lane.b32.xlu1 %v7774_v13, %s5381_s21  ;;  %v7800_v54 = vld [vmem:[#allocation3 + $0x118] sm:$0xff]  ;;  %v9135_v48 = vmov 0.0  }
 0x298   :  { %v3612_v35 = vmax.f32 %v3466_v1, 0.0  ;;  %v3469_v37 = vadd.f32 %v3468_v41, %v3180_v11  ;;  %v7780_v15 = vpop.f32.mrb[69].mxu1  ;;  %v7825_v11 = vld [vmem:[#allocation3 + $0xa0] sm:$0xff]  ;;  %5193 = vmatprep.subr.bf16.mxu1 %v9135_v48 }
 0x299   :  { %v7784_v12 = vpop.f32.mrb[70].mxu1  ;;  %3803 = vrot.lane.b32.xlu0 %v7782_v53, %s5381_s21  ;;  %9240 = vst [vmem:[#allocation17_spill] sm:$0xff] %v7825_v11  ;;  %5194 = vmatpush3.bf16.msra.mxu1 %v5298_v21 }
 0x29a   :  { %3677 = vst.msk [vmem:[#allocation3 + $0x120] sm:$0xff] %vm3640_vm10, %v3612_v35  ;;  %v3613_v33 = vmax.f32 %v3469_v37, 0.0  ;;  %v7789_v5 = vpop.f32.mrb[71].mxu1  ;;  %5195 = vmatprep.subr.bf16.mxu1 %v9135_v48 }
 0x29b   :  { %4035 = vrot.lane.b32.xlu1 %v7791_v6, %s5381_s21 }
 0x29c   :  { %3678 = vst.msk [vmem:[#allocation3 + $0x128] sm:$0xff] %vm3640_vm10, %v3613_v33  ;;  %v3236_v33 = vadd.f32 %v7587_v7, %v7480_v23 }
 0x29d   :  { %3805 = vrot.lane.b32.xlu0 %v7796_v9, %s5381_s21 }
 0x29f   :  { %v3184_v49 = vpop.f32.mrb[76].mxu0  ;;  %v7802_v60 = vpop.f32.mrb[72].mxu1  ;;  %4037 = vrot.lane.b32.xlu1 %v7800_v54, %s5381_s21 }
 0x2a0   :  { %v3185_v29 = vadd.f32 %v7587_v7, %v3184_v49  ;;  %v3186_v50 = vpop.f32.mrb[77].mxu0  ;;  %v7807_v17 = vpop.f32.mrb[73].mxu1 }
 0x2a1   :  { %v3187_v44 = vpop.f32.mrb[78].mxu0  ;;  %v7811_v45 = vpop.f32.mrb[74].mxu1  ;;  %3807 = vrot.lane.b32.xlu0 %v7809_v40, %s5381_s21  ;;  %v7815_v39 = vld [vmem:[#allocation3 + $0x120] sm:$0xff] }
 0x2a2   :  { %v3474_v42 = vadd.f32 %v5167_v46, %v3185_v29  ;;  %v3188_v41 = vadd.f32 %v7587_v7, %v3187_v44  ;;  %v7818_v63 = vpop.f32.mrb[75].mxu1  ;;  %v3189_v32 = vpop.f32.mrb[79].mxu0  ;;  %v3233_v46 = vadd.f32 %v7587_v7, %v7476_v14  ;;  %v7843_v14 = vld [vmem:[#allocation3 + $0xa8] sm:$0xff] }
 0x2a3   :  { %4039 = vrot.lane.b32.xlu1 %v7815_v39, %s5381_s21  ;;  %v7833_v37 = vld [vmem:[#allocation3 + $0x128] sm:$0xff]  ;;  %9241 = vst [vmem:[#allocation16_spill] sm:$0xff] %v7843_v14 }
 0x2a4   :  { %v3614_v8 = vmax.f32 %v3474_v42, 0.0  ;;  %v3477_v1 = vadd.f32 %v5168_v2, %v3188_v41 }
 0x2a5   :  { %3809 = vrot.lane.b32.xlu0 %v7825_v11, %s5381_s21 }
 0x2a6   :  { %3679 = vst.msk [vmem:[#allocation3 + $0x130] sm:$0xff] %vm3640_vm10, %v3614_v8  ;;  %v3615_v35 = vmax.f32 %v3477_v1, 0.0  ;;  %v7851_v1 = vld [vmem:[#allocation3 + $0xb0] sm:$0xff] }
 0x2a7   :  { %v5179_v2 = vpop.f32.mrb[76].mxu1  ;;  %4041 = vrot.lane.b32.xlu1 %v7833_v37, %s5381_s21  ;;  %9242 = vst [vmem:[#allocation18_spill] sm:$0xff] %v7851_v1 }
 0x2a8   :  { %3680 = vst.msk [vmem:[#allocation3 + $0x138] sm:$0xff] %vm3640_vm10, %v3615_v35  ;;  %v3522_v49 = vadd.f32 %v5179_v2, %v3233_v46  ;;  %v7841_v29 = vpop.f32.mrb[77].mxu1  ;;  %v3249_v35 = vadd.f32 %v7587_v7, %v7528_v4  ;;  %v7865_v4 = vld [vmem:[#allocation3 + $0xb8] sm:$0xff] }
 0x2a9   :  { %v5180_v50 = vpop.f32.mrb[78].mxu1  ;;  %3811 = vrot.lane.b32.xlu0 %v7843_v14, %s5381_s21  ;;  %9243 = vst [vmem:[#allocation11_spill] sm:$0xff] %v7865_v4 }
 0x2aa   :  { %v3626_v44 = vmax.f32 %v3522_v49, 0.0  ;;  %v3525_v42 = vadd.f32 %v5180_v50, %v3236_v33  ;;  %v7847_v41 = vpop.f32.mrb[79].mxu1  ;;  %v3241_v50 = vadd.f32 %v7587_v7, %v7502_v19 }
 0x2ab   :  { %v3192_v32 = vpop.f32.mrb[80].mxu0 }
 0x2ac   :  { %3691 = vst.msk [vmem:[#allocation3 + $0x190] sm:$0xff] %vm3640_vm10, %v3626_v44  ;;  %v3627_v21 = vmax.f32 %v3525_v42, 0.0  ;;  %v3193_v23 = vadd.f32 %v7587_v7, %v3192_v32  ;;  %v3194_v8 = vpop.f32.mrb[81].mxu0  ;;  %v3252_v42 = vadd.f32 %v7587_v7, %v7532_v28 }
 0x2ad   :  { %v3195_v46 = vpop.f32.mrb[82].mxu0  ;;  %3813 = vrot.lane.b32.xlu0 %v7851_v1, %s5381_s21 }
 0x2ae   :  { %3692 = vst.msk [vmem:[#allocation3 + $0x198] sm:$0xff] %vm3640_vm10, %v3627_v21  ;;  %v3482_v2 = vadd.f32 %v7780_v15, %v3193_v23  ;;  %v3196_v33 = vadd.f32 %v7587_v7, %v3195_v46  ;;  %v3197_v49 = vpop.f32.mrb[83].mxu0  ;;  %v3244_v15 = vadd.f32 %v7587_v7, %v7506_v3 }
 0x2af   :  { %v5183_v44 = vpop.f32.mrb[80].mxu1 }
 0x2b0   :  { %v3616_v32 = vmax.f32 %v3482_v2, 0.0  ;;  %v3485_v8 = vadd.f32 %v7789_v5, %v3196_v33  ;;  %v3538_v48 = vadd.f32 %v5183_v44, %v3249_v35  ;;  %v3529_v1 = vpop.f32.mrb[81].mxu1 }
 0x2b1   :  { %v3530_v21 = vadd.f32 %v3529_v1, %v3241_v50  ;;  %v5184_v23 = vpop.f32.mrb[82].mxu1  ;;  %3815 = vrot.lane.b32.xlu0 %v7865_v4, %s5381_s21  ;;  %v7878_v1 = vld [vmem:[#allocation3 + $0xc0] sm:$0xff]  ;;  %v3257_v50 = vadd.f32 %v7587_v7, %v7551_v22  ;;  %v3260_v22 = vadd.f32 %v7587_v7, %v7555_v26 }
 0x2b2   :  { %3681 = vst.msk [vmem:[#allocation3 + $0x140] sm:$0xff] %vm3640_vm10, %v3616_v32  ;;  %v3617_v19 = vmax.f32 %v3485_v8, 0.0  ;;  %v3630_v46 = vmax.f32 %v3538_v48, 0.0  ;;  %v3541_v28 = vadd.f32 %v5184_v23, %v3252_v42  ;;  %v3532_v2 = vpop.f32.mrb[83].mxu1  ;;  %9244 = vst [vmem:[#allocation8_spill] sm:$0xff] %v7878_v1  ;;  %v3265_v48 = vadd.f32 %v7587_v7, %v7564_v55  ;;  %v7889_v32 = vld [vmem:[#allocation3 + $0x130] sm:$0xff] }
 0x2b3   :  { %v3628_v49 = vmax.f32 %v3530_v21, 0.0  ;;  %v3533_v5 = vadd.f32 %v3532_v2, %v3244_v15  ;;  %v7872_v35 = vld [vmem:[#allocation3 + $0x190] sm:$0xff]  ;;  %v3268_v8 = vadd.f32 %v7587_v7, %v7566_v59  ;;  %v7896_v55 = vld [vmem:[#allocation3 + $0xc8] sm:$0xff] }
 0x2b4   :  { %3682 = vst.msk [vmem:[#allocation3 + $0x148] sm:$0xff] %vm3640_vm10, %v3617_v19  ;;  %3695 = vst.msk [vmem:[#allocation3 + $0x1b0] sm:$0xff] %vm3640_vm10, %v3630_v46  ;;  %v3631_v3 = vmax.f32 %v3541_v28, 0.0  ;;  %4067 = vrot.lane.b32.xlu1 %v7872_v35, %s5381_s21 }
 0x2b5   :  { %3693 = vst.msk [vmem:[#allocation3 + $0x1a0] sm:$0xff] %vm3640_vm10, %v3628_v49  ;;  %v3629_v33 = vmax.f32 %v3533_v5, 0.0  ;;  %3817 = vrot.lane.b32.xlu0 %v7878_v1, %s5381_s21  ;;  %9245 = vst [vmem:[#allocation9_spill] sm:$0xff] %v7896_v55 }
 0x2b6   :  { %3696 = vst.msk [vmem:[#allocation3 + $0x1b8] sm:$0xff] %vm3640_vm10, %v3631_v3 }
 0x2b7   :  { %3694 = vst.msk [vmem:[#allocation3 + $0x1a8] sm:$0xff] %vm3640_vm10, %v3629_v33  ;;  %v3200_v44 = vpop.f32.mrb[84].mxu0  ;;  %v5187_v42 = vpop.f32.mrb[84].mxu1 }
 0x2b8   :  { %v3201_v15 = vadd.f32 %v7587_v7, %v3200_v44  ;;  %v3554_v21 = vadd.f32 %v5187_v42, %v3265_v48  ;;  %v3202_v23 = vpop.f32.mrb[85].mxu0  ;;  %v3545_v19 = vpop.f32.mrb[85].mxu1  ;;  %4043 = vrot.lane.b32.xlu1 %v7889_v32, %s5381_s21 }
 0x2b9   :  { %v3546_v46 = vadd.f32 %v3545_v19, %v3257_v50  ;;  %v3203_v28 = vpop.f32.mrb[86].mxu0  ;;  %v5188_v2 = vpop.f32.mrb[86].mxu1  ;;  %3819 = vrot.lane.b32.xlu0 %v7896_v55, %s5381_s21  ;;  %v7904_v23 = vld [vmem:[#allocation3 + $0x198] sm:$0xff] }
 0x2ba   :  { %v3490_v59 = vadd.f32 %v7776_v52, %v3201_v15  ;;  %v3634_v49 = vmax.f32 %v3554_v21, 0.0  ;;  %v3204_v5 = vadd.f32 %v7587_v7, %v3203_v28  ;;  %v3557_v3 = vadd.f32 %v5188_v2, %v3268_v8  ;;  %v3548_v33 = vpop.f32.mrb[87].mxu1  ;;  %v3205_v48 = vpop.f32.mrb[87].mxu0  ;;  %9246 = vst [vmem:[#allocation7_spill] sm:$0xff] %v7904_v23  ;;  %v7910_v52 = vld [vmem:[#allocation3 + $0xd0] sm:$0xff] }
 0x2bb   :  { %v3632_v44 = vmax.f32 %v3546_v46, 0.0  ;;  %v3549_v42 = vadd.f32 %v3548_v33, %v3260_v22  ;;  %9247 = vst [vmem:[#allocation10_spill] sm:$0xff] %v7910_v52  ;;  %v3281_v15 = vadd.f32 %v7587_v7, %v7580_v25  ;;  %v7922_v22 = vld [vmem:[#allocation3 + $0x138] sm:$0xff]  ;;  %v3284_v46 = vadd.f32 %v7587_v7, %v7582_v30 }
 0x2bc   :  { %v3618_v1 = vmax.f32 %v3490_v59, 0.0  ;;  %3699 = vst.msk [vmem:[#allocation3 + $0x1d0] sm:$0xff] %vm3640_vm10, %v3634_v49  ;;  %v3493_v26 = vadd.f32 %v7784_v12, %v3204_v5  ;;  %v3635_v50 = vmax.f32 %v3557_v3, 0.0  ;;  %4069 = vrot.lane.b32.xlu1 %v7904_v23, %s5381_s21  ;;  %v3273_v12 = vadd.f32 %v7587_v7, %v7572_v61 }
 0x2bd   :  { %3697 = vst.msk [vmem:[#allocation3 + $0x1c0] sm:$0xff] %vm3640_vm10, %v3632_v44  ;;  %v3633_v8 = vmax.f32 %v3549_v42, 0.0  ;;  %3821 = vrot.lane.b32.xlu0 %v7910_v52, %s5381_s21  ;;  %v3276_v61 = vadd.f32 %v7587_v7, %v7574_v51  ;;  %v7935_v44 = vld [vmem:[#allocation3 + $0x1b0] sm:$0xff]  ;;  %v7941_v51 = vld [vmem:[#allocation3 + $0xe0] sm:$0xff] }
 0x2be   :  { %3683 = vst.msk [vmem:[#allocation3 + $0x150] sm:$0xff] %vm3640_vm10, %v3618_v1  ;;  %v3619_v21 = vmax.f32 %v3493_v26, 0.0  ;;  %3700 = vst.msk [vmem:[#allocation3 + $0x1d8] sm:$0xff] %vm3640_vm10, %v3635_v50  ;;  %v7929_v1 = vld [vmem:[#allocation3 + $0xd8] sm:$0xff] }
 0x2bf   :  { %3698 = vst.msk [vmem:[#allocation3 + $0x1c8] sm:$0xff] %vm3640_vm10, %v3633_v8  ;;  %v5191_v19 = vpop.f32.mrb[88].mxu1  ;;  %9248 = vst [vmem:[#allocation19_spill] sm:$0xff] %v7929_v1 }
 0x2c0   :  { %3684 = vst.msk [vmem:[#allocation3 + $0x158] sm:$0xff] %vm3640_vm10, %v3619_v21  ;;  %v3570_v28 = vadd.f32 %v5191_v19, %v3281_v15  ;;  %v3561_v25 = vpop.f32.mrb[89].mxu1  ;;  %4045 = vrot.lane.b32.xlu1 %v7922_v22, %s5381_s21  ;;  %9249 = vst [vmem:[#allocation20_spill] sm:$0xff] %v7941_v51 }
 0x2c1   :  { %v3562_v2 = vadd.f32 %v3561_v25, %v3273_v12  ;;  %v5192_v59 = vpop.f32.mrb[90].mxu1  ;;  %3823 = vrot.lane.b32.xlu0 %v7929_v1, %s5381_s21 }
 0x2c2   :  { %v3638_v49 = vmax.f32 %v3570_v28, 0.0  ;;  %v3573_v5 = vadd.f32 %v5192_v59, %v3284_v46  ;;  %v3564_v30 = vpop.f32.mrb[91].mxu1  ;;  %v7952_v28 = vld [vmem:[#allocation3 + $0x1a0] sm:$0xff] }
 0x2c3   :  { %v3636_v3 = vmax.f32 %v3562_v2, 0.0  ;;  %v3565_v33 = vadd.f32 %v3564_v30, %v3276_v61  ;;  %v3208_v48 = vpop.f32.mrb[88].mxu0  ;;  %v7957_v2 = vld [vmem:[#allocation3 + $0xe8] sm:$0xff] }
 0x2c4   :  { %3703 = vst.msk [vmem:[#allocation3 + $0x1f0] sm:$0xff] %vm3640_vm10, %v3638_v49  ;;  %v3639_v42 = vmax.f32 %v3573_v5, 0.0  ;;  %v3209_v26 = vadd.f32 %v7587_v7, %v3208_v48  ;;  %v3210_v50 = vpop.f32.mrb[89].mxu0  ;;  %4075 = vrot.lane.b32.xlu1 %v7935_v44, %s5381_s21  ;;  %9251 = vst [vmem:[#allocation22_spill] sm:$0xff] %v7957_v2  ;;  %v7964_v49 = vld [vmem:[#allocation3 + $0x140] sm:$0xff] }
 0x2c5   :  { %3701 = vst.msk [vmem:[#allocation3 + $0x1e0] sm:$0xff] %vm3640_vm10, %v3636_v3  ;;  %v3637_v8 = vmax.f32 %v3565_v33, 0.0  ;;  %v3211_v15 = vpop.f32.mrb[90].mxu0  ;;  %3825 = vrot.lane.b32.xlu0 %v7941_v51, %s5381_s21  ;;  %v7975_v3 = vld [vmem:[#allocation3 + $0x1b8] sm:$0xff] }
 0x2c6   :  { %3704 = vst.msk [vmem:[#allocation3 + $0x1f8] sm:$0xff] %vm3640_vm10, %v3639_v42  ;;  %v3498_v21 = vadd.f32 %v7807_v17, %v3209_v26  ;;  %v3212_v12 = vadd.f32 %v7587_v7, %v3211_v15  ;;  %v7949_v19 = vpop.permute.xlu0 %3773  ;;  %v3213_v46 = vpop.f32.mrb[91].mxu0  ;;  %9255 = vst [vmem:[#allocation26_spill] sm:$0xff] %v7975_v3  ;;  %v7980_v42 = vld [vmem:[#allocation3 + $0xf8] sm:$0xff] }
 0x2c7   :  { %9250 = vst [vmem:[#allocation21_spill] sm:$0xff] %v7949_v19  ;;  %3702 = vst.msk [vmem:[#allocation3 + $0x1e8] sm:$0xff] %vm3640_vm10, %v3637_v8  ;;  %v8089_v23 = vld [vmem:[#allocation3 + $0x1d8] sm:$0xff] }
 0x2c8   :  { %v3620_v25 = vmax.f32 %v3498_v21, 0.0  ;;  %v3501_v61 = vadd.f32 %v7818_v63, %v3212_v12  ;;  %4071 = vrot.lane.b32.xlu1 %v7952_v28, %s5381_s21  ;;  %v7969_v63 = vld [vmem:[#allocation3 + $0xf0] sm:$0xff]  ;;  %9256 = vst [vmem:[#allocation27_spill] sm:$0xff] %v7980_v42  ;;  %v7988_v12 = vld [vmem:[#allocation3 + $0x1a8] sm:$0xff]  ;;  %9272 = vst [vmem:[#allocation42_spill] sm:$0xff] %v8089_v23 }
 0x2c9   :  { %3827 = vrot.lane.b32.xlu0 %v7957_v2, %s5381_s21  ;;  %9253 = vst [vmem:[#allocation24_spill] sm:$0xff] %v7969_v63  ;;  %9257 = vst [vmem:[#allocation28_spill] sm:$0xff] %v7988_v12  ;;  %v8081_v2 = vld [vmem:[#allocation3 + $0x1d0] sm:$0xff]  ;;  %v8087_v1 = vpop.permute.xlu1 %3771 }
 0x2ca   :  { %3685 = vst.msk [vmem:[#allocation3 + $0x160] sm:$0xff] %vm3640_vm10, %v3620_v25  ;;  %v3621_v17 = vmax.f32 %v3501_v61, 0.0  ;;  %v7962_v59 = vpop.permute.xlu0 %3769  ;;  %9271 = vst [vmem:[#allocation41_spill] sm:$0xff] %v8087_v1  ;;  %v3866_v58 = vadd.f32 %v8087_v1, %v7619_v47 }
 0x2cb   :  { %9252 = vst [vmem:[#allocation23_spill] sm:$0xff] %v7962_v59  ;;  %v8109_v14 = vld [vmem:[#allocation3 + $0x1f0] sm:$0xff] }
 0x2cc   :  { %3686 = vst.msk [vmem:[#allocation3 + $0x168] sm:$0xff] %vm3640_vm10, %v3621_v17  ;;  %4047 = vrot.lane.b32.xlu1 %v7964_v49, %s5381_s21  ;;  %v7998_v17 = vld [vmem:[#allocation3 + $0x148] sm:$0xff]  ;;  %v8097_v55 = vld [vmem:[#allocation3 + $0x1e0] sm:$0xff] }
 0x2cd   :  { %3829 = vrot.lane.b32.xlu0 %v7969_v63, %s5381_s21  ;;  %9258 = vst [vmem:[#allocation29_spill] sm:$0xff] %v7998_v17  ;;  %v8117_v11 = vld [vmem:[#allocation3 + $0x1f8] sm:$0xff] }
 0x2ce   :  { %v7973_v5 = vpop.permute.xlu0 %3775  ;;  %9276 = vst [vmem:[#allocation46_spill] sm:$0xff] %v8117_v11 }
 0x2cf   :  { %9254 = vst [vmem:[#allocation25_spill] sm:$0xff] %v7973_v5  ;;  %v3216_v30 = vpop.f32.mrb[92].mxu0 }
 0x2d0   :  { %v3217_v33 = vadd.f32 %v7587_v7, %v3216_v30  ;;  %v3218_v48 = vpop.f32.mrb[93].mxu0  ;;  %4077 = vrot.lane.b32.xlu1 %v7975_v3, %s5381_s21 }
 0x2d1   :  { %v3219_v26 = vpop.f32.mrb[94].mxu0  ;;  %3831 = vrot.lane.b32.xlu0 %v7980_v42, %s5381_s21 }
 0x2d2   :  { %v3506_v50 = vadd.f32 %v7802_v60, %v3217_v33  ;;  %v3220_v8 = vadd.f32 %v7587_v7, %v3219_v26  ;;  %v7986_v15 = vpop.permute.xlu0 %3781  ;;  %v3221_v21 = vpop.f32.mrb[95].mxu0  ;;  %v8007_v33 = vld [vmem:[#allocation3 + $0x1c0] sm:$0xff] }
 0x2d4   :  { %v3622_v46 = vmax.f32 %v3506_v50, 0.0  ;;  %v3509_v25 = vadd.f32 %v7811_v45, %v3220_v8  ;;  %4073 = vrot.lane.b32.xlu1 %v7988_v12, %s5381_s21  ;;  %v8077_v12 = vld [vmem:[#allocation3 + $0x1c8] sm:$0xff] }
 0x2d5   :  { %4620 = vrot.lane.b32.xlu0 %v7774_v13, %s5381_s21  ;;  %9270 = vst [vmem:[#allocation40_spill] sm:$0xff] %v8077_v12 }
 0x2d6   :  { %3687 = vst.msk [vmem:[#allocation3 + $0x170] sm:$0xff] %vm3640_vm10, %v3622_v46  ;;  %v3623_v61 = vmax.f32 %v3509_v25, 0.0  ;;  %v7996_v60 = vpop.permute.xlu0 %3777  ;;  %v8016_v25 = vld [vmem:[#allocation3 + $0x150] sm:$0xff] }
 0x2d7   :  { %9259 = vst [vmem:[#allocation30_spill] sm:$0xff] %v8016_v25 }
 0x2d8   :  { %3688 = vst.msk [vmem:[#allocation3 + $0x178] sm:$0xff] %vm3640_vm10, %v3623_v61  ;;  %4049 = vrot.lane.b32.xlu1 %v7998_v17, %s5381_s21 }
 0x2d9   :  { %4624 = vrot.lane.b32.xlu0 %v7800_v54, %s5381_s21 }
 0x2da   :  { %v8005_v45 = vpop.permute.xlu0 %3783 }
 0x2db   :  { %v3224_v30 = vpop.f32.mrb[96].mxu0 }
 0x2dc   :  { %v3225_v48 = vadd.f32 %v7587_v7, %v3224_v30  ;;  %v3226_v26 = vpop.f32.mrb[97].mxu0  ;;  %4079 = vrot.lane.b32.xlu1 %v8007_v33, %s5381_s21 }
 0x2dd   :  { %v3227_v50 = vpop.f32.mrb[98].mxu0  ;;  %4628 = vrot.lane.b32.xlu0 %v7833_v37, %s5381_s21  ;;  %v8045_v26 = vld [vmem:[#allocation3 + $0x168] sm:$0xff] }
 0x2de   :  { %v3514_v8 = vadd.f32 %v7841_v29, %v3225_v48  ;;  %v3228_v21 = vadd.f32 %v7587_v7, %v3227_v50  ;;  %v3229_v46 = vpop.f32.mrb[99].mxu0  ;;  %v8019_v3 = vpop.permute.xlu0 %3779  ;;  %v5299_v7 = vld [vmem:[%s9112_s3 + $0x8] sm:$0xff]   ;;  %v8029_v29 = vld [vmem:[#allocation3 + $0x158] sm:$0xff]  ;;  %9264 = vst [vmem:[#allocation34_spill] sm:$0xff] %v8045_v26 }
 0x2df   :  { %9260 = vst [vmem:[#allocation31_spill] sm:$0xff] %v8019_v3  ;;  %9261 = vst [vmem:[#allocation32_spill] sm:$0xff] %v8029_v29  ;;  %5196 = vmatpush3.bf16.msra.mxu1 %v5299_v7 }
 0x2e0   :  { %v3624_v61 = vmax.f32 %v3514_v8, 0.0  ;;  %v3517_v42 = vadd.f32 %v7847_v41, %v3228_v21  ;;  %4051 = vrot.lane.b32.xlu1 %v8016_v25, %s5381_s21  ;;  %v9262_v41 = vmov 0.0   ;;  %v8053_v8 = vld [vmem:[#allocation3 + $0x170] sm:$0xff]  ;;  %v8057_v21 = vld [vmem:[#allocation3 + $0x178] sm:$0xff] }
 0x2e1   :  { %4632 = vrot.lane.b32.xlu0 %v7922_v22, %s5381_s21  ;;  %5201 = vmatprep.subr.bf16.mxu1 %v9262_v41  ;;  %9265 = vst [vmem:[#allocation35_spill] sm:$0xff] %v8053_v8  ;;  %9266 = vst [vmem:[#allocation36_spill] sm:$0xff] %v8057_v21 }
 0x2e2   :  { %3689 = vst.msk [vmem:[#allocation3 + $0x180] sm:$0xff] %vm3640_vm10, %v3624_v61  ;;  %v3625_v30 = vmax.f32 %v3517_v42, 0.0  ;;  %v8037_v48 = vpop.permute.xlu0 %3789  ;;  %v8039_v42 = vld [vmem:[#allocation3 + $0x160] sm:$0xff]  ;;  %5197 = vmatprep.mubr.msk.bf16.mxu1 %vm5384_vm11, %v9262_v41  ;;  %v3865_v41 = vadd.f32 %v7962_v59, %v7626_v43  ;;  %v3868_v59 = vadd.f32 %v7973_v5, %v7638_v62 }
 0x2e3   :  { %9263 = vst [vmem:[#allocation33_spill] sm:$0xff] %v8039_v42 }
 0x2e4   :  { %3690 = vst.msk [vmem:[#allocation3 + $0x188] sm:$0xff] %vm3640_vm10, %v3625_v30  ;;  %4053 = vrot.lane.b32.xlu1 %v8029_v29, %s5381_s21 }
 0x2e5   :  { %4636 = vrot.lane.b32.xlu0 %v7998_v17, %s5381_s21 }
 0x2e6   :  { %v8047_v50 = vpop.permute.xlu0 %3785 }
 0x2e8   :  { %4055 = vrot.lane.b32.xlu1 %v8039_v42, %s5381_s21 }
 0x2e9   :  { %4640 = vrot.lane.b32.xlu0 %v8029_v29, %s5381_s21  ;;  %v8065_v61 = vld [vmem:[#allocation3 + $0x180] sm:$0xff] }
 0x2ea   :  { %v8061_v46 = vpop.permute.xlu0 %3791  ;;  %9267 = vst [vmem:[#allocation37_spill] sm:$0xff] %v8065_v61 }
 0x2eb   :  { %v8071_v7 = vld [vmem:[#allocation3 + $0x188] sm:$0xff] }
 0x2ec   :  { %4057 = vrot.lane.b32.xlu1 %v8045_v26, %s5381_s21  ;;  %9269 = vst [vmem:[#allocation39_spill] sm:$0xff] %v8071_v7 }
 0x2ed   :  { %4644 = vrot.lane.b32.xlu0 %v8045_v26, %s5381_s21 }
 0x2ee   :  { %v8067_v30 = vpop.permute.xlu0 %3787 }
 0x2ef   :  { %9268 = vst [vmem:[#allocation38_spill] sm:$0xff] %v8067_v30 }
 0x2f0   :  { %4059 = vrot.lane.b32.xlu1 %v8053_v8, %s5381_s21 }
 0x2f1   :  { %4648 = vrot.lane.b32.xlu0 %v8057_v21, %s5381_s21 }
 0x2f2   :  { %v8075_v63 = vpop.permute.xlu0 %3797 }
 0x2f4   :  { %4061 = vrot.lane.b32.xlu1 %v8057_v21, %s5381_s21 }
 0x2f6   :  { %v8083_v51 = vpop.permute.xlu0 %3793 }
 0x2f8   :  { %4063 = vrot.lane.b32.xlu1 %v8065_v61, %s5381_s21 }
 0x2fc   :  { %4065 = vrot.lane.b32.xlu1 %v8071_v7, %s5381_s21  ;;  %v8093_v7 = vpop.permute.xlu0 %3799 }
 0x2fd   :  { %9273 = vst [vmem:[#allocation43_spill] sm:$0xff] %v8093_v7  ;;  %v8159_v7 = vld [vmem:[#allocation3 + $0x10] sm:$0xff] }
 0x2fe   :  { %v3867_v47 = vadd.f32 %v8159_v7, %v7949_v19 }
 0x300   :  { %4081 = vrot.lane.b32.xlu1 %v8077_v12, %s5381_s21  ;;  %v8101_v12 = vld [vmem:[#allocation3 + $0x1e8] sm:$0xff]  ;;  %v8103_v4 = vpop.permute.xlu0 %3795 }
 0x301   :  { %9274 = vst [vmem:[#allocation44_spill] sm:$0xff] %v8101_v12 }
 0x304   :  { %4083 = vrot.lane.b32.xlu1 %v8081_v2, %s5381_s21 }
 0x308   :  { %4085 = vrot.lane.b32.xlu1 %v8089_v23, %s5381_s21  ;;  %v8113_v23 = vpop.permute.xlu0 %3801 }
 0x309   :  { %v8095_v52 = vpop.permute.xlu1 %4033  ;;  %9275 = vst [vmem:[#allocation45_spill] sm:$0xff] %v8113_v23 }
 0x30c   :  { %4087 = vrot.lane.b32.xlu1 %v8097_v55, %s5381_s21  ;;  %v8121_v40 = vpop.permute.xlu0 %4031 }
 0x30d   :  { %v8105_v21 = vpop.permute.xlu1 %4035 }
 0x310   :  { %4089 = vrot.lane.b32.xlu1 %v8101_v12, %s5381_s21  ;;  %v8131_v12 = vpop.permute.xlu0 %3803 }
 0x311   :  { %v8115_v26 = vpop.permute.xlu1 %4037  ;;  %9277 = vst [vmem:[#allocation47_spill] sm:$0xff] %v8131_v12 }
 0x314   :  { %4091 = vrot.lane.b32.xlu1 %v8109_v14, %s5381_s21  ;;  %v8139_v53 = vpop.permute.xlu0 %3805 }
 0x315   :  { %v8123_v29 = vpop.permute.xlu1 %4039  ;;  %9279 = vst [vmem:[#allocation49_spill] sm:$0xff] %v8139_v53  ;;  %v3897_v53 = vsel %vm178_vm3, %v3865_v41, 0.0  ;;  %v3869_v41 = vadd.f32 %v7996_v60, %v7658_v20 }
 0x317   :  { %v3904_v62 = vsel %vm178_vm3, %v3869_v41, 0.0  ;;  %v3872_v41 = vadd.f32 %v8005_v45, %v7674_v56 }
 0x318   :  { %4093 = vrot.lane.b32.xlu1 %v8117_v11, %s5381_s21  ;;  %v8151_v12 = vpop.permute.xlu0 %3807 }
 0x319   :  { %v8133_v9 = vpop.permute.xlu1 %4041  ;;  %9280 = vst [vmem:[#allocation50_spill] sm:$0xff] %v8151_v12 }
 0x31c   :  { %4618 = vrot.lane.b32.xlu1 %v7769_v0, %s5381_s21  ;;  %v8167_v12 = vpop.permute.xlu0 %3809 }
 0x320   :  { %4622 = vrot.lane.b32.xlu1 %v7791_v6, %s5381_s21  ;;  %v8182_v19 = vpop.permute.xlu0 %3811 }
 0x324   :  { %4626 = vrot.lane.b32.xlu1 %v7815_v39, %s5381_s21 }
 0x326   :  { %v8137_v11 = vpop.permute.xlu1 %4067 }
 0x327   :  { %9278 = vst [vmem:[#allocation48_spill] sm:$0xff] %v8137_v11  ;;  %v3898_v11 = vsel %vm178_vm3, %v3866_v58, 0.0  ;;  %v3900_v58 = vsel %vm178_vm3, %v3867_v47, 0.0 }
 0x328   :  { %4630 = vrot.lane.b32.xlu1 %v7889_v32, %s5381_s21  ;;  %v3899_v43 = vadd.f32 %v3898_v11, %v3897_v53  ;;  %v3902_v53 = vsel %vm178_vm3, %v3868_v59, 0.0  ;;  %v3870_v11 = vadd.f32 %v8019_v3, %v7682_v18  ;;  %v3871_v59 = vadd.f32 %v7986_v15, %v7650_v16  ;;  %v8193_v3 = vpop.permute.xlu0 %3813 }
 0x329   :  { %v3874_v16 = vadd.f32 %v8067_v30, %v7722_v27  ;;  %v3875_v27 = vadd.f32 %v8037_v48, %v7694_v31  ;;  %v4127_v31 = vadd.f32 %v8121_v40, %v7769_v0  ;;  %v4131_v40 = vadd.f32 %v8123_v29, %v7815_v39 }
 0x32a   :  { %v8143_v23 = vpop.permute.xlu1 %4043  ;;  %v3906_v20 = vsel %vm178_vm3, %v3870_v11, 0.0  ;;  %v3879_v39 = vadd.f32 %v8075_v63, %v7733_v38 }
 0x32b   :  { %v4159_v0 = vsel %vm178_vm3, %v4127_v31, 0.0  ;;  %v4166_v29 = vsel %vm178_vm3, %v4131_v40, 0.0 }
 0x32c   :  { %4634 = vrot.lane.b32.xlu1 %v7964_v49, %s5381_s21  ;;  %v3924_v38 = vsel %vm178_vm3, %v3879_v39, 0.0 }
 0x32e   :  { %v8153_v17 = vpop.permute.xlu1 %4069 }
 0x32f   :  { %9281 = vst [vmem:[#allocation51_spill] sm:$0xff] %v8153_v17  ;;  %v3901_v17 = vadd.f32 %v3900_v58, %v3899_v43 }
 0x330   :  { %4638 = vrot.lane.b32.xlu1 %v8016_v25, %s5381_s21 }
 0x331   :  { %v3903_v5 = vadd.f32 %v3902_v53, %v3901_v17  ;;  %v3908_v17 = vsel %vm178_vm3, %v3871_v59, 0.0  ;;  %v8210_v59 = vpop.permute.xlu0 %3815 }
 0x332   :  { %v8163_v1 = vpop.permute.xlu1 %4045 }
 0x333   :  { %v3905_v43 = vadd.f32 %v3904_v62, %v3903_v5  ;;  %v3873_v5 = vadd.f32 %v8047_v50, %v7702_v24  ;;  %v3910_v62 = vsel %vm178_vm3, %v3872_v41, 0.0  ;;  %v3914_v24 = vsel %vm178_vm3, %v3874_v16, 0.0 }
 0x334   :  { %4642 = vrot.lane.b32.xlu1 %v8039_v42, %s5381_s21  ;;  %v4128_v41 = vadd.f32 %v8095_v52, %v7774_v13  ;;  %v3916_v16 = vsel %vm178_vm3, %v3875_v27, 0.0 }
 0x335   :  { %v3907_v18 = vadd.f32 %v3906_v20, %v3905_v43  ;;  %v3912_v20 = vsel %vm178_vm3, %v3873_v5, 0.0  ;;  %v3876_v5 = vadd.f32 %v8061_v46, %v7714_v36  ;;  %v3878_v36 = vadd.f32 %v8103_v4, %v7756_v10 }
 0x336   :  { %v8174_v25 = vpop.permute.xlu1 %4075 }
 0x337   :  { %v3909_v53 = vadd.f32 %v3908_v17, %v3907_v18 }
 0x338   :  { %4646 = vrot.lane.b32.xlu1 %v8053_v8, %s5381_s21 }
 0x339   :  { %v3911_v43 = vadd.f32 %v3910_v62, %v3909_v53  ;;  %v8223_v53 = vpop.permute.xlu0 %3817  ;;  %v3877_v62 = vadd.f32 %v8083_v51, %v7740_v57 }
 0x33a   :  { %v8184_v47 = vpop.permute.xlu1 %4071 }
 0x33b   :  { %v3913_v18 = vadd.f32 %v3912_v20, %v3911_v43  ;;  %v4129_v20 = vadd.f32 %v8105_v21, %v7791_v6  ;;  %v4160_v43 = vsel %vm178_vm3, %v4128_v41, 0.0  ;;  %v3920_v57 = vsel %vm178_vm3, %v3877_v62, 0.0 }
 0x33c   :  { %4650 = vrot.lane.b32.xlu1 %v8065_v61, %s5381_s21  ;;  %v4161_v21 = vadd.f32 %v4160_v43, %v4159_v0  ;;  %v4132_v41 = vadd.f32 %v8133_v9, %v7833_v37  ;;  %v4133_v62 = vadd.f32 %v8143_v23, %v7889_v32  ;;  %v4134_v9 = vadd.f32 %v8163_v1, %v7922_v22  ;;  %v9283_v1 = vld [vmem:[#allocation29_spill] sm:$0xff] }
 0x33d   :  { %v3915_v17 = vadd.f32 %v3914_v24, %v3913_v18  ;;  %v4130_v24 = vadd.f32 %v8115_v26, %v7800_v54  ;;  %v3918_v18 = vsel %vm178_vm3, %v3876_v5, 0.0  ;;  %v4162_v6 = vsel %vm178_vm3, %v4129_v20, 0.0  ;;  %v8249_v27 = vpop.permute.xlu0 %3819 }
 0x33e   :  { %v8191_v58 = vpop.permute.xlu1 %4047  ;;  %v3922_v54 = vsel %vm178_vm3, %v3878_v36, 0.0  ;;  %v4168_v36 = vsel %vm178_vm3, %v4132_v41, 0.0  ;;  %v4170_v32 = vsel %vm178_vm3, %v4133_v62, 0.0  ;;  %v4172_v22 = vsel %vm178_vm3, %v4134_v9, 0.0 }
 0x33f   :  { %v3917_v13 = vadd.f32 %v3916_v16, %v3915_v17  ;;  %v4164_v26 = vsel %vm178_vm3, %v4130_v24, 0.0  ;;  %v4163_v16 = vadd.f32 %v4162_v6, %v4161_v21  ;;  %v9282_v24 = vld [vmem:[#allocation43_spill] sm:$0xff]  ;;  %v4135_v23 = vadd.f32 %v8191_v58, %v7964_v49  ;;  %v9285_v21 = vld [vmem:[#allocation45_spill] sm:$0xff] }
 0x340   :  { %4654 = vrot.lane.b32.xlu1 %v7872_v35, %s5381_s21 }
 0x341   :  { %v3919_v10 = vadd.f32 %v3918_v18, %v3917_v13  ;;  %v4165_v20 = vadd.f32 %v4164_v26, %v4163_v16  ;;  %v8265_v43 = vpop.permute.xlu0 %3821  ;;  %v3880_v18 = vadd.f32 %v9282_v24, %v7749_v34  ;;  %v9287_v34 = vld [vmem:[#allocation47_spill] sm:$0xff]  ;;  %v4174_v39 = vsel %vm178_vm3, %v4135_v23, 0.0 }
 0x342   :  { %v8202_v11 = vpop.permute.xlu1 %4077  ;;  %v9292_v23 = vld [vmem:[#allocation15_spill] sm:$0xff] }
 0x343   :  { %v3921_v5 = vadd.f32 %v3920_v57, %v3919_v10  ;;  %v4167_v37 = vadd.f32 %v4166_v29, %v4165_v20  ;;  %v9284_v10 = vld [vmem:[#allocation12_spill] sm:$0xff]  ;;  %v3926_v41 = vsel %vm178_vm3, %v3880_v18, 0.0  ;;  %v9288_v29 = vld [vmem:[#allocation30_spill] sm:$0xff] }
 0x344   :  { %4658 = vrot.lane.b32.xlu1 %v7952_v28, %s5381_s21 }
 0x345   :  { %v3923_v31 = vadd.f32 %v3922_v54, %v3921_v5  ;;  %v4169_v0 = vadd.f32 %v4168_v36, %v4167_v37  ;;  %v3881_v54 = vadd.f32 %v9285_v21, %v9284_v10  ;;  %v9286_v5 = vld [vmem:[#allocation14_spill] sm:$0xff]  ;;  %v9289_v36 = vld [vmem:[#allocation13_spill] sm:$0xff] }
 0x346   :  { %v8212_v56 = vpop.permute.xlu1 %4073  ;;  %v3882_v16 = vadd.f32 %v9287_v34, %v9286_v5  ;;  %v9293_v5 = vld [vmem:[#allocation50_spill] sm:$0xff] }
 0x347   :  { %v3925_v57 = vadd.f32 %v3924_v38, %v3923_v31  ;;  %v4171_v26 = vadd.f32 %v4170_v32, %v4169_v0  ;;  %v8284_v31 = vpop.permute.xlu0 %3823  ;;  %v9291_v38 = vld [vmem:[#allocation32_spill] sm:$0xff]  ;;  %v3928_v18 = vsel %vm178_vm3, %v3881_v54, 0.0 }
 0x348   :  { %4662 = vrot.lane.b32.xlu1 %v7935_v44, %s5381_s21  ;;  %v3930_v10 = vsel %vm178_vm3, %v3882_v16, 0.0 }
 0x349   :  { %v3927_v58 = vadd.f32 %v3926_v41, %v3925_v57  ;;  %v4173_v62 = vadd.f32 %v4172_v22, %v4171_v26 }
 0x34a   :  { %v4050_v30 = vpop.permute.xlu1 %4049 }
 0x34b   :  { %v4136_v40 = vadd.f32 %v4050_v30, %v9283_v1  ;;  %v9290_v30 = vld [vmem:[#allocation49_spill] sm:$0xff]  ;;  %v4175_v0 = vadd.f32 %v4174_v39, %v4173_v62  ;;  %v3929_v26 = vadd.f32 %v3928_v18, %v3927_v58  ;;  %v9295_v39 = vld [vmem:[#allocation34_spill] sm:$0xff]  ;;  %v9296_v1 = vld [vmem:[#allocation16_spill] sm:$0xff] }
 0x34c   :  { %4666 = vrot.lane.b32.xlu1 %v8007_v33, %s5381_s21  ;;  %v3883_v9 = vadd.f32 %v9290_v30, %v9289_v36 }
 0x34d   :  { %v4176_v37 = vsel %vm178_vm3, %v4136_v40, 0.0  ;;  %v9294_v40 = vld [vmem:[#allocation17_spill] sm:$0xff]  ;;  %v3931_v16 = vadd.f32 %v3930_v10, %v3929_v26 }
 0x34e   :  { %v8234_v52 = vpop.permute.xlu1 %4079  ;;  %v4177_v41 = vadd.f32 %v4176_v37, %v4175_v0  ;;  %v3932_v36 = vsel %vm178_vm3, %v3883_v9, 0.0 }
 0x34f   :  { %v3933_v37 = vadd.f32 %v3932_v36, %v3931_v16 }
 0x350   :  { %4670 = vrot.lane.b32.xlu1 %v8081_v2, %s5381_s21 }
 0x352   :  { %v4052_v17 = vpop.permute.xlu1 %4051 }
 0x353   :  { %v4137_v49 = vadd.f32 %v4052_v17, %v9288_v29  ;;  %v3884_v17 = vadd.f32 %v9293_v5, %v9292_v23 }
 0x354   :  { %4674 = vrot.lane.b32.xlu1 %v8097_v55, %s5381_s21 }
 0x355   :  { %v4178_v57 = vsel %vm178_vm3, %v4137_v49, 0.0  ;;  %v3934_v49 = vsel %vm178_vm3, %v3884_v17, 0.0 }
 0x356   :  { %v4054_v13 = vpop.permute.xlu1 %4053  ;;  %v4179_v23 = vadd.f32 %v4178_v57, %v4177_v41  ;;  %v9298_v57 = vld [vmem:[#allocation36_spill] sm:$0xff]  ;;  %v3935_v17 = vadd.f32 %v3934_v49, %v3933_v37 }
 0x357   :  { %v4138_v32 = vadd.f32 %v4054_v13, %v9291_v38  ;;  %v3885_v13 = vadd.f32 %v8167_v12, %v9294_v40  ;;  %v8301_v38 = vpop.permute.xlu0 %3825  ;;  %v9297_v40 = vld [vmem:[#allocation18_spill] sm:$0xff] }
 0x358   :  { %4678 = vrot.lane.b32.xlu1 %v8109_v14, %s5381_s21 }
 0x359   :  { %v4180_v54 = vsel %vm178_vm3, %v4138_v32, 0.0  ;;  %v3936_v32 = vsel %vm178_vm3, %v3885_v13, 0.0 }
 0x35a   :  { %v4056_v6 = vpop.permute.xlu1 %4055  ;;  %v4181_v18 = vadd.f32 %v4180_v54, %v4179_v23  ;;  %v3937_v36 = vadd.f32 %v3936_v32, %v3935_v17 }
 0x35b   :  { %v4139_v22 = vadd.f32 %v4056_v6, %v8039_v42  ;;  %v3886_v6 = vadd.f32 %v8182_v19, %v9296_v1  ;;  %v8317_v54 = vpop.permute.xlu0 %3827 }
 0x35d   :  { %v4182_v58 = vsel %vm178_vm3, %v4139_v22, 0.0  ;;  %v3938_v1 = vsel %vm178_vm3, %v3886_v6, 0.0 }
 0x35e   :  { %v4058_v20 = vpop.permute.xlu1 %4057  ;;  %v4183_v41 = vadd.f32 %v4182_v58, %v4181_v18  ;;  %v3939_v6 = vadd.f32 %v3938_v1, %v3937_v36  ;;  %v9301_v18 = vld [vmem:[#allocation9_spill] sm:$0xff]  ;;  %v9304_v1 = vld [vmem:[#allocation39_spill] sm:$0xff] }
 0x35f   :  { %v4140_v62 = vadd.f32 %v4058_v20, %v9295_v39  ;;  %v3887_v20 = vadd.f32 %v8193_v3, %v9297_v40  ;;  %v9299_v39 = vld [vmem:[#allocation11_spill] sm:$0xff]  ;;  %v9300_v40 = vld [vmem:[#allocation8_spill] sm:$0xff] }
 0x360   :  { %v3888_v22 = vadd.f32 %v8210_v59, %v9299_v39 }
 0x361   :  { %v4184_v10 = vsel %vm178_vm3, %v4140_v62, 0.0  ;;  %v3940_v23 = vsel %vm178_vm3, %v3887_v20, 0.0  ;;  %v3889_v62 = vadd.f32 %v8223_v53, %v9300_v40  ;;  %v9302_v20 = vld [vmem:[#allocation48_spill] sm:$0xff] }
 0x362   :  { %v4060_v29 = vpop.permute.xlu1 %4059  ;;  %v4185_v13 = vadd.f32 %v4184_v10, %v4183_v41  ;;  %v3942_v39 = vsel %vm178_vm3, %v3888_v22, 0.0  ;;  %v3941_v32 = vadd.f32 %v3940_v23, %v3939_v6  ;;  %v4145_v41 = vadd.f32 %v9302_v20, %v7872_v35  ;;  %v8334_v22 = vpop.permute.xlu0 %3829  ;;  %v9307_v23 = vld [vmem:[#allocation51_spill] sm:$0xff] }
 0x363   :  { %v4141_v9 = vadd.f32 %v4060_v29, %v8053_v8  ;;  %v3944_v40 = vsel %vm178_vm3, %v3889_v62, 0.0  ;;  %9305 = vst [vmem:[#allocation43_spill] sm:$0xff] %v8334_v22  ;;  %v9308_v6 = vld [vmem:[#allocation19_spill] sm:$0xff] }
 0x364   :  { %v3943_v36 = vadd.f32 %v3942_v39, %v3941_v32  ;;  %v9309_v32 = vld [vmem:[#allocation20_spill] sm:$0xff] }
 0x365   :  { %v4186_v29 = vsel %vm178_vm3, %v4141_v9, 0.0  ;;  %v3890_v9 = vadd.f32 %v8249_v27, %v9301_v18 }
 0x366   :  { %v4062_v0 = vpop.permute.xlu1 %4061  ;;  %v4187_v37 = vadd.f32 %v4186_v29, %v4185_v13  ;;  %v3945_v62 = vadd.f32 %v3944_v40, %v3943_v36  ;;  %v9311_v36 = vld [vmem:[#allocation28_spill] sm:$0xff] }
 0x367   :  { %v4142_v26 = vadd.f32 %v9298_v57, %v4062_v0  ;;  %v3946_v18 = vsel %vm178_vm3, %v3890_v9, 0.0  ;;  %v4147_v9 = vadd.f32 %v8184_v47, %v7952_v28  ;;  %v4149_v28 = vadd.f32 %v8174_v25, %v7935_v44 }
 0x369   :  { %v4188_v49 = vsel %vm178_vm3, %v4142_v26, 0.0  ;;  %v9303_v26 = vld [vmem:[#allocation10_spill] sm:$0xff] }
 0x36a   :  { %v4064_v16 = vpop.permute.xlu1 %4063  ;;  %v4189_v10 = vadd.f32 %v4188_v49, %v4187_v37  ;;  %v3892_v37 = vadd.f32 %v8284_v31, %v9308_v6 }
 0x36b   :  { %v4143_v58 = vadd.f32 %v4064_v16, %v8065_v61  ;;  %v3891_v16 = vadd.f32 %v8265_v43, %v9303_v26  ;;  %v4194_v26 = vsel %vm178_vm3, %v4145_v41, 0.0  ;;  %v4148_v41 = vadd.f32 %v8212_v56, %v9311_v36  ;;  %v9314_v56 = vld [vmem:[#allocation26_spill] sm:$0xff] }
 0x36c   :  { %v3950_v57 = vsel %vm178_vm3, %v3892_v37, 0.0 }
 0x36d   :  { %v4190_v0 = vsel %vm178_vm3, %v4143_v58, 0.0  ;;  %v9306_v58 = vld [vmem:[#allocation7_spill] sm:$0xff]  ;;  %v3948_v39 = vsel %vm178_vm3, %v3891_v16, 0.0  ;;  %v8354_v16 = vpop.permute.xlu0 %3831 }
 0x36e   :  { %v4066_v17 = vpop.permute.xlu1 %4065  ;;  %v4191_v13 = vadd.f32 %v4190_v0, %v4189_v10  ;;  %v4146_v49 = vadd.f32 %v9307_v23, %v9306_v58  ;;  %v3893_v0 = vadd.f32 %v8301_v38, %v9309_v32  ;;  %v3947_v10 = vadd.f32 %v3946_v18, %v3945_v62  ;;  %9312 = vst [vmem:[#allocation12_spill] sm:$0xff] %v8354_v16 }
 0x36f   :  { %v4144_v29 = vadd.f32 %v4066_v17, %v9304_v1  ;;  %v4198_v18 = vsel %vm178_vm3, %v4147_v9, 0.0  ;;  %v4202_v9 = vsel %vm178_vm3, %v4149_v28, 0.0 }
 0x370   :  { %v4196_v23 = vsel %vm178_vm3, %v4146_v49, 0.0  ;;  %v3952_v47 = vsel %vm178_vm3, %v3893_v0, 0.0  ;;  %v9313_v49 = vld [vmem:[#allocation24_spill] sm:$0xff] }
 0x371   :  { %v4192_v35 = vsel %vm178_vm3, %v4144_v29, 0.0  ;;  %v9310_v29 = vld [vmem:[#allocation22_spill] sm:$0xff]  ;;  %v3895_v37 = vadd.f32 %v8334_v22, %v9313_v49 }
 0x372   :  { %v4193_v20 = vadd.f32 %v4192_v35, %v4191_v13  ;;  %v4082_v61 = vpop.permute.xlu1 %4081  ;;  %v3894_v40 = vadd.f32 %v8317_v54, %v9310_v29  ;;  %v3949_v13 = vadd.f32 %v3948_v39, %v3947_v10  ;;  %v4150_v39 = vadd.f32 %v8202_v11, %v9314_v56  ;;  %v9315_v10 = vld [vmem:[#allocation27_spill] sm:$0xff] }
 0x373   :  { %v3956_v42 = vsel %vm178_vm3, %v3895_v37, 0.0 }
 0x374   :  { %v4195_v17 = vadd.f32 %v4194_v26, %v4193_v20  ;;  %v3951_v62 = vadd.f32 %v3950_v57, %v3949_v13  ;;  %v3954_v26 = vsel %vm178_vm3, %v3894_v40, 0.0  ;;  %v4151_v57 = vadd.f32 %v8234_v52, %v8007_v33  ;;  %v9317_v52 = vld [vmem:[#allocation42_spill] sm:$0xff] }
 0x376   :  { %v4197_v35 = vadd.f32 %v4196_v23, %v4195_v17  ;;  %v4084_v8 = vpop.permute.xlu1 %4083  ;;  %v3896_v17 = vadd.f32 %v8354_v16, %v9315_v10  ;;  %v4200_v23 = vsel %vm178_vm3, %v4148_v41, 0.0  ;;  %v3953_v44 = vadd.f32 %v3952_v47, %v3951_v62 }
 0x377   :  { %v4206_v62 = vsel %vm178_vm3, %v4151_v57, 0.0  ;;  %v4153_v28 = vadd.f32 %v4084_v8, %v8081_v2 }
 0x378   :  { %v4199_v20 = vadd.f32 %v4198_v18, %v4197_v35  ;;  %v3955_v13 = vadd.f32 %v3954_v26, %v3953_v44  ;;  %v4204_v35 = vsel %vm178_vm3, %v4150_v39, 0.0  ;;  %v3958_v11 = vsel %vm178_vm3, %v3896_v17, 0.0  ;;  %v9316_v18 = vld [vmem:[#allocation40_spill] sm:$0xff] }
 0x379   :  { %v4152_v16 = vadd.f32 %v4082_v61, %v9316_v18  ;;  %v4210_v39 = vsel %vm178_vm3, %v4153_v28, 0.0  ;;  %v9319_v28 = vld [vmem:[#allocation46_spill] sm:$0xff] }
 0x37a   :  { %v4201_v25 = vadd.f32 %v4200_v23, %v4199_v20  ;;  %v4086_v0 = vpop.permute.xlu1 %4085  ;;  %v3957_v22 = vadd.f32 %v3956_v42, %v3955_v13  ;;  %v9318_v13 = vld [vmem:[#allocation44_spill] sm:$0xff] }
 0x37b   :  { %v4208_v23 = vsel %vm178_vm3, %v4152_v16, 0.0  ;;  %v4154_v26 = vadd.f32 %v4086_v0, %v9317_v52 }
 0x37c   :  { %v4203_v40 = vadd.f32 %v4202_v9, %v4201_v25  ;;  %v3959_v20 = vadd.f32 %v3958_v11, %v3957_v22 }
 0x37d   :  { %v4212_v9 = vsel %vm178_vm3, %v4154_v26, 0.0 }
 0x37e   :  { %v4205_v41 = vadd.f32 %v4204_v35, %v4203_v40  ;;  %v4088_v47 = vpop.permute.xlu1 %4087  ;;  %v3960_v61 = vrot.slane %v3959_v20, 4 }
 0x37f   :  { %v4155_v17 = vadd.f32 %v4088_v47, %v8097_v55 }
 0x380   :  { %v4207_v37 = vadd.f32 %v4206_v62, %v4205_v41  ;;  %v3961_v35 = vadd.f32 %v3960_v61, %v3959_v20 }
 0x381   :  { %v4214_v22 = vsel %vm178_vm3, %v4155_v17, 0.0 }
 0x382   :  { %v4209_v44 = vadd.f32 %v4208_v23, %v4207_v37  ;;  %v4090_v25 = vpop.permute.xlu1 %4089  ;;  %v3962_v23 = vrot.slane %v3961_v35, 2 }
 0x383   :  { %v4156_v57 = vadd.f32 %v4090_v25, %v9318_v13 }
 0x384   :  { %v4211_v42 = vadd.f32 %v4210_v39, %v4209_v44  ;;  %v3963_v39 = vadd.f32 %v3962_v23, %v3961_v35  ;;  %v9320_v35 = vmov 0.0  }
 0x385   :  { %v4216_v11 = vsel %vm178_vm3, %v4156_v57, 0.0 }
 0x386   :  { %v4213_v40 = vadd.f32 %v4212_v9, %v4211_v42  ;;  %v4092_v8 = vpop.permute.xlu1 %4091  ;;  %v3964_v9 = vrot.slane %v3963_v39, 1 }
 0x387   :  { %v4157_v16 = vadd.f32 %v4092_v8, %v8109_v14 }
 0x388   :  { %v4215_v0 = vadd.f32 %v4214_v22, %v4213_v40  ;;  %v3965_v61 = vadd.f32 %v3964_v9, %v3963_v39 }
 0x389   :  { %v4218_v47 = vsel %vm178_vm3, %v4157_v16, 0.0 }
 0x38a   :  { %v4217_v41 = vadd.f32 %v4216_v11, %v4215_v0  ;;  %v4094_v62 = vpop.permute.xlu1 %4093  ;;  %v3966_v22 = vmul.f32 0.00390625, %v3965_v61  ;;  %v5300_v11 = vld [vmem:[%s9114_s5] sm:$0xff]  }
 0x38b   :  { %v4158_v37 = vadd.f32 %v4094_v62, %v9319_v28  ;;  %v5301_v62 = vld [vmem:[%s9114_s5 + $0x8] sm:$0xff]  }
 0x38c   :  { %v4219_v26 = vadd.f32 %v4218_v47, %v4217_v41  ;;  %v5076_v47 = vld [vmem:[%s9113_s4] ss:$0 sm:$0xff]  ;;  %s5385_s4 = smov [#allocation4]  }
 0x38d   :  { %v4220_v44 = vsel %vm178_vm3, %v4158_v37, 0.0  ;;  %s4816_s5 = sshll.u32 %s5385_s4, 4  ;;  %s4817_s5 = int_to_ptr.vmem [resolvable:$true] %s4816_s5 }
 0x38e   :  { %v4221_v25 = vadd.f32 %v4220_v44, %v4219_v26  ;;  %p5360_p1 = scmp.lt.s32.totalorder %s4817_s5, %s4817_s5 }
 0x390   :  { %v4222_v42 = vrot.slane %v4221_v25, 4 }
 0x392   :  { %v4223_v17 = vadd.f32 %v4222_v42, %v4221_v25 }
 0x394   :  { %v4224_v8 = vrot.slane %v4223_v17, 2 }
 0x396   :  { %v4225_v20 = vadd.f32 %v4224_v8, %v4223_v17  ;;  %v5080_v17 = vld [vmem:[%s9115_s6] ss:$0 sm:$0xff]  ;;  %s5355_s6 = scalar_lea.vmem %s4817_s5, 8192 }
 0x397   :  { %p5356_p0 = scmp.ne.s32.totalorder %s4817_s5, %s5355_s6  ;;  %p5361_p2 = scmp.lt.s32.totalorder %s5355_s6, %s5355_s6 }
 0x398   :  { %v4226_v40 = vrot.slane %v4225_v20, 1 }
 0x399   :  { %p5362_p3 = por %p5361_p2, %p5360_p1 }
 0x39a   :  { %v4227_v57 = vadd.f32 %v4226_v40, %v4225_v20 }
 0x39b   :  { %p5363_p4 = pnand %p5362_p3, %p5356_p0 }
 0x39c   :  { %v4228_v0 = vmul.f32 0.00390625, %v4227_v57  ;;  %v8423_v57 = vpop.permute.xlu0 %4620 }
 0x39e   :  { %v4230_v16 = vsel %vm4229_vm12, %v3966_v22, %v4228_v0  ;;  %v8429_v22 = vpop.permute.xlu1 %4618 }
 0x39f   :  { %v4231_v41 = vpack.c.bf16 %v4230_v16, %v4230_v16 }
 0x3a1   :  { %5198 = vmatmul.mubr.msk.bf16.vlgmr.msra.gmra.mrb[92].mxu1 %vm178_vm3, %v4231_v41 }
 0x3a2   :  { %5202 = vmatpush3.bf16.msra.mxu1 %v5300_v11  ;;  %5205 = vmatprep.mubr.msk.bf16.mxu1 %vm5384_vm11, %v9320_v35 }
 0x3a3   :  { %5203 = vmatprep.subr.bf16.mxu1 %v9320_v35 }
 0x3a6   :  { %5204 = vmatpush3.bf16.msra.mxu1 %v5301_v62 }
 0x474   :  { %v4292_v37 = vpop.f32.mrb[92].mxu1 }
 0x475   :  { %v4293_v23 = vadd.f32 %v5076_v47, %v4292_v37  ;;  %v5199_v26 = vpop.f32.mrb[93].mxu1 }
 0x476   :  { %v4295_v44 = vpop.f32.mrb[94].mxu1 }
 0x477   :  { %v4298_v25 = vmax.f32 %v4293_v23, 0.0  ;;  %v5200_v39 = vpop.f32.mrb[95].mxu1 }
 0x479   :  { %v4299_v42 = vpack.c.bf16 %v4298_v25, %v4298_v25 }
 0x47b   :  { %5206 = vmatmul.mubr.msk.bf16.vlgmr.msra.gmra.mrb[96].mxu1 %vm178_vm3, %v4299_v42  ;;  %v4378_v42 = vlaneseq }
 0x54e   :  { %v4360_v9 = vpop.f32.mrb[96].mxu1 }
 0x54f   :  { %v4361_v8 = vadd.f32 %v5080_v17, %v4360_v9  ;;  %v5207_v20 = vpop.f32.mrb[97].mxu1  ;;  %v4379_v17 = vshrl.u32 %v4378_v42, 7  ;;  %v5311_v42 = vld [vmem:[#allocation3 + $0x8] sm:$0xff] }
 0x550   :  { %v4363_v61 = vpop.f32.mrb[98].mxu1 }
 0x551   :  { %4367 = vrot.lane.b32.xlu0 %v4361_v8, %s5381_s21  ;;  %v5208_v40 = vpop.f32.mrb[99].mxu1  ;;  %v4380_v20 = vsub.s32 0, %v4379_v17  ;;  %v4548_v61 = vsub.s32 1, %v4379_v17 }
 0x555   :  { %4652 = vrot.lane.b32.xlu0 %v9304_v1, %s5381_s21 }
 0x559   :  { %4656 = vrot.lane.b32.xlu0 %v9306_v58, %s5381_s21  ;;  %v8425_v58 = vpop.permute.xlu0 %4624 }
 0x55d   :  { %4660 = vrot.lane.b32.xlu0 %v9311_v36, %s5381_s21  ;;  %v8427_v36 = vpop.permute.xlu0 %4628 }
 0x561   :  { %4664 = vrot.lane.b32.xlu0 %v9314_v56, %s5381_s21  ;;  %v8431_v56 = vpop.permute.xlu0 %4632 }
 0x565   :  { %4668 = vrot.lane.b32.xlu0 %v9316_v18, %s5381_s21  ;;  %v8433_v18 = vpop.permute.xlu1 %4622  ;;  %v8435_v0 = vpop.permute.xlu0 %4636 }
 0x569   :  { %4672 = vrot.lane.b32.xlu0 %v9317_v52, %s5381_s21  ;;  %v8437_v52 = vpop.permute.xlu1 %4626 }
 0x56d   :  { %4676 = vrot.lane.b32.xlu0 %v9318_v13, %s5381_s21  ;;  %v8439_v13 = vpop.permute.xlu0 %4640  ;;  %v8441_v16 = vpop.permute.xlu1 %4630 }
 0x571   :  { %4680 = vrot.lane.b32.xlu0 %v9319_v28, %s5381_s21  ;;  %v8443_v28 = vpop.permute.xlu0 %4644  ;;  %v8445_v11 = vpop.permute.xlu1 %4634 }
 0x575   :  { %v8447_v41 = vpop.permute.xlu0 %4648  ;;  %v8449_v35 = vpop.permute.xlu1 %4638 }
 0x576   :  { %9321 = vst [vmem:[#allocation45_spill] sm:$0xff] %v8447_v41 }
 0x579   :  { %v8451_v23 = vpop.permute.xlu1 %4642 }
 0x57d   :  { %v8453_v26 = vpop.permute.xlu1 %4646 }
 0x581   :  { %v8455_v25 = vpop.permute.xlu1 %4650 }
 0x585   :  { %v8457_v9 = vpop.permute.xlu1 %4654 }
 0x586   :  { %9322 = vst [vmem:[#allocation14_spill] sm:$0xff] %v8457_v9 }
 0x589   :  { %v8459_v1 = vpop.permute.xlu1 %4658 }
 0x58a   :  { %9323 = vst [vmem:[#allocation47_spill] sm:$0xff] %v8459_v1  ;;  %v5312_v1 = vld [vmem:[#allocation3 + $0x18] sm:$0xff] }
 0x5c3   :  { %v4368_v62 = vpop.permute.xlu0 %4367 }
 0x5c4   :  { %v4370_v47 = vsub.f32 %v4361_v8, %v4368_v62 }
 0x5c6   :  { %v5084_v37 = vmul.f32 -1.442695, %v4370_v47 }
 0x5c8   :  { %5302 = vpow2.f32 %v5084_v37 }
 0x5d2   :  { %v5303_v44 = vpop.eup %5302 }
 0x5d3   :  { %v4374_v39 = vadd.f32 1.0, %v5303_v44  ;;  %v5310_v44 = vld [vmem:[#allocation3] sm:$0xff] }
 0x5d5   :  { %5304 = vrcp.f32 %v4374_v39 }
 0x5df   :  { %v5305_v40 = vpop.eup %5304 }
 0x5e0   :  { %v4377_v8 = vsub.f32 1.0, %v5305_v40  ;;  %v8461_v62 = vrot.slane %v5305_v40, %v4380_v20  ;;  %v8463_v47 = vrot.slane %v5305_v40, %v4548_v61 }
 0x5e2   :  { %9324 = vst [vmem:[#allocation13_spill] sm:$0xff] %v8463_v47  ;;  %v8465_v37 = vrot.slane %v4377_v8, %v4380_v20  ;;  %v8467_v41 = vrot.slane %v4377_v8, %v4548_v61  ;;  %v8470_v39 = vmul.f32 %v5310_v44, %v8461_v62  ;;  %v8473_v9 = vmul.f32 %v5311_v42, %v8461_v62  ;;  %v5313_v20 = vld [vmem:[#allocation3 + $0x20] sm:$0xff]  ;;  %v5314_v8 = vld [vmem:[#allocation3 + $0x28] sm:$0xff] }
 0x5e3   :  { %v8477_v17 = vmul.f32 %v8159_v7, %v8461_v62  ;;  %v8480_v40 = vmul.f32 %v5312_v1, %v8461_v62  ;;  %v8483_v61 = vmul.f32 %v5313_v20, %v8461_v62  ;;  %v8486_v44 = vmul.f32 %v5314_v8, %v8461_v62  ;;  %v8502_v8 = vpop.permute.xlu1 %4662 }
 0x5e4   :  { %9325 = vst [vmem:[#allocation49_spill] sm:$0xff] %v8467_v41  ;;  %9326 = vst [vmem:[#allocation15_spill] sm:$0xff] %v8470_v39  ;;  %v5315_v39 = vld [vmem:[#allocation3 + $0x30] sm:$0xff] }
 0x5e5   :  { %9327 = vst [vmem:[#allocation50_spill] sm:$0xff] %v8473_v9  ;;  %9328 = vst [vmem:[#allocation17_spill] sm:$0xff] %v8477_v17  ;;  %v8489_v42 = vmul.f32 %v5315_v39, %v8461_v62  ;;  %v5316_v9 = vld [vmem:[#allocation3 + $0x38] sm:$0xff]  ;;  %v5317_v17 = vld [vmem:[#allocation3 + $0x40] sm:$0xff] }
 0x5e6   :  { %9329 = vst [vmem:[#allocation16_spill] sm:$0xff] %v8480_v40  ;;  %9330 = vst [vmem:[#allocation18_spill] sm:$0xff] %v8483_v61  ;;  %v8492_v7 = vmul.f32 %v5316_v9, %v8461_v62  ;;  %v8495_v1 = vmul.f32 %v5317_v17, %v8461_v62  ;;  %v5318_v40 = vld [vmem:[#allocation3 + $0x48] sm:$0xff]  ;;  %v8500_v61 = vpop.permute.xlu0 %4652 }
 0x5e7   :  { %9331 = vst [vmem:[#allocation11_spill] sm:$0xff] %v8486_v44  ;;  %9332 = vst [vmem:[#allocation8_spill] sm:$0xff] %v8489_v42  ;;  %v8498_v20 = vmul.f32 %v5318_v40, %v8461_v62  ;;  %v5319_v44 = vld [vmem:[#allocation3 + $0x50] sm:$0xff]  ;;  %v5320_v42 = vld [vmem:[#allocation3 + $0x58] sm:$0xff] }
 0x5e8   :  { %9333 = vst [vmem:[#allocation9_spill] sm:$0xff] %v8492_v7  ;;  %9334 = vst [vmem:[#allocation48_spill] sm:$0xff] %v8495_v1  ;;  %v8505_v39 = vmul.f32 %v5319_v44, %v8461_v62  ;;  %v8508_v9 = vmul.f32 %v5320_v42, %v8461_v62  ;;  %v5321_v7 = vld [vmem:[#allocation3 + $0x60] sm:$0xff]  ;;  %v5322_v1 = vld [vmem:[#allocation3 + $0x68] sm:$0xff] }
 0x5e9   :  { %9335 = vst [vmem:[#allocation10_spill] sm:$0xff] %v8498_v20  ;;  %9336 = vst [vmem:[#allocation7_spill] sm:$0xff] %v8500_v61  ;;  %v8511_v17 = vmul.f32 %v5321_v7, %v8461_v62  ;;  %v8514_v40 = vmul.f32 %v5322_v1, %v8461_v62  ;;  %v5323_v20 = vld [vmem:[#allocation3 + $0x70] sm:$0xff] }
 0x5ea   :  { %9337 = vst [vmem:[#allocation51_spill] sm:$0xff] %v8502_v8  ;;  %9338 = vst [vmem:[#allocation19_spill] sm:$0xff] %v8505_v39  ;;  %v8517_v61 = vmul.f32 %v5323_v20, %v8461_v62  ;;  %v5324_v8 = vld [vmem:[#allocation3 + $0x78] sm:$0xff]  ;;  %v5325_v39 = vld [vmem:[#allocation3 + $0x80] sm:$0xff] }
 0x5eb   :  { %9339 = vst [vmem:[#allocation20_spill] sm:$0xff] %v8508_v9  ;;  %9340 = vst [vmem:[#allocation22_spill] sm:$0xff] %v8511_v17  ;;  %v8520_v44 = vmul.f32 %v5324_v8, %v8461_v62  ;;  %v8523_v42 = vmul.f32 %v5325_v39, %v8461_v62  ;;  %v5326_v9 = vld [vmem:[#allocation3 + $0x88] sm:$0xff]  ;;  %v5327_v17 = vld [vmem:[#allocation3 + $0x90] sm:$0xff] }
 0x5ec   :  { %9341 = vst [vmem:[#allocation28_spill] sm:$0xff] %v8514_v40  ;;  %9342 = vst [vmem:[#allocation24_spill] sm:$0xff] %v8517_v61  ;;  %v8526_v7 = vmul.f32 %v5326_v9, %v8461_v62  ;;  %v8529_v1 = vmul.f32 %v5327_v17, %v8461_v62  ;;  %v5328_v40 = vld [vmem:[#allocation3 + $0x98] sm:$0xff]  ;;  %v5329_v61 = vld [vmem:[#allocation3 + $0xa0] sm:$0xff] }
 0x5ed   :  { %9343 = vst [vmem:[#allocation26_spill] sm:$0xff] %v8520_v44  ;;  %9344 = vst [vmem:[#allocation27_spill] sm:$0xff] %v8523_v42  ;;  %v8532_v20 = vmul.f32 %v5328_v40, %v8461_v62  ;;  %v8535_v8 = vmul.f32 %v5329_v61, %v8461_v62  ;;  %v5330_v44 = vld [vmem:[#allocation3 + $0xa8] sm:$0xff]  ;;  %v5331_v42 = vld [vmem:[#allocation3 + $0xb0] sm:$0xff] }
 0x5ee   :  { %9345 = vst [vmem:[#allocation40_spill] sm:$0xff] %v8526_v7  ;;  %9346 = vst [vmem:[#allocation42_spill] sm:$0xff] %v8529_v1  ;;  %v8538_v39 = vmul.f32 %v5330_v44, %v8461_v62  ;;  %v8541_v9 = vmul.f32 %v5331_v42, %v8461_v62  ;;  %v5332_v7 = vld [vmem:[#allocation3 + $0xb8] sm:$0xff]  ;;  %v5333_v1 = vld [vmem:[#allocation3 + $0xc0] sm:$0xff]  ;;  %v8557_v42 = vmul.f32 %v8461_v62, %v9308_v6 }
 0x5ef   :  { %9347 = vst [vmem:[#allocation44_spill] sm:$0xff] %v8532_v20  ;;  %9348 = vst [vmem:[#allocation46_spill] sm:$0xff] %v8535_v8  ;;  %v8544_v17 = vmul.f32 %v5332_v7, %v8461_v62  ;;  %v8547_v40 = vmul.f32 %v5333_v1, %v8461_v62  ;;  %v5334_v20 = vld [vmem:[#allocation3 + $0xc8] sm:$0xff]  ;;  %v5335_v8 = vld [vmem:[#allocation3 + $0xd0] sm:$0xff]  ;;  %v8561_v7 = vmul.f32 %v8461_v62, %v9309_v32 }
 0x5f0   :  { %v8550_v61 = vmul.f32 %v5334_v20, %v8461_v62  ;;  %v8553_v44 = vmul.f32 %v5335_v8, %v8461_v62  ;;  %9351 = vst [vmem:[#allocation54_spill] sm:$0xff] %v8557_v42  ;;  %v8565_v1 = vmul.f32 %v8461_v62, %v9310_v29  ;;  %v8569_v20 = vmul.f32 %v8461_v62, %v9313_v49  ;;  %v9357_v42 = vld [vmem:[#allocation41_spill] sm:$0xff]  ;;  %v8585_v29 = vpop.permute.xlu1 %4666 }
 0x5f1   :  { %9352 = vst [vmem:[#allocation55_spill] sm:$0xff] %v8561_v7  ;;  %v8573_v8 = vmul.f32 %v8461_v62, %v9315_v10  ;;  %v8581_v32 = vmul.f32 %v8465_v37, %v9357_v42  ;;  %v8583_v7 = vpop.permute.xlu0 %4656  ;;  %v8597_v62 = vmul.f32 %v8465_v37, %v7996_v60 }
 0x5f2   :  { %9349 = vst [vmem:[#allocation52_spill] sm:$0xff] %v8550_v61  ;;  %9350 = vst [vmem:[#allocation53_spill] sm:$0xff] %v8553_v44  ;;  %v9356_v44 = vld [vmem:[#allocation23_spill] sm:$0xff] }
 0x5f3   :  { %9353 = vst [vmem:[#allocation56_spill] sm:$0xff] %v8565_v1  ;;  %9354 = vst [vmem:[#allocation57_spill] sm:$0xff] %v8569_v20  ;;  %v8577_v6 = vmul.f32 %v8465_v37, %v9356_v44  ;;  %v9359_v1 = vld [vmem:[#allocation21_spill] sm:$0xff]  ;;  %v9361_v44 = vld [vmem:[#allocation31_spill] sm:$0xff] }
 0x5f4   :  { %9355 = vst [vmem:[#allocation58_spill] sm:$0xff] %v8573_v8  ;;  %9358 = vst [vmem:[#allocation23_spill] sm:$0xff] %v8583_v7  ;;  %v8589_v49 = vmul.f32 %v8465_v37, %v9359_v1  ;;  %v9360_v20 = vld [vmem:[#allocation25_spill] sm:$0xff]  ;;  %v8601_v42 = vmul.f32 %v8465_v37, %v9361_v44  ;;  %v8605_v7 = vmul.f32 %v8465_v37, %v7986_v15  ;;  %v9362_v8 = vld [vmem:[#allocation38_spill] sm:$0xff] }
 0x5f5   :  { %v8593_v10 = vmul.f32 %v8465_v37, %v9360_v20  ;;  %v8609_v1 = vmul.f32 %v8465_v37, %v8005_v45  ;;  %v8613_v20 = vmul.f32 %v8465_v37, %v8047_v50  ;;  %v8617_v60 = vmul.f32 %v8465_v37, %v9362_v8  ;;  %v8683_v61 = vpop.permute.xlu0 %4660 }
 0x5f6   :  { %v8621_v44 = vmul.f32 %v8465_v37, %v8037_v48  ;;  %v8625_v15 = vmul.f32 %v8465_v37, %v8061_v46  ;;  %v8629_v45 = vmul.f32 %v8465_v37, %v8083_v51  ;;  %v8633_v50 = vmul.f32 %v8465_v37, %v8103_v4  ;;  %9365 = vst [vmem:[#allocation25_spill] sm:$0xff] %v8683_v61 }
 0x5f7   :  { %v8637_v8 = vmul.f32 %v8465_v37, %v8075_v63  ;;  %v8641_v48 = vmul.f32 %v8465_v37, %v9282_v24  ;;  %v8645_v46 = vmul.f32 %v8465_v37, %v9285_v21  ;;  %v8649_v51 = vmul.f32 %v8465_v37, %v9287_v34 }
 0x5f8   :  { %v8653_v4 = vmul.f32 %v8465_v37, %v9290_v30  ;;  %v8657_v63 = vmul.f32 %v8465_v37, %v9293_v5  ;;  %v8661_v24 = vmul.f32 %v8465_v37, %v8167_v12  ;;  %v8665_v21 = vmul.f32 %v8465_v37, %v8182_v19  ;;  %v8685_v19 = vpop.permute.xlu1 %4670 }
 0x5f9   :  { %v8669_v34 = vmul.f32 %v8465_v37, %v8193_v3  ;;  %v8673_v30 = vmul.f32 %v8465_v37, %v8210_v59  ;;  %v8677_v5 = vmul.f32 %v8465_v37, %v8223_v53  ;;  %v8681_v12 = vmul.f32 %v8465_v37, %v8249_v27 }
 0x5fa   :  { %v8689_v3 = vmul.f32 %v8465_v37, %v8265_v43  ;;  %v8693_v59 = vmul.f32 %v8465_v37, %v8284_v31  ;;  %v8697_v53 = vmul.f32 %v8465_v37, %v8301_v38  ;;  %v8701_v27 = vmul.f32 %v8465_v37, %v8317_v54 }
 0x5fb   :  { %9363 = vst [vmem:[#allocation41_spill] sm:$0xff] %v8677_v5  ;;  %9364 = vst [vmem:[#allocation21_spill] sm:$0xff] %v8681_v12  ;;  %v9370_v12 = vld [vmem:[#allocation43_spill] sm:$0xff]  ;;  %v9372_v5 = vld [vmem:[#allocation12_spill] sm:$0xff] }
 0x5fc   :  { %9366 = vst [vmem:[#allocation31_spill] sm:$0xff] %v8689_v3  ;;  %9367 = vst [vmem:[#allocation38_spill] sm:$0xff] %v8693_v59  ;;  %v8705_v61 = vmul.f32 %v8465_v37, %v9370_v12  ;;  %v8709_v43 = vmul.f32 %v8465_v37, %v9372_v5  ;;  %v5336_v3 = vld [vmem:[#allocation3 + $0x100] sm:$0xff]  ;;  %v5337_v59 = vld [vmem:[#allocation3 + $0x108] sm:$0xff] }
 0x5fd   :  { %9368 = vst [vmem:[#allocation59_spill] sm:$0xff] %v8697_v53  ;;  %9369 = vst [vmem:[#allocation60_spill] sm:$0xff] %v8701_v27  ;;  %v8712_v31 = vmul.f32 %v5336_v3, %v8463_v47  ;;  %v8715_v38 = vmul.f32 %v5337_v59, %v8463_v47  ;;  %v5338_v53 = vld [vmem:[#allocation3 + $0x110] sm:$0xff]  ;;  %v5339_v27 = vld [vmem:[#allocation3 + $0x118] sm:$0xff] }
 0x5fe   :  { %9371 = vst [vmem:[#allocation43_spill] sm:$0xff] %v8705_v61  ;;  %9373 = vst [vmem:[#allocation12_spill] sm:$0xff] %v8709_v43  ;;  %v8718_v54 = vmul.f32 %v5338_v53, %v8463_v47  ;;  %v8721_v12 = vmul.f32 %v5339_v27, %v8463_v47  ;;  %v5340_v61 = vld [vmem:[#allocation3 + $0x120] sm:$0xff]  ;;  %v5341_v5 = vld [vmem:[#allocation3 + $0x128] sm:$0xff] }
 0x5ff   :  { %9374 = vst [vmem:[#allocation61_spill] sm:$0xff] %v8712_v31  ;;  %9375 = vst [vmem:[#allocation62_spill] sm:$0xff] %v8715_v38  ;;  %v8724_v37 = vmul.f32 %v5340_v61, %v8463_v47  ;;  %v8727_v3 = vmul.f32 %v5341_v5, %v8463_v47  ;;  %v5342_v31 = vld [vmem:[#allocation3 + $0x130] sm:$0xff]  ;;  %v5343_v38 = vld [vmem:[#allocation3 + $0x138] sm:$0xff] }
 0x600   :  { %9376 = vst [vmem:[#allocation63_spill] sm:$0xff] %v8718_v54  ;;  %9377 = vst [vmem:[#allocation64_spill] sm:$0xff] %v8721_v12  ;;  %v8730_v59 = vmul.f32 %v5342_v31, %v8463_v47  ;;  %v8733_v53 = vmul.f32 %v5343_v38, %v8463_v47  ;;  %v5344_v54 = vld [vmem:[#allocation3 + $0x140] sm:$0xff]  ;;  %v9383_v12 = vld [vmem:[#allocation29_spill] sm:$0xff] }
 0x601   :  { %9378 = vst [vmem:[#allocation65_spill] sm:$0xff] %v8724_v37  ;;  %9379 = vst [vmem:[#allocation66_spill] sm:$0xff] %v8727_v3  ;;  %v8736_v27 = vmul.f32 %v5344_v54, %v8463_v47  ;;  %v8740_v61 = vmul.f32 %v8463_v47, %v9383_v12  ;;  %v9385_v37 = vld [vmem:[#allocation30_spill] sm:$0xff]  ;;  %v9387_v3 = vld [vmem:[#allocation32_spill] sm:$0xff] }
 0x602   :  { %9380 = vst [vmem:[#allocation67_spill] sm:$0xff] %v8730_v59  ;;  %9381 = vst [vmem:[#allocation68_spill] sm:$0xff] %v8733_v53  ;;  %v8744_v5 = vmul.f32 %v8463_v47, %v9385_v37  ;;  %v8748_v31 = vmul.f32 %v8463_v47, %v9387_v3  ;;  %v9389_v59 = vld [vmem:[#allocation33_spill] sm:$0xff]  ;;  %v9391_v53 = vld [vmem:[#allocation34_spill] sm:$0xff] }
 0x603   :  { %9382 = vst [vmem:[#allocation69_spill] sm:$0xff] %v8736_v27  ;;  %9384 = vst [vmem:[#allocation29_spill] sm:$0xff] %v8740_v61  ;;  %v8752_v38 = vmul.f32 %v8463_v47, %v9389_v59  ;;  %v8756_v54 = vmul.f32 %v8463_v47, %v9391_v53  ;;  %v9393_v27 = vld [vmem:[#allocation35_spill] sm:$0xff]  ;;  %v9395_v61 = vld [vmem:[#allocation36_spill] sm:$0xff]  ;;  %v4675_v53 = vpop.permute.xlu1 %4674 }
 0x604   :  { %9386 = vst [vmem:[#allocation30_spill] sm:$0xff] %v8744_v5  ;;  %9388 = vst [vmem:[#allocation32_spill] sm:$0xff] %v8748_v31  ;;  %v8760_v12 = vmul.f32 %v8463_v47, %v9393_v27  ;;  %v8764_v37 = vmul.f32 %v8463_v47, %v9395_v61  ;;  %v9396_v5 = vld [vmem:[#allocation37_spill] sm:$0xff]  ;;  %v8783_v61 = vmul.f32 %v8463_v47, %v8007_v33 }
 0x605   :  { %9390 = vst [vmem:[#allocation33_spill] sm:$0xff] %v8752_v38  ;;  %9392 = vst [vmem:[#allocation34_spill] sm:$0xff] %v8756_v54  ;;  %v8768_v3 = vmul.f32 %v8463_v47, %v9396_v5  ;;  %v5345_v31 = vld [vmem:[#allocation3 + $0x190] sm:$0xff]  ;;  %v8773_v38 = vpop.permute.xlu0 %4664  ;;  %v5346_v54 = vld [vmem:[#allocation3 + $0x1a0] sm:$0xff]  ;;  %v8787_v5 = vmul.f32 %v8463_v47, %v8081_v2  ;;  %v8803_v33 = vmul.f32 %v8423_v57, %v8467_v41 }
 0x606   :  { %9394 = vst [vmem:[#allocation35_spill] sm:$0xff] %v8760_v12  ;;  %v8771_v59 = vmul.f32 %v5345_v31, %v8463_v47  ;;  %9398 = vst [vmem:[#allocation37_spill] sm:$0xff] %v8773_v38  ;;  %v8776_v43 = vmul.f32 %v5346_v54, %v8463_v47  ;;  %v5347_v27 = vld [vmem:[#allocation3 + $0x1b0] sm:$0xff]  ;;  %v8791_v31 = vmul.f32 %v8463_v47, %v8097_v55 }
 0x607   :  { %v8779_v12 = vmul.f32 %v5347_v27, %v8463_v47  ;;  %9401 = vst [vmem:[#allocation72_spill] sm:$0xff] %v8783_v61  ;;  %9402 = vst [vmem:[#allocation73_spill] sm:$0xff] %v8787_v5  ;;  %v8795_v54 = vmul.f32 %v8463_v47, %v8109_v14  ;;  %v8799_v27 = vmul.f32 %v8429_v22, %v8467_v41  ;;  %v9405_v38 = vld [vmem:[#allocation45_spill] sm:$0xff]  ;;  %v9409_v5 = vld [vmem:[#allocation47_spill] sm:$0xff] }
 0x608   :  { %9397 = vst [vmem:[#allocation36_spill] sm:$0xff] %v8771_v59  ;;  %9399 = vst [vmem:[#allocation70_spill] sm:$0xff] %v8776_v43  ;;  %v8807_v2 = vmul.f32 %v8433_v18, %v8467_v41  ;;  %v8811_v55 = vmul.f32 %v8425_v58, %v8467_v41  ;;  %v8815_v14 = vmul.f32 %v8437_v52, %v8467_v41  ;;  %v9419_v43 = vld [vmem:[#allocation15_spill] sm:$0xff] }
 0x609   :  { %9400 = vst [vmem:[#allocation71_spill] sm:$0xff] %v8779_v12  ;;  %9403 = vst [vmem:[#allocation74_spill] sm:$0xff] %v8791_v31  ;;  %v8819_v22 = vmul.f32 %v8427_v36, %v8467_v41  ;;  %v8823_v57 = vmul.f32 %v8441_v16, %v8467_v41  ;;  %v8827_v18 = vmul.f32 %v8431_v56, %v8467_v41  ;;  %v8869_v31 = vpop.permute.xlu0 %4668 }
 0x60a   :  { %9404 = vst [vmem:[#allocation75_spill] sm:$0xff] %v8795_v54  ;;  %v8831_v58 = vmul.f32 %v8445_v11, %v8467_v41  ;;  %v8835_v52 = vmul.f32 %v8435_v0, %v8467_v41  ;;  %v8839_v36 = vmul.f32 %v8449_v35, %v8467_v41  ;;  %v8843_v16 = vmul.f32 %v8439_v13, %v8467_v41  ;;  %v9406_v54 = vld [vmem:[#allocation14_spill] sm:$0xff] }
 0x60b   :  { %v8847_v56 = vmul.f32 %v8451_v23, %v8467_v41  ;;  %v8851_v11 = vmul.f32 %v8443_v28, %v8467_v41  ;;  %v8855_v0 = vmul.f32 %v8453_v26, %v8467_v41  ;;  %v8859_v35 = vmul.f32 %v9405_v38, %v8467_v41  ;;  %9408 = vst [vmem:[#allocation14_spill] sm:$0xff] %v8869_v31  ;;  %v4679_v28 = vpop.permute.xlu1 %4678  ;;  %v9411_v26 = vld [vmem:[#allocation51_spill] sm:$0xff] }
 0x60c   :  { %v8863_v13 = vmul.f32 %v8455_v25, %v8467_v41  ;;  %v8867_v23 = vmul.f32 %v9406_v54, %v8467_v41  ;;  %v8873_v61 = vmul.f32 %v9409_v5, %v8467_v41  ;;  %v8877_v12 = vmul.f32 %v9411_v26, %v8467_v41  ;;  %v9417_v5 = vld [vmem:[#allocation39_spill] sm:$0xff] }
 0x60d   :  { %v8881_v38 = vmul.f32 %v8585_v29, %v8467_v41  ;;  %v8885_v25 = vmul.f32 %v8685_v19, %v8467_v41  ;;  %v8888_v54 = vmul.f32 %v4675_v53, %v8467_v41  ;;  %v8891_v31 = vmul.f32 %v4679_v28, %v8467_v41  ;;  %v9418_v26 = vld [vmem:[#allocation7_spill] sm:$0xff]  ;;  %v9421_v19 = vld [vmem:[#allocation17_spill] sm:$0xff]  ;;  %v9422_v53 = vld [vmem:[#allocation16_spill] sm:$0xff] }
 0x60e   :  { %9407 = vst [vmem:[#allocation45_spill] sm:$0xff] %v8867_v23  ;;  %9410 = vst [vmem:[#allocation47_spill] sm:$0xff] %v8873_v61  ;;  %v4567_v61 = vmul.f32 %v8463_v47, %v9417_v5  ;;  %v4450_v29 = vadd.f32 %v8577_v6, %v9419_v43  ;;  %v9424_v5 = vld [vmem:[#allocation11_spill] sm:$0xff]  ;;  %v9426_v6 = vld [vmem:[#allocation9_spill] sm:$0xff] }
 0x60f   :  { %9412 = vst [vmem:[#allocation51_spill] sm:$0xff] %v8877_v12  ;;  %9413 = vst [vmem:[#allocation76_spill] sm:$0xff] %v8881_v38  ;;  %v4731_v12 = vmul.f32 %v9418_v26, %v8467_v41  ;;  %v9420_v38 = vld [vmem:[#allocation50_spill] sm:$0xff]  ;;  %v4455_v47 = vadd.f32 %v8601_v42, %v9424_v5  ;;  %v9425_v26 = vld [vmem:[#allocation8_spill] sm:$0xff]  ;;  %v4457_v43 = vadd.f32 %v8609_v1, %v9426_v6 }
 0x610   :  { %9414 = vst [vmem:[#allocation77_spill] sm:$0xff] %v8885_v25  ;;  %9415 = vst [vmem:[#allocation78_spill] sm:$0xff] %v8888_v54  ;;  %v4451_v23 = vadd.f32 %v8581_v32, %v9420_v38  ;;  %v4452_v25 = vadd.f32 %v8589_v49, %v9421_v19  ;;  %v4453_v54 = vadd.f32 %v8593_v10, %v9422_v53  ;;  %v9427_v32 = vld [vmem:[#allocation48_spill] sm:$0xff]  ;;  %v9428_v49 = vld [vmem:[#allocation10_spill] sm:$0xff] }
 0x611   :  { %9416 = vst [vmem:[#allocation79_spill] sm:$0xff] %v8891_v31  ;;  %v4763_v28 = vadd.f32 %v4731_v12, %v4567_v61  ;;  %v9423_v31 = vld [vmem:[#allocation18_spill] sm:$0xff]  ;;  %v4456_v41 = vadd.f32 %v8605_v7, %v9425_v26  ;;  %v4458_v38 = vadd.f32 %v8613_v20, %v9427_v32  ;;  %v4459_v19 = vadd.f32 %v8617_v60, %v9428_v49  ;;  %v9429_v10 = vld [vmem:[#allocation19_spill] sm:$0xff]  ;;  %v9430_v7 = vld [vmem:[#allocation20_spill] sm:$0xff] }
 0x612   :  { %v4454_v59 = vadd.f32 %v8597_v62, %v9423_v31  ;;  %v4460_v12 = vadd.f32 %v8621_v44, %v9429_v10  ;;  %4482 = vst.msk [vmem:[#allocation4] sm:$0xff] %vm178_vm3, %v4450_v29  ;;  %4483 = vst.msk [vmem:[#allocation4 + $0x8] sm:$0xff] %vm178_vm3, %v4451_v23  ;;  %v4461_v62 = vadd.f32 %v8625_v15, %v9430_v7  ;;  %v9431_v42 = vld [vmem:[#allocation22_spill] sm:$0xff]  ;;  %v9432_v20 = vld [vmem:[#allocation28_spill] sm:$0xff]  ;;  %v8935_v31 = vpop.permute.xlu0 %4672 }
 0x613   :  { %4484 = vst.msk [vmem:[#allocation4 + $0x10] sm:$0xff] %vm178_vm3, %v4452_v25  ;;  %4485 = vst.msk [vmem:[#allocation4 + $0x18] sm:$0xff] %vm178_vm3, %v4453_v54  ;;  %v4462_v1 = vadd.f32 %v8629_v45, %v9431_v42  ;;  %v4463_v60 = vadd.f32 %v8633_v50, %v9432_v20  ;;  %v9433_v44 = vld [vmem:[#allocation24_spill] sm:$0xff]  ;;  %v9434_v23 = vld [vmem:[#allocation26_spill] sm:$0xff] }
 0x614   :  { %4796 = vst.msk [vmem:[#allocation4 + $0x188] sm:$0xff] %vm178_vm3, %v4763_v28  ;;  %v4464_v61 = vadd.f32 %v8637_v8, %v9433_v44  ;;  %4486 = vst.msk [vmem:[#allocation4 + $0x20] sm:$0xff] %vm178_vm3, %v4454_v59  ;;  %v4465_v15 = vadd.f32 %v8641_v48, %v9434_v23  ;;  %v9435_v25 = vld [vmem:[#allocation27_spill] sm:$0xff]  ;;  %v9436_v54 = vld [vmem:[#allocation40_spill] sm:$0xff] }
 0x615   :  { %4487 = vst.msk [vmem:[#allocation4 + $0x28] sm:$0xff] %vm178_vm3, %v4455_v47  ;;  %4488 = vst.msk [vmem:[#allocation4 + $0x30] sm:$0xff] %vm178_vm3, %v4456_v41  ;;  %v4466_v45 = vadd.f32 %v8645_v46, %v9435_v25  ;;  %v4467_v50 = vadd.f32 %v8649_v51, %v9436_v54  ;;  %v9437_v29 = vld [vmem:[#allocation42_spill] sm:$0xff]  ;;  %v9438_v41 = vld [vmem:[#allocation44_spill] sm:$0xff]  ;;  %v4471_v51 = vadd.f32 %v8665_v21, %v8538_v39 }
 0x616   :  { %v4468_v8 = vadd.f32 %v8653_v4, %v9437_v29  ;;  %4489 = vst.msk [vmem:[#allocation4 + $0x38] sm:$0xff] %vm178_vm3, %v4457_v43  ;;  %4490 = vst.msk [vmem:[#allocation4 + $0x40] sm:$0xff] %vm178_vm3, %v4458_v38  ;;  %v4469_v47 = vadd.f32 %v8657_v63, %v9438_v41  ;;  %v9439_v48 = vld [vmem:[#allocation46_spill] sm:$0xff]  ;;  %v4472_v4 = vadd.f32 %v8669_v34, %v8541_v9  ;;  %v9440_v59 = vld [vmem:[#allocation41_spill] sm:$0xff] }
 0x617   :  { %4491 = vst.msk [vmem:[#allocation4 + $0x48] sm:$0xff] %vm178_vm3, %v4459_v19  ;;  %4492 = vst.msk [vmem:[#allocation4 + $0x50] sm:$0xff] %vm178_vm3, %v4460_v12  ;;  %v4470_v46 = vadd.f32 %v8661_v24, %v9439_v48  ;;  %v4473_v63 = vadd.f32 %v8673_v30, %v8544_v17  ;;  %v4474_v24 = vadd.f32 %v9440_v59, %v8547_v40  ;;  %v9441_v53 = vld [vmem:[#allocation52_spill] sm:$0xff]  ;;  %v9442_v28 = vld [vmem:[#allocation21_spill] sm:$0xff] }
 0x618   :  { %4493 = vst.msk [vmem:[#allocation4 + $0x58] sm:$0xff] %vm178_vm3, %v4461_v62  ;;  %4494 = vst.msk [vmem:[#allocation4 + $0x60] sm:$0xff] %vm178_vm3, %v4462_v1  ;;  %v4475_v39 = vadd.f32 %v9442_v28, %v9441_v53  ;;  %v9443_v21 = vld [vmem:[#allocation53_spill] sm:$0xff]  ;;  %v9444_v5 = vld [vmem:[#allocation31_spill] sm:$0xff] }
 0x619   :  { %4495 = vst.msk [vmem:[#allocation4 + $0x68] sm:$0xff] %vm178_vm3, %v4463_v60  ;;  %4496 = vst.msk [vmem:[#allocation4 + $0x70] sm:$0xff] %vm178_vm3, %v4464_v61  ;;  %v4476_v9 = vadd.f32 %v9444_v5, %v9443_v21  ;;  %v9445_v34 = vld [vmem:[#allocation54_spill] sm:$0xff]  ;;  %v9447_v30 = vld [vmem:[#allocation55_spill] sm:$0xff] }
 0x61a   :  { %4497 = vst.msk [vmem:[#allocation4 + $0x78] sm:$0xff] %vm178_vm3, %v4465_v15  ;;  %4498 = vst.msk [vmem:[#allocation4 + $0x80] sm:$0xff] %vm178_vm3, %v4466_v45  ;;  %v9446_v26 = vld [vmem:[#allocation38_spill] sm:$0xff]  ;;  %v9448_v6 = vld [vmem:[#allocation59_spill] sm:$0xff] }
 0x61b   :  { %4499 = vst.msk [vmem:[#allocation4 + $0x88] sm:$0xff] %vm178_vm3, %v4467_v50  ;;  %4500 = vst.msk [vmem:[#allocation4 + $0x90] sm:$0xff] %vm178_vm3, %v4468_v8  ;;  %v4477_v17 = vadd.f32 %v9446_v26, %v9445_v34  ;;  %v4478_v40 = vadd.f32 %v9448_v6, %v9447_v30  ;;  %v9449_v43 = vld [vmem:[#allocation56_spill] sm:$0xff]  ;;  %v9451_v49 = vld [vmem:[#allocation57_spill] sm:$0xff]  ;;  %v9009_v50 = vpop.permute.xlu0 %4676 }
 0x61c   :  { %v9450_v32 = vld [vmem:[#allocation60_spill] sm:$0xff]  ;;  %v9452_v19 = vld [vmem:[#allocation43_spill] sm:$0xff]  ;;  %4501 = vst.msk [vmem:[#allocation4 + $0x98] sm:$0xff] %vm178_vm3, %v4469_v47  ;;  %4502 = vst.msk [vmem:[#allocation4 + $0xa0] sm:$0xff] %vm178_vm3, %v4470_v46 }
 0x61d   :  { %v4479_v38 = vadd.f32 %v9450_v32, %v9449_v43  ;;  %v4480_v10 = vadd.f32 %v9452_v19, %v9451_v49  ;;  %4503 = vst.msk [vmem:[#allocation4 + $0xa8] sm:$0xff] %vm178_vm3, %v4471_v51  ;;  %4504 = vst.msk [vmem:[#allocation4 + $0xb0] sm:$0xff] %vm178_vm3, %v4472_v4  ;;  %v9453_v12 = vld [vmem:[#allocation58_spill] sm:$0xff]  ;;  %v9454_v7 = vld [vmem:[#allocation12_spill] sm:$0xff] }
 0x61e   :  { %v4481_v62 = vadd.f32 %v9454_v7, %v9453_v12  ;;  %v9455_v42 = vld [vmem:[#allocation61_spill] sm:$0xff]  ;;  %v9456_v20 = vld [vmem:[#allocation62_spill] sm:$0xff]  ;;  %v9457_v44 = vld [vmem:[#allocation63_spill] sm:$0xff]  ;;  %4505 = vst.msk [vmem:[#allocation4 + $0xb8] sm:$0xff] %vm178_vm3, %v4473_v63 }
 0x61f   :  { %v4746_v1 = vadd.f32 %v8799_v27, %v9455_v42  ;;  %v4747_v60 = vadd.f32 %v8803_v33, %v9456_v20  ;;  %v4748_v61 = vadd.f32 %v8807_v2, %v9457_v44  ;;  %4506 = vst.msk [vmem:[#allocation4 + $0xc0] sm:$0xff] %vm178_vm3, %v4474_v24  ;;  %4507 = vst.msk [vmem:[#allocation4 + $0xc8] sm:$0xff] %vm178_vm3, %v4475_v39  ;;  %v9458_v23 = vld [vmem:[#allocation64_spill] sm:$0xff]  ;;  %v9459_v25 = vld [vmem:[#allocation65_spill] sm:$0xff] }
 0x620   :  { %4508 = vst.msk [vmem:[#allocation4 + $0xd0] sm:$0xff] %vm178_vm3, %v4476_v9  ;;  %v4749_v15 = vadd.f32 %v8811_v55, %v9458_v23  ;;  %v4750_v27 = vadd.f32 %v8815_v14, %v9459_v25  ;;  %v9460_v45 = vld [vmem:[#allocation66_spill] sm:$0xff]  ;;  %v9461_v54 = vld [vmem:[#allocation67_spill] sm:$0xff]  ;;  %4509 = vst.msk [vmem:[#allocation4 + $0xd8] sm:$0xff] %vm178_vm3, %v4477_v17 }
 0x621   :  { %v4751_v33 = vadd.f32 %v8819_v22, %v9460_v45  ;;  %v4752_v2 = vadd.f32 %v8823_v57, %v9461_v54  ;;  %4510 = vst.msk [vmem:[#allocation4 + $0xe0] sm:$0xff] %vm178_vm3, %v4478_v40  ;;  %4511 = vst.msk [vmem:[#allocation4 + $0xe8] sm:$0xff] %vm178_vm3, %v4479_v38  ;;  %v9462_v55 = vld [vmem:[#allocation68_spill] sm:$0xff]  ;;  %v9463_v14 = vld [vmem:[#allocation69_spill] sm:$0xff] }
 0x622   :  { %4512 = vst.msk [vmem:[#allocation4 + $0xf0] sm:$0xff] %vm178_vm3, %v4480_v10  ;;  %v4753_v29 = vadd.f32 %v8827_v18, %v9462_v55  ;;  %v4754_v8 = vadd.f32 %v8831_v58, %v9463_v14  ;;  %v9464_v22 = vld [vmem:[#allocation29_spill] sm:$0xff]  ;;  %v9465_v57 = vld [vmem:[#allocation30_spill] sm:$0xff]  ;;  %4513 = vst.msk [vmem:[#allocation4 + $0xf8] sm:$0xff] %vm178_vm3, %v4481_v62 }
 0x623   :  { %v4755_v41 = vadd.f32 %v8835_v52, %v9464_v22  ;;  %v4756_v47 = vadd.f32 %v8839_v36, %v9465_v57  ;;  %4779 = vst.msk [vmem:[#allocation4 + $0x100] sm:$0xff] %vm178_vm3, %v4746_v1  ;;  %4780 = vst.msk [vmem:[#allocation4 + $0x108] sm:$0xff] %vm178_vm3, %v4747_v60  ;;  %v9466_v48 = vld [vmem:[#allocation32_spill] sm:$0xff]  ;;  %v9467_v46 = vld [vmem:[#allocation33_spill] sm:$0xff] }
 0x624   :  { %4781 = vst.msk [vmem:[#allocation4 + $0x110] sm:$0xff] %vm178_vm3, %v4748_v61  ;;  %v4757_v18 = vadd.f32 %v8843_v16, %v9466_v48  ;;  %v4758_v58 = vadd.f32 %v8847_v56, %v9467_v46  ;;  %v9468_v51 = vld [vmem:[#allocation34_spill] sm:$0xff]  ;;  %v9469_v4 = vld [vmem:[#allocation35_spill] sm:$0xff]  ;;  %4782 = vst.msk [vmem:[#allocation4 + $0x118] sm:$0xff] %vm178_vm3, %v4749_v15  ;;  %v4761_v16 = vadd.f32 %v8859_v35, %v8764_v37  ;;  %v4681_v15 = vpop.permute.xlu0 %4680 }
 0x625   :  { %v4759_v52 = vadd.f32 %v8851_v11, %v9468_v51  ;;  %v4760_v36 = vadd.f32 %v8855_v0, %v9469_v4  ;;  %4783 = vst.msk [vmem:[#allocation4 + $0x120] sm:$0xff] %vm178_vm3, %v4750_v27  ;;  %4784 = vst.msk [vmem:[#allocation4 + $0x128] sm:$0xff] %vm178_vm3, %v4751_v33  ;;  %v4762_v56 = vadd.f32 %v8863_v13, %v8768_v3  ;;  %v9470_v63 = vld [vmem:[#allocation36_spill] sm:$0xff]  ;;  %v9471_v59 = vld [vmem:[#allocation45_spill] sm:$0xff] }
 0x626   :  { %4785 = vst.msk [vmem:[#allocation4 + $0x130] sm:$0xff] %vm178_vm3, %v4752_v2  ;;  %v4764_v11 = vadd.f32 %v9471_v59, %v9470_v63  ;;  %v9472_v24 = vld [vmem:[#allocation70_spill] sm:$0xff]  ;;  %v9473_v53 = vld [vmem:[#allocation47_spill] sm:$0xff]  ;;  %4786 = vst.msk [vmem:[#allocation4 + $0x138] sm:$0xff] %vm178_vm3, %v4753_v29 }
 0x627   :  { %v4766_v0 = vadd.f32 %v9473_v53, %v9472_v24  ;;  %4787 = vst.msk [vmem:[#allocation4 + $0x140] sm:$0xff] %vm178_vm3, %v4754_v8  ;;  %4788 = vst.msk [vmem:[#allocation4 + $0x148] sm:$0xff] %vm178_vm3, %v4755_v41  ;;  %v9474_v28 = vld [vmem:[#allocation71_spill] sm:$0xff]  ;;  %v9476_v35 = vld [vmem:[#allocation72_spill] sm:$0xff] }
 0x628   :  { %4789 = vst.msk [vmem:[#allocation4 + $0x150] sm:$0xff] %vm178_vm3, %v4756_v47  ;;  %v9475_v39 = vld [vmem:[#allocation51_spill] sm:$0xff]  ;;  %v9477_v21 = vld [vmem:[#allocation76_spill] sm:$0xff]  ;;  %v9478_v13 = vld [vmem:[#allocation73_spill] sm:$0xff] }
 0x629   :  { %v4768_v37 = vadd.f32 %v9475_v39, %v9474_v28  ;;  %v4770_v3 = vadd.f32 %v9477_v21, %v9476_v35  ;;  %v9479_v5 = vld [vmem:[#allocation77_spill] sm:$0xff]  ;;  %v9480_v34 = vld [vmem:[#allocation74_spill] sm:$0xff]  ;;  %4790 = vst.msk [vmem:[#allocation4 + $0x158] sm:$0xff] %vm178_vm3, %v4757_v18  ;;  %4791 = vst.msk [vmem:[#allocation4 + $0x160] sm:$0xff] %vm178_vm3, %v4758_v58 }
 0x62a   :  { %v4772_v9 = vadd.f32 %v9479_v5, %v9478_v13  ;;  %v9481_v26 = vld [vmem:[#allocation78_spill] sm:$0xff]  ;;  %4792 = vst.msk [vmem:[#allocation4 + $0x168] sm:$0xff] %vm178_vm3, %v4759_v52  ;;  %4793 = vst.msk [vmem:[#allocation4 + $0x170] sm:$0xff] %vm178_vm3, %v4760_v36  ;;  %v9482_v30 = vld [vmem:[#allocation75_spill] sm:$0xff] }
 0x62b   :  { %v4774_v17 = vadd.f32 %v9481_v26, %v9480_v34  ;;  %v9483_v6 = vld [vmem:[#allocation79_spill] sm:$0xff]  ;;  %v5348_v43 = vld [vmem:[#allocation3 + $0x198] sm:$0xff]  ;;  %v9484_v32 = vld [vmem:[#allocation13_spill] sm:$0xff]  ;;  %4794 = vst.msk [vmem:[#allocation4 + $0x178] sm:$0xff] %vm178_vm3, %v4761_v16 }
 0x62c   :  { %v4776_v40 = vadd.f32 %v9483_v6, %v9482_v30  ;;  %v4569_v38 = vmul.f32 %v5348_v43, %v9484_v32  ;;  %v9485_v49 = vld [vmem:[#allocation49_spill] sm:$0xff]  ;;  %v9486_v19 = vld [vmem:[#allocation23_spill] sm:$0xff]  ;;  %4795 = vst.msk [vmem:[#allocation4 + $0x180] sm:$0xff] %vm178_vm3, %v4762_v56  ;;  %4797 = vst.msk [vmem:[#allocation4 + $0x190] sm:$0xff] %vm178_vm3, %v4764_v11 }
 0x62d   :  { %v4733_v10 = vmul.f32 %v9486_v19, %v9485_v49  ;;  %4799 = vst.msk [vmem:[#allocation4 + $0x1a0] sm:$0xff] %vm178_vm3, %v4766_v0  ;;  %v5349_v12 = vld [vmem:[#allocation3 + $0x1a8] sm:$0xff]  ;;  %4801 = vst.msk [vmem:[#allocation4 + $0x1b0] sm:$0xff] %vm178_vm3, %v4768_v37  ;;  %v9487_v62 = vld [vmem:[#allocation25_spill] sm:$0xff]  ;;  %v4741_v2 = vmul.f32 %v8935_v31, %v9485_v49  ;;  %v4743_v22 = vmul.f32 %v9009_v50, %v9485_v49 }
 0x62e   :  { %v4571_v7 = vmul.f32 %v5349_v12, %v9484_v32  ;;  %4803 = vst.msk [vmem:[#allocation4 + $0x1c0] sm:$0xff] %vm178_vm3, %v4770_v3  ;;  %4805 = vst.msk [vmem:[#allocation4 + $0x1d0] sm:$0xff] %vm178_vm3, %v4772_v9  ;;  %v4735_v42 = vmul.f32 %v9487_v62, %v9485_v49  ;;  %v5350_v1 = vld [vmem:[#allocation3 + $0x1b8] sm:$0xff]  ;;  %v9488_v60 = vld [vmem:[#allocation37_spill] sm:$0xff]  ;;  %v4745_v18 = vmul.f32 %v4681_v15, %v9485_v49 }
 0x62f   :  { %4807 = vst.msk [vmem:[#allocation4 + $0x1e0] sm:$0xff] %vm178_vm3, %v4774_v17  ;;  %v4573_v20 = vmul.f32 %v5350_v1, %v9484_v32  ;;  %v4737_v44 = vmul.f32 %v9488_v60, %v9485_v49  ;;  %v5351_v61 = vld [vmem:[#allocation3 + $0x1c8] sm:$0xff]  ;;  %v4765_v25 = vadd.f32 %v4733_v10, %v4569_v38  ;;  %4809 = vst.msk [vmem:[#allocation4 + $0x1f0] sm:$0xff] %vm178_vm3, %v4776_v40  ;;  %v9489_v27 = vld [vmem:[#allocation14_spill] sm:$0xff] }
 0x630   :  { %v4575_v23 = vmul.f32 %v5351_v61, %v9484_v32  ;;  %v4739_v45 = vmul.f32 %v9489_v27, %v9485_v49  ;;  %v5352_v33 = vld [vmem:[#allocation3 + $0x1d8] sm:$0xff]  ;;  %v4767_v55 = vadd.f32 %v4735_v42, %v4571_v7  ;;  %v5353_v14 = vld [vmem:[#allocation3 + $0x1e8] sm:$0xff] }
 0x631   :  { %v4577_v54 = vmul.f32 %v5352_v33, %v9484_v32  ;;  %v4769_v29 = vadd.f32 %v4737_v44, %v4573_v20  ;;  %v4579_v8 = vmul.f32 %v5353_v14, %v9484_v32  ;;  %4798 = vst.msk [vmem:[#allocation4 + $0x198] sm:$0xff] %vm178_vm3, %v4765_v25  ;;  %v5354_v47 = vld [vmem:[#allocation3 + $0x1f8] sm:$0xff] }
 0x632   :  { %v4771_v41 = vadd.f32 %v4739_v45, %v4575_v23  ;;  %v4581_v48 = vmul.f32 %v5354_v47, %v9484_v32  ;;  %4800 = vst.msk [vmem:[#allocation4 + $0x1a8] sm:$0xff] %vm178_vm3, %v4767_v55 }
 0x633   :  { %v4773_v57 = vadd.f32 %v4741_v2, %v4577_v54  ;;  %4802 = vst.msk [vmem:[#allocation4 + $0x1b8] sm:$0xff] %vm178_vm3, %v4769_v29  ;;  %v4775_v31 = vadd.f32 %v4743_v22, %v4579_v8 }
 0x634   :  { %4804 = vst.msk [vmem:[#allocation4 + $0x1c8] sm:$0xff] %vm178_vm3, %v4771_v41  ;;  %v4777_v50 = vadd.f32 %v4745_v18, %v4581_v48 }
 0x635   :  { %4806 = vst.msk [vmem:[#allocation4 + $0x1d8] sm:$0xff] %vm178_vm3, %v4773_v57  ;;  %4808 = vst.msk [vmem:[#allocation4 + $0x1e8] sm:$0xff] %vm178_vm3, %v4775_v31 }
 0x636   :  { %4810 = vst.msk [vmem:[#allocation4 + $0x1f8] sm:$0xff] %vm178_vm3, %v4777_v50 }
 0x637   :  { %5366 = shalt.err (!%p5363_p4)
}
 0x638   :  { %s5367_s30 = scalar_lea.hbm %s9116_s7, 8192 }
 0x639   :  { %p5368_p5 = scmp.ne.s32.totalorder %s9116_s7, %s5367_s30  ;;  %p5371_p6 = scmp.lt.u32.totalorder %s5367_s30, %s9116_s7 }
 0x63b   :  { %p5373_p7 = pnand %p5371_p6, %p5368_p5 }
 0x63d   :  { %5376 = shalt.err (!%p5373_p7)
}
 0x63e   :  { %s5386_s12 = smov 128   ;;  %s5387_s13 = smov 8  }
 0x63f   :  { %4822 = dma.vmem_to_hbm [thread:$0]  %s4817_s5, 8192, %s9116_s7, [#allocation5], %s5386_s12, %s5386_s12, %s5387_s13  }
 0x640   :  { %5377 = dma.done.wait [#allocation5], 8192  }
 0x641   :  { %5378 = vsyncadd [#allocation5], 4294959104 }
 0x642   :  { %4826 = vsyncpa [#allocation5], 1 }

</bundles_post_ra>
